<compile_context>
chip_gen: v7x
topology: tpu7x:2x2x1
jax: 0.10.0
libtpu: 0.0.40
codegen_flags: <defaults>
</compile_context>

<pallas_src>
import functools
import math

import jax
import jax.numpy as jnp
import numpy as np
from jax.experimental import pallas as pl
from jax.experimental.pallas import tpu as pltpu

BN_EPS = 0.001


# ----------------------------------------------------------------------------
# Parameter init (mirrors the PyTorch module's parameter shapes / default init).
# ----------------------------------------------------------------------------
def init_params(key, conv_channels, kernel_size, input_size, dense_size):
    C0, H, W = input_size
    assert C0 == conv_channels[0]
    params = {"conv": []}
    h, w = H, W
    for ii, (cin, cout) in enumerate(zip(conv_channels, conv_channels[1:])):
        kh, kw = kernel_size[ii]
        assert kh % 2 == 1 and kw % 2 == 1  # TODO(synk): even kernel sizes unsupported
        key, k1, k2 = jax.random.split(key, 3)
        fan_in = cin * kh * kw
        bound = 1.0 / math.sqrt(fan_in)
        w_conv = jax.random.uniform(k1, (kh, kw, cin, cout), jnp.float32, -bound, bound)
        b_conv = jax.random.uniform(k2, (cout,), jnp.float32, -bound, bound)
        # BatchNorm2d defaults: weight=1, bias=0, running_mean=0, running_var=1
        gamma = jnp.ones((cout,), jnp.float32)
        beta = jnp.zeros((cout,), jnp.float32)
        rmean = jnp.zeros((cout,), jnp.float32)
        rvar = jnp.ones((cout,), jnp.float32)
        params["conv"].append((w_conv, b_conv, gamma, beta, rmean, rvar))
        h = h + 2 * (kh // 2) - kh + 1            # 'same' conv keeps H
        w = (w + 2 * (kw // 2) - kw + 1) // 2     # MaxPool2d((1,2),(1,2)), floor
    flat_fts = conv_channels[-1] * h * w
    key, k1, k2, k3, k4 = jax.random.split(key, 5)
    b1 = 1.0 / math.sqrt(flat_fts)
    params["fc1_w"] = jax.random.uniform(k1, (flat_fts, dense_size), jnp.float32, -b1, b1)
    params["fc1_b"] = jax.random.uniform(k2, (dense_size,), jnp.float32, -b1, b1)
    b2 = 1.0 / math.sqrt(dense_size)
    params["fc2_w"] = jax.random.uniform(k3, (dense_size, 2), jnp.float32, -b2, b2)
    params["fc2_b"] = jax.random.uniform(k4, (2,), jnp.float32, -b2, b2)
    return params, flat_fts


# ----------------------------------------------------------------------------
# One-time (offline) weight preprocessing.
# ----------------------------------------------------------------------------
def prepare_operands(params, input_size):
    """Folds BN + conv bias into the weights; builds per-kh Toeplitz matrices whose
    output lanes are the fused (w, cout) axis and whose rows index the fused
    (w, cin) lanes of the *un-compacted* pooled activation layout (zero rows for
    pooled-away lanes, boundary taps dropped so no lane halo is needed); folds fc2
    into fc1 and the PyTorch (C,H,W) flatten order into the head weights; casts
    matmul operands to bf16 (f32 accumulation happens in-kernel)."""
    C0, H, W = input_size
    ops = []
    layers = []
    win = W          # logical width of this layer's input
    G = C0           # lanes per logical input column
    vin = W * C0     # lane width of this layer's padded activation buffer
    for (w_hwio, b, gamma, beta, rmean, rvar) in params["conv"]:
        w_hwio = np.asarray(w_hwio, np.float32)
        b = np.asarray(b, np.float32)
        gamma = np.asarray(gamma, np.float32)
        beta = np.asarray(beta, np.float32)
        rmean = np.asarray(rmean, np.float32)
        rvar = np.asarray(rvar, np.float32)
        KH, KW, Ci, Co = w_hwio.shape
        assert KH % 2 == 1 and KW % 2 == 1  # TODO(synk): even kernel sizes unsupported
        ph, pw = KH // 2, KW // 2
        wout = win                           # 'same' conv keeps W
        assert wout % 2 == 0                 # TODO(synk): odd widths (floor-mode pool tail) unsupported
        # TODO(synk): BatchNorm folded with inference-mode running stats (no batch stats).
        inv = gamma / np.sqrt(rvar + BN_EPS)
        w_f = w_hwio * inv[None, None, None, :]          # BN scale folded into weights
        bias_f = (b - rmean) * inv + beta                 # conv bias + BN shift folded
        big = np.zeros((KH, win, G, wout, Co), np.float32)
        for wo in range(wout):
            for kw in range(KW):
                wq = wo + kw - pw            # input column hit by this tap
                if 0 <= wq < win:            # taps landing on zero padding are dropped
                    big[:, wq, :Ci, wo, :] = w_f[:, kw, :, :]
        big = big.reshape(KH, win * G, wout * Co)[:, :vin, :]   # drop trailing all-zero rows
        ops.append(jnp.asarray(big, jnp.bfloat16))
        ops.append(jnp.asarray(np.tile(bias_f, wout)[None, :], jnp.float32))
        layers.append(dict(Co=Co, KH=KH, ph=ph, Hpad=H + 2 * ph,
                           Vin=vin, Nout=wout * Co))
        # geometry of the next layer's (un-compacted) pooled input
        win = wout // 2
        G = 2 * Co
        vin = wout * Co - Co                 # = win*G - Co (dead trailing block dropped)
    for a, nxt in zip(layers[:-1], layers[1:]):
        assert nxt["Vin"] == a["Nout"] - a["Co"]

    Clast, Wp, Lm = layers[-1]["Co"], win, vin
    F = Clast * H * Wp
    fc1_w = np.asarray(params["fc1_w"], np.float32)
    fc1_b = np.asarray(params["fc1_b"], np.float32)
    fc2_w = np.asarray(params["fc2_w"], np.float32)
    fc2_b = np.asarray(params["fc2_b"], np.float32)
    assert fc1_w.shape[0] == F
    out_dim = fc2_w.shape[1]
    # TODO(synk): Dropout between fc1 and fc2 is identity at inference, so fc2 is
    # folded into fc1; training-mode dropout is not implemented.
    w12 = fc1_w @ fc2_w                      # (F, out_dim)
    b12 = fc1_b @ fc2_w + fc2_b              # (out_dim,)
    wbig = np.zeros((H, Lm, out_dim), np.float32)
    for c in range(Clast):
        for h in range(H):
            for j in range(Wp):
                f = (c * H + h) * Wp + j     # PyTorch (C, H, W) flatten order
                l = (2 * j) * Clast + c      # lane in the un-compacted pooled layout
                wbig[h, l, :] = w12[f, :]
    ops.append(jnp.asarray(wbig, jnp.bfloat16))
    ops.append(jnp.asarray(b12[None, :], jnp.float32))
    meta = dict(H=H, W=W, C0=C0, layers=layers, Lm=Lm, out_dim=out_dim, F=F)
    return meta, ops


# ----------------------------------------------------------------------------
# The single fused kernel (one grid step == B samples).
# ----------------------------------------------------------------------------
def build_kernel(meta, B):
    layers = meta["layers"]
    L = len(layers)
    H = meta["H"]
    out_dim = meta["out_dim"]

    def kernel(*refs):
        x_ref = refs[0]
        conv_refs = refs[1:1 + 2 * L]
        wh_ref = refs[1 + 2 * L]
        bh_ref = refs[2 + 2 * L]
        o_ref = refs[3 + 2 * L]
        scr = refs[4 + 2 * L:]
        pads = scr[:L]
        head = scr[L]

        # Zero only the ph top/bottom halo rows, every step (tiny stores; safe when
        # the grid is split across TensorCores).  Interiors are fully overwritten.
        for li, lay in enumerate(layers):
            ph, vin = lay["ph"], lay["Vin"]
            z = jnp.zeros((B, ph, vin), pads[li].dtype)
            pads[li][:, 0:ph, :] = z
            pads[li][:, ph + H:ph + H + ph, :] = z

        # layer-0 interior <- NHWC-lane-fused bf16 input block (no lane halo: the
        # boundary taps were dropped from the Toeplitz weights instead).
        pads[0][:, layers[0]["ph"]:layers[0]["ph"] + H, :] = x_ref[...]

        m = None
        for li, lay in enumerate(layers):
            KH, vin, nout, Co = lay["KH"], lay["Vin"], lay["Nout"], lay["Co"]
            w_ref = conv_refs[2 * li]
            b_ref = conv_refs[2 * li + 1]

            # Conv + folded BN: KH accumulated bf16 MXU matmuls (f32 accumulate)
            # taken directly on row slices of the padded activation scratch.
            # (H is a multiple of the sublane tile, so the (B,H,·)->(B*H,·) merge
            # is a layout no-op.)
            acc = None
            for kh in range(KH):
                lhs = pads[li][:, kh:kh + H, :].reshape(B * H, vin)
                part = jnp.dot(lhs, w_ref[kh], preferred_element_type=jnp.float32)
                acc = part if acc is None else acc + part
            y = jnp.maximum(acc + b_ref[...], 0.0)            # bias + ReLU (f32)

            # MaxPool2d((1,2),(1,2)) along W: one vectorized max of two lane-shifted
            # views; kept un-compacted (dead lanes match zero weight rows downstream).
            m = jnp.maximum(y[:, :-Co], y[:, Co:]).astype(jnp.bfloat16)
            if li + 1 < L:
                nph = layers[li + 1]["ph"]
                pads[li + 1][:, nph:nph + H, :] = m.reshape(B, H, nout - Co)
            else:
                head[...] = m.reshape(B, H, nout - Co)

        # Classifier head: fc2 folded into fc1 (Dropout == identity at inference),
        # flatten order folded into the weights -> short sum of tiny matmuls over
        # the already-resident pooled activations.
        oacc = None
        for h in range(H):
            part = jnp.dot(head[:, h, :], wh_ref[h],
                           preferred_element_type=jnp.float32)
            oacc = part if oacc is None else oacc + part
        o_ref[...] = (oacc + bh_ref[...]).reshape(1, B, out_dim)

    return kernel


def _const_index_map(nd, i):
    return (0,) * nd


def pick_block_batch(n, max_b=8):
    """Largest divisor of n that is <= max_b (samples per grid step)."""
    best = 1
    for d in range(1, min(n, max_b) + 1):
        if n % d == 0:
            best = d
    return best


def build_forward(meta, ops, N, B):
    layers = meta["layers"]
    H, W, C0 = meta["H"], meta["W"], meta["C0"]
    out_dim = meta["out_dim"]
    assert N % B == 0
    kernel = build_kernel(meta, B)

    in_specs = [pl.BlockSpec((B, H, W * C0), lambda i: (i, 0, 0))]
    for op in ops:
        in_specs.append(pl.BlockSpec(op.shape, functools.partial(_const_index_map, op.ndim)))

    scratch = [pltpu.VMEM((B, lay["Hpad"], lay["Vin"]), jnp.bfloat16) for lay in layers]
    scratch.append(pltpu.VMEM((B, H, meta["Lm"]), jnp.bfloat16))

    call = pl.pallas_call(
        kernel,
        out_shape=jax.ShapeDtypeStruct((N // B, B, out_dim), jnp.float32),
        grid_spec=pltpu.PrefetchScalarGridSpec(
            num_scalar_prefetch=0,
            grid=(N // B,),
            in_specs=in_specs,
            out_specs=pl.BlockSpec((1, B, out_dim), lambda i: (i, 0, 0)),
            scratch_shapes=scratch,
        ),
        compiler_params=pltpu.CompilerParams(
            dimension_semantics=("parallel",)),   # shard grid steps across TCs (v7x)
    )

    @jax.jit
    def forward(x, *weight_ops):
        # one cheap XLA-side relayout: NCHW -> lane-fused (N, H, W*C0) bf16
        xk = jnp.transpose(x, (0, 2, 3, 1)).reshape(N, H, W * C0).astype(jnp.bfloat16)
        return call(xk, *weight_ops).reshape(N, out_dim)

    return forward


# ----------------------------------------------------------------------------
# Plain-JAX f32 reference of the PyTorch forward (inference mode).
# ----------------------------------------------------------------------------
def reference_forward(params, x):
    out = x.astype(jnp.float32)
    for (w_hwio, b, gamma, beta, rmean, rvar) in params["conv"]:
        kh, kw = int(w_hwio.shape[0]), int(w_hwio.shape[1])
        out = jax.lax.conv_general_dilated(
            out, w_hwio, window_strides=(1, 1),
            padding=((kh // 2, kh // 2), (kw // 2, kw // 2)),
            dimension_numbers=("NCHW", "HWIO", "NCHW"))
        out = out + b[None, :, None, None]
        inv = gamma / jnp.sqrt(rvar + BN_EPS)
        out = (out - rmean[None, :, None, None]) * inv[None, :, None, None] \
            + beta[None, :, None, None]
        out = jnp.maximum(out, 0.0)
        n_, c_, h_, w_ = out.shape
        out = out[..., : (w_ // 2) * 2].reshape(n_, c_, h_, w_ // 2, 2).max(axis=-1)
    flat = out.reshape(out.shape[0], -1)
    h1 = flat @ params["fc1_w"] + params["fc1_b"]
    return h1 @ params["fc2_w"] + params["fc2_b"]   # Dropout == identity at inference


if __name__ == "__main__":
    key = jax.random.PRNGKey(0)
    # input_size = (4, 16, 16), conv_channels = [4, 8, 16], kernel_size = [(3,3),(3,3)]
    N, C0, H, W = 16, 4, 16, 16
    conv_channels = [4, 8, 16]
    kernel_size = [(3, 3), (3, 3)]
    dense_size = 32
    dropout = 0.5  # inactive at inference

    key, kp, kx = jax.random.split(key, 3)
    params, flat_fts = init_params(kp, conv_channels, kernel_size, (C0, H, W), dense_size)
    x = jax.random.normal(kx, (N, C0, H, W), jnp.float32)

    meta, ops = prepare_operands(params, (C0, H, W))
    assert meta["F"] == flat_fts, (meta["F"], flat_fts)

    B = pick_block_batch(N, max_b=8)         # 8 samples/step -> M = B*H = 128 MXU rows
    forward = build_forward(meta, ops, N, B)

    out = forward(x, *ops)
    out = jax.block_until_ready(out)
    assert out.shape == (N, 2), out.shape

    # correctness check against the plain-JAX reference (bf16 kernel vs f32 ref)
    ref = reference_forward(params, x)
    err = float(jnp.max(jnp.abs(out - ref)))
    assert err < 5e-2, f"kernel deviates from reference: max abs err = {err}"

    print("KERNEL_OK")
</pallas_src>

<mosaic_0001>
module attributes {stable_mosaic.version = 11 : i64} {
  func.func @kernel(%arg0: i32, %arg1: memref<8x16x64xbf16, #tpu.memory_space<vmem>>, %arg2: memref<3x64x128xbf16, #tpu.memory_space<vmem>>, %arg3: memref<1x128xf32, #tpu.memory_space<vmem>>, %arg4: memref<3x120x128xbf16, #tpu.memory_space<vmem>>, %arg5: memref<1x128xf32, #tpu.memory_space<vmem>>, %arg6: memref<16x112x2xbf16, #tpu.memory_space<vmem>>, %arg7: memref<1x2xf32, #tpu.memory_space<vmem>>, %arg8: memref<1x8x2xf32, #tpu.memory_space<vmem>>, %arg9: memref<8x18x64xbf16, #tpu.memory_space<vmem>>, %arg10: memref<8x18x120xbf16, #tpu.memory_space<vmem>>, %arg11: memref<8x16x112xbf16, #tpu.memory_space<vmem>>) attributes {dimension_semantics = [#tpu.dimension_semantics<parallel>], iteration_bounds = array<i64: 2>, scalar_prefetch = 0 : i64, scratch_operands = 3 : i64, tpu.core_type = #tpu.core_type<tc>, window_params = [{transform_indices = @transform_0, window_bounds = array<i64: 8, 16, 64>}, {pipeline_mode = #tpu.pipeline_mode<synchronous>, transform_indices = @transform_1, window_bounds = array<i64: 3, 64, 128>}, {pipeline_mode = #tpu.pipeline_mode<synchronous>, transform_indices = @transform_2, window_bounds = array<i64: 1, 128>}, {pipeline_mode = #tpu.pipeline_mode<synchronous>, transform_indices = @transform_3, window_bounds = array<i64: 3, 120, 128>}, {pipeline_mode = #tpu.pipeline_mode<synchronous>, transform_indices = @transform_4, window_bounds = array<i64: 1, 128>}, {pipeline_mode = #tpu.pipeline_mode<synchronous>, transform_indices = @transform_5, window_bounds = array<i64: 16, 112, 2>}, {pipeline_mode = #tpu.pipeline_mode<synchronous>, transform_indices = @transform_6, window_bounds = array<i64: 1, 2>}, {transform_indices = @transform_7, window_bounds = array<i64: 1, 8, 2>}]} {
    %cst = arith.constant 0.000000e+00 : bf16
    %0 = vector.broadcast %cst : bf16 to vector<8x1x64xbf16>
    %c0 = arith.constant 0 : index
    %c0_0 = arith.constant 0 : index
    %c0_1 = arith.constant 0 : index
    %1 = vector.load %arg9[%c0, %c0_0, %c0_1] : memref<8x18x64xbf16, #tpu.memory_space<vmem>>, vector<8x1x64xbf16>
    tpu.vector_store %arg9[%c0, %c0_0, %c0_1], %0 {strides = array<i32>} : memref<8x18x64xbf16, #tpu.memory_space<vmem>>, vector<8x1x64xbf16>,
    %c0_2 = arith.constant 0 : index
    %c17 = arith.constant 17 : index
    %c0_3 = arith.constant 0 : index
    %2 = vector.load %arg9[%c0_2, %c17, %c0_3] : memref<8x18x64xbf16, #tpu.memory_space<vmem>>, vector<8x1x64xbf16>
    tpu.vector_store %arg9[%c0_2, %c17, %c0_3], %0 {strides = array<i32>} : memref<8x18x64xbf16, #tpu.memory_space<vmem>>, vector<8x1x64xbf16>,
    %cst_4 = arith.constant 0.000000e+00 : bf16
    %3 = vector.broadcast %cst_4 : bf16 to vector<8x1x120xbf16>
    %c0_5 = arith.constant 0 : index
    %c0_6 = arith.constant 0 : index
    %c0_7 = arith.constant 0 : index
    %4 = vector.load %arg10[%c0_5, %c0_6, %c0_7] : memref<8x18x120xbf16, #tpu.memory_space<vmem>>, vector<8x1x120xbf16>
    tpu.vector_store %arg10[%c0_5, %c0_6, %c0_7], %3 {strides = array<i32>} : memref<8x18x120xbf16, #tpu.memory_space<vmem>>, vector<8x1x120xbf16>,
    %c0_8 = arith.constant 0 : index
    %c17_9 = arith.constant 17 : index
    %c0_10 = arith.constant 0 : index
    %5 = vector.load %arg10[%c0_8, %c17_9, %c0_10] : memref<8x18x120xbf16, #tpu.memory_space<vmem>>, vector<8x1x120xbf16>
    tpu.vector_store %arg10[%c0_8, %c17_9, %c0_10], %3 {strides = array<i32>} : memref<8x18x120xbf16, #tpu.memory_space<vmem>>, vector<8x1x120xbf16>,
    %c0_11 = arith.constant 0 : index
    %c0_12 = arith.constant 0 : index
    %c0_13 = arith.constant 0 : index
    %6 = vector.load %arg1[%c0_11, %c0_12, %c0_13] : memref<8x16x64xbf16, #tpu.memory_space<vmem>>, vector<8x16x64xbf16>
    %c0_14 = arith.constant 0 : index
    %c1 = arith.constant 1 : index
    %c0_15 = arith.constant 0 : index
    %7 = vector.load %arg9[%c0_14, %c1, %c0_15] : memref<8x18x64xbf16, #tpu.memory_space<vmem>>, vector<8x16x64xbf16>
    tpu.vector_store %arg9[%c0_14, %c1, %c0_15], %6 {strides = array<i32>} : memref<8x18x64xbf16, #tpu.memory_space<vmem>>, vector<8x16x64xbf16>,
    %c0_16 = arith.constant 0 : index
    %c0_17 = arith.constant 0 : index
    %c0_18 = arith.constant 0 : index
    %8 = vector.load %arg9[%c0_16, %c0_17, %c0_18] : memref<8x18x64xbf16, #tpu.memory_space<vmem>>, vector<8x16x64xbf16>
    %9 = vector.shape_cast %8 : vector<8x16x64xbf16> to vector<128x64xbf16>
    %c0_19 = arith.constant 0 : index
    %c0_20 = arith.constant 0 : index
    %c0_21 = arith.constant 0 : index
    %10 = vector.load %arg2[%c0_19, %c0_20, %c0_21] : memref<3x64x128xbf16, #tpu.memory_space<vmem>>, vector<1x64x128xbf16>
    %11 = vector.shape_cast %10 : vector<1x64x128xbf16> to vector<64x128xbf16>
    %cst_22 = arith.constant dense<0.000000e+00> : vector<128x128xf32>
    %12 = tpu.matmul %9, %11, %cst_22 {dimension_numbers = #tpu.dot_dimension_numbers<[1], [0], [0], [1], [0, 0, 1, 1], [], []>} : vector<128x64xbf16>, vector<64x128xbf16>, vector<128x128xf32> -> vector<128x128xf32>
    %c0_23 = arith.constant 0 : index
    %c1_24 = arith.constant 1 : index
    %c0_25 = arith.constant 0 : index
    %13 = vector.load %arg9[%c0_23, %c1_24, %c0_25] : memref<8x18x64xbf16, #tpu.memory_space<vmem>>, vector<8x16x64xbf16>
    %14 = vector.shape_cast %13 : vector<8x16x64xbf16> to vector<128x64xbf16>
    %c1_26 = arith.constant 1 : index
    %c0_27 = arith.constant 0 : index
    %c0_28 = arith.constant 0 : index
    %15 = vector.load %arg2[%c1_26, %c0_27, %c0_28] : memref<3x64x128xbf16, #tpu.memory_space<vmem>>, vector<1x64x128xbf16>
    %16 = vector.shape_cast %15 : vector<1x64x128xbf16> to vector<64x128xbf16>
    %cst_29 = arith.constant dense<0.000000e+00> : vector<128x128xf32>
    %17 = tpu.matmul %14, %16, %cst_29 {dimension_numbers = #tpu.dot_dimension_numbers<[1], [0], [0], [1], [0, 0, 1, 1], [], []>} : vector<128x64xbf16>, vector<64x128xbf16>, vector<128x128xf32> -> vector<128x128xf32>
    %18 = arith.addf %12, %17 : vector<128x128xf32>
    %c0_30 = arith.constant 0 : index
    %c2 = arith.constant 2 : index
    %c0_31 = arith.constant 0 : index
    %19 = vector.load %arg9[%c0_30, %c2, %c0_31] : memref<8x18x64xbf16, #tpu.memory_space<vmem>>, vector<8x16x64xbf16>
    %20 = vector.shape_cast %19 : vector<8x16x64xbf16> to vector<128x64xbf16>
    %c2_32 = arith.constant 2 : index
    %c0_33 = arith.constant 0 : index
    %c0_34 = arith.constant 0 : index
    %21 = vector.load %arg2[%c2_32, %c0_33, %c0_34] : memref<3x64x128xbf16, #tpu.memory_space<vmem>>, vector<1x64x128xbf16>
    %22 = vector.shape_cast %21 : vector<1x64x128xbf16> to vector<64x128xbf16>
    %cst_35 = arith.constant dense<0.000000e+00> : vector<128x128xf32>
    %23 = tpu.matmul %20, %22, %cst_35 {dimension_numbers = #tpu.dot_dimension_numbers<[1], [0], [0], [1], [0, 0, 1, 1], [], []>} : vector<128x64xbf16>, vector<64x128xbf16>, vector<128x128xf32> -> vector<128x128xf32>
    %24 = arith.addf %18, %23 : vector<128x128xf32>
    %c0_36 = arith.constant 0 : index
    %c0_37 = arith.constant 0 : index
    %25 = vector.load %arg3[%c0_36, %c0_37] : memref<1x128xf32, #tpu.memory_space<vmem>>, vector<1x128xf32>
    %26 = vector.broadcast %25 : vector<1x128xf32> to vector<128x128xf32>
    %27 = arith.addf %24, %26 : vector<128x128xf32>
    %cst_38 = arith.constant 0.000000e+00 : f32
    %28 = vector.broadcast %cst_38 : f32 to vector<128x128xf32>
    %29 = arith.maximumf %27, %28 : vector<128x128xf32>
    %30 = vector.extract_strided_slice %29 {offsets = [0, 0], sizes = [128, 120], strides = [1, 1]} : vector<128x128xf32> to vector<128x120xf32>
    %31 = vector.extract_strided_slice %29 {offsets = [0, 8], sizes = [128, 120], strides = [1, 1]} : vector<128x128xf32> to vector<128x120xf32>
    %32 = arith.maximumf %30, %31 : vector<128x120xf32>
    %33 = arith.truncf %32 : vector<128x120xf32> to vector<128x120xbf16>
    %34 = vector.shape_cast %33 : vector<128x120xbf16> to vector<8x16x120xbf16>
    %c0_39 = arith.constant 0 : index
    %c1_40 = arith.constant 1 : index
    %c0_41 = arith.constant 0 : index
    %35 = vector.load %arg10[%c0_39, %c1_40, %c0_41] : memref<8x18x120xbf16, #tpu.memory_space<vmem>>, vector<8x16x120xbf16>
    tpu.vector_store %arg10[%c0_39, %c1_40, %c0_41], %34 {strides = array<i32>} : memref<8x18x120xbf16, #tpu.memory_space<vmem>>, vector<8x16x120xbf16>,
    %c0_42 = arith.constant 0 : index
    %c0_43 = arith.constant 0 : index
    %c0_44 = arith.constant 0 : index
    %36 = vector.load %arg10[%c0_42, %c0_43, %c0_44] : memref<8x18x120xbf16, #tpu.memory_space<vmem>>, vector<8x16x120xbf16>
    %37 = vector.shape_cast %36 : vector<8x16x120xbf16> to vector<128x120xbf16>
    %c0_45 = arith.constant 0 : index
    %c0_46 = arith.constant 0 : index
    %c0_47 = arith.constant 0 : index
    %38 = vector.load %arg4[%c0_45, %c0_46, %c0_47] : memref<3x120x128xbf16, #tpu.memory_space<vmem>>, vector<1x120x128xbf16>
    %39 = vector.shape_cast %38 : vector<1x120x128xbf16> to vector<120x128xbf16>
    %cst_48 = arith.constant dense<0.000000e+00> : vector<128x128xf32>
    %40 = tpu.matmul %37, %39, %cst_48 {dimension_numbers = #tpu.dot_dimension_numbers<[1], [0], [0], [1], [0, 0, 1, 1], [], []>} : vector<128x120xbf16>, vector<120x128xbf16>, vector<128x128xf32> -> vector<128x128xf32>
    %c0_49 = arith.constant 0 : index
    %c1_50 = arith.constant 1 : index
    %c0_51 = arith.constant 0 : index
    %41 = vector.load %arg10[%c0_49, %c1_50, %c0_51] : memref<8x18x120xbf16, #tpu.memory_space<vmem>>, vector<8x16x120xbf16>
    %42 = vector.shape_cast %41 : vector<8x16x120xbf16> to vector<128x120xbf16>
    %c1_52 = arith.constant 1 : index
    %c0_53 = arith.constant 0 : index
    %c0_54 = arith.constant 0 : index
    %43 = vector.load %arg4[%c1_52, %c0_53, %c0_54] : memref<3x120x128xbf16, #tpu.memory_space<vmem>>, vector<1x120x128xbf16>
    %44 = vector.shape_cast %43 : vector<1x120x128xbf16> to vector<120x128xbf16>
    %cst_55 = arith.constant dense<0.000000e+00> : vector<128x128xf32>
    %45 = tpu.matmul %42, %44, %cst_55 {dimension_numbers = #tpu.dot_dimension_numbers<[1], [0], [0], [1], [0, 0, 1, 1], [], []>} : vector<128x120xbf16>, vector<120x128xbf16>, vector<128x128xf32> -> vector<128x128xf32>
    %46 = arith.addf %40, %45 : vector<128x128xf32>
    %c0_56 = arith.constant 0 : index
    %c2_57 = arith.constant 2 : index
    %c0_58 = arith.constant 0 : index
    %47 = vector.load %arg10[%c0_56, %c2_57, %c0_58] : memref<8x18x120xbf16, #tpu.memory_space<vmem>>, vector<8x16x120xbf16>
    %48 = vector.shape_cast %47 : vector<8x16x120xbf16> to vector<128x120xbf16>
    %c2_59 = arith.constant 2 : index
    %c0_60 = arith.constant 0 : index
    %c0_61 = arith.constant 0 : index
    %49 = vector.load %arg4[%c2_59, %c0_60, %c0_61] : memref<3x120x128xbf16, #tpu.memory_space<vmem>>, vector<1x120x128xbf16>
    %50 = vector.shape_cast %49 : vector<1x120x128xbf16> to vector<120x128xbf16>
    %cst_62 = arith.constant dense<0.000000e+00> : vector<128x128xf32>
    %51 = tpu.matmul %48, %50, %cst_62 {dimension_numbers = #tpu.dot_dimension_numbers<[1], [0], [0], [1], [0, 0, 1, 1], [], []>} : vector<128x120xbf16>, vector<120x128xbf16>, vector<128x128xf32> -> vector<128x128xf32>
    %52 = arith.addf %46, %51 : vector<128x128xf32>
    %c0_63 = arith.constant 0 : index
    %c0_64 = arith.constant 0 : index
    %53 = vector.load %arg5[%c0_63, %c0_64] : memref<1x128xf32, #tpu.memory_space<vmem>>, vector<1x128xf32>
    %54 = vector.broadcast %53 : vector<1x128xf32> to vector<128x128xf32>
    %55 = arith.addf %52, %54 : vector<128x128xf32>
    %cst_65 = arith.constant 0.000000e+00 : f32
    %56 = vector.broadcast %cst_65 : f32 to vector<128x128xf32>
    %57 = arith.maximumf %55, %56 : vector<128x128xf32>
    %58 = vector.extract_strided_slice %57 {offsets = [0, 0], sizes = [128, 112], strides = [1, 1]} : vector<128x128xf32> to vector<128x112xf32>
    %59 = vector.extract_strided_slice %57 {offsets = [0, 16], sizes = [128, 112], strides = [1, 1]} : vector<128x128xf32> to vector<128x112xf32>
    %60 = arith.maximumf %58, %59 : vector<128x112xf32>
    %61 = arith.truncf %60 : vector<128x112xf32> to vector<128x112xbf16>
    %62 = vector.shape_cast %61 : vector<128x112xbf16> to vector<8x16x112xbf16>
    %c0_66 = arith.constant 0 : index
    %c0_67 = arith.constant 0 : index
    %c0_68 = arith.constant 0 : index
    %63 = vector.load %arg11[%c0_66, %c0_67, %c0_68] : memref<8x16x112xbf16, #tpu.memory_space<vmem>>, vector<8x16x112xbf16>
    tpu.vector_store %arg11[%c0_66, %c0_67, %c0_68], %62 {strides = array<i32>} : memref<8x16x112xbf16, #tpu.memory_space<vmem>>, vector<8x16x112xbf16>,
    %c0_69 = arith.constant 0 : index
    %c0_70 = arith.constant 0 : index
    %c0_71 = arith.constant 0 : index
    %64 = vector.load %arg11[%c0_69, %c0_70, %c0_71] : memref<8x16x112xbf16, #tpu.memory_space<vmem>>, vector<8x1x112xbf16>
    %65 = vector.shape_cast %64 : vector<8x1x112xbf16> to vector<8x112xbf16>
    %c0_72 = arith.constant 0 : index
    %c0_73 = arith.constant 0 : index
    %c0_74 = arith.constant 0 : index
    %66 = vector.load %arg6[%c0_72, %c0_73, %c0_74] : memref<16x112x2xbf16, #tpu.memory_space<vmem>>, vector<1x112x2xbf16>
    %67 = vector.shape_cast %66 : vector<1x112x2xbf16> to vector<112x2xbf16>
    %cst_75 = arith.constant dense<0.000000e+00> : vector<8x2xf32>
    %68 = tpu.matmul %65, %67, %cst_75 {dimension_numbers = #tpu.dot_dimension_numbers<[1], [0], [0], [1], [0, 0, 1, 1], [], []>} : vector<8x112xbf16>, vector<112x2xbf16>, vector<8x2xf32> -> vector<8x2xf32>
    %c0_76 = arith.constant 0 : index
    %c1_77 = arith.constant 1 : index
    %c0_78 = arith.constant 0 : index
    %69 = vector.load %arg11[%c0_76, %c1_77, %c0_78] : memref<8x16x112xbf16, #tpu.memory_space<vmem>>, vector<8x1x112xbf16>
    %70 = vector.shape_cast %69 : vector<8x1x112xbf16> to vector<8x112xbf16>
    %c1_79 = arith.constant 1 : index
    %c0_80 = arith.constant 0 : index
    %c0_81 = arith.constant 0 : index
    %71 = vector.load %arg6[%c1_79, %c0_80, %c0_81] : memref<16x112x2xbf16, #tpu.memory_space<vmem>>, vector<1x112x2xbf16>
    %72 = vector.shape_cast %71 : vector<1x112x2xbf16> to vector<112x2xbf16>
    %cst_82 = arith.constant dense<0.000000e+00> : vector<8x2xf32>
    %73 = tpu.matmul %70, %72, %cst_82 {dimension_numbers = #tpu.dot_dimension_numbers<[1], [0], [0], [1], [0, 0, 1, 1], [], []>} : vector<8x112xbf16>, vector<112x2xbf16>, vector<8x2xf32> -> vector<8x2xf32>
    %74 = arith.addf %68, %73 : vector<8x2xf32>
    %c0_83 = arith.constant 0 : index
    %c2_84 = arith.constant 2 : index
    %c0_85 = arith.constant 0 : index
    %75 = vector.load %arg11[%c0_83, %c2_84, %c0_85] : memref<8x16x112xbf16, #tpu.memory_space<vmem>>, vector<8x1x112xbf16>
    %76 = vector.shape_cast %75 : vector<8x1x112xbf16> to vector<8x112xbf16>
    %c2_86 = arith.constant 2 : index
    %c0_87 = arith.constant 0 : index
    %c0_88 = arith.constant 0 : index
    %77 = vector.load %arg6[%c2_86, %c0_87, %c0_88] : memref<16x112x2xbf16, #tpu.memory_space<vmem>>, vector<1x112x2xbf16>
    %78 = vector.shape_cast %77 : vector<1x112x2xbf16> to vector<112x2xbf16>
    %cst_89 = arith.constant dense<0.000000e+00> : vector<8x2xf32>
    %79 = tpu.matmul %76, %78, %cst_89 {dimension_numbers = #tpu.dot_dimension_numbers<[1], [0], [0], [1], [0, 0, 1, 1], [], []>} : vector<8x112xbf16>, vector<112x2xbf16>, vector<8x2xf32> -> vector<8x2xf32>
    %80 = arith.addf %74, %79 : vector<8x2xf32>
    %c0_90 = arith.constant 0 : index
    %c3 = arith.constant 3 : index
    %c0_91 = arith.constant 0 : index
    %81 = vector.load %arg11[%c0_90, %c3, %c0_91] : memref<8x16x112xbf16, #tpu.memory_space<vmem>>, vector<8x1x112xbf16>
    %82 = vector.shape_cast %81 : vector<8x1x112xbf16> to vector<8x112xbf16>
    %c3_92 = arith.constant 3 : index
    %c0_93 = arith.constant 0 : index
    %c0_94 = arith.constant 0 : index
    %83 = vector.load %arg6[%c3_92, %c0_93, %c0_94] : memref<16x112x2xbf16, #tpu.memory_space<vmem>>, vector<1x112x2xbf16>
    %84 = vector.shape_cast %83 : vector<1x112x2xbf16> to vector<112x2xbf16>
    %cst_95 = arith.constant dense<0.000000e+00> : vector<8x2xf32>
    %85 = tpu.matmul %82, %84, %cst_95 {dimension_numbers = #tpu.dot_dimension_numbers<[1], [0], [0], [1], [0, 0, 1, 1], [], []>} : vector<8x112xbf16>, vector<112x2xbf16>, vector<8x2xf32> -> vector<8x2xf32>
    %86 = arith.addf %80, %85 : vector<8x2xf32>
    %c0_96 = arith.constant 0 : index
    %c4 = arith.constant 4 : index
    %c0_97 = arith.constant 0 : index
    %87 = vector.load %arg11[%c0_96, %c4, %c0_97] : memref<8x16x112xbf16, #tpu.memory_space<vmem>>, vector<8x1x112xbf16>
    %88 = vector.shape_cast %87 : vector<8x1x112xbf16> to vector<8x112xbf16>
    %c4_98 = arith.constant 4 : index
    %c0_99 = arith.constant 0 : index
    %c0_100 = arith.constant 0 : index
    %89 = vector.load %arg6[%c4_98, %c0_99, %c0_100] : memref<16x112x2xbf16, #tpu.memory_space<vmem>>, vector<1x112x2xbf16>
    %90 = vector.shape_cast %89 : vector<1x112x2xbf16> to vector<112x2xbf16>
    %cst_101 = arith.constant dense<0.000000e+00> : vector<8x2xf32>
    %91 = tpu.matmul %88, %90, %cst_101 {dimension_numbers = #tpu.dot_dimension_numbers<[1], [0], [0], [1], [0, 0, 1, 1], [], []>} : vector<8x112xbf16>, vector<112x2xbf16>, vector<8x2xf32> -> vector<8x2xf32>
    %92 = arith.addf %86, %91 : vector<8x2xf32>
    %c0_102 = arith.constant 0 : index
    %c5 = arith.constant 5 : index
    %c0_103 = arith.constant 0 : index
    %93 = vector.load %arg11[%c0_102, %c5, %c0_103] : memref<8x16x112xbf16, #tpu.memory_space<vmem>>, vector<8x1x112xbf16>
    %94 = vector.shape_cast %93 : vector<8x1x112xbf16> to vector<8x112xbf16>
    %c5_104 = arith.constant 5 : index
    %c0_105 = arith.constant 0 : index
    %c0_106 = arith.constant 0 : index
    %95 = vector.load %arg6[%c5_104, %c0_105, %c0_106] : memref<16x112x2xbf16, #tpu.memory_space<vmem>>, vector<1x112x2xbf16>
    %96 = vector.shape_cast %95 : vector<1x112x2xbf16> to vector<112x2xbf16>
    %cst_107 = arith.constant dense<0.000000e+00> : vector<8x2xf32>
    %97 = tpu.matmul %94, %96, %cst_107 {dimension_numbers = #tpu.dot_dimension_numbers<[1], [0], [0], [1], [0, 0, 1, 1], [], []>} : vector<8x112xbf16>, vector<112x2xbf16>, vector<8x2xf32> -> vector<8x2xf32>
    %98 = arith.addf %92, %97 : vector<8x2xf32>
    %c0_108 = arith.constant 0 : index
    %c6 = arith.constant 6 : index
    %c0_109 = arith.constant 0 : index
    %99 = vector.load %arg11[%c0_108, %c6, %c0_109] : memref<8x16x112xbf16, #tpu.memory_space<vmem>>, vector<8x1x112xbf16>
    %100 = vector.shape_cast %99 : vector<8x1x112xbf16> to vector<8x112xbf16>
    %c6_110 = arith.constant 6 : index
    %c0_111 = arith.constant 0 : index
    %c0_112 = arith.constant 0 : index
    %101 = vector.load %arg6[%c6_110, %c0_111, %c0_112] : memref<16x112x2xbf16, #tpu.memory_space<vmem>>, vector<1x112x2xbf16>
    %102 = vector.shape_cast %101 : vector<1x112x2xbf16> to vector<112x2xbf16>
    %cst_113 = arith.constant dense<0.000000e+00> : vector<8x2xf32>
    %103 = tpu.matmul %100, %102, %cst_113 {dimension_numbers = #tpu.dot_dimension_numbers<[1], [0], [0], [1], [0, 0, 1, 1], [], []>} : vector<8x112xbf16>, vector<112x2xbf16>, vector<8x2xf32> -> vector<8x2xf32>
    %104 = arith.addf %98, %103 : vector<8x2xf32>
    %c0_114 = arith.constant 0 : index
    %c7 = arith.constant 7 : index
    %c0_115 = arith.constant 0 : index
    %105 = vector.load %arg11[%c0_114, %c7, %c0_115] : memref<8x16x112xbf16, #tpu.memory_space<vmem>>, vector<8x1x112xbf16>
    %106 = vector.shape_cast %105 : vector<8x1x112xbf16> to vector<8x112xbf16>
    %c7_116 = arith.constant 7 : index
    %c0_117 = arith.constant 0 : index
    %c0_118 = arith.constant 0 : index
    %107 = vector.load %arg6[%c7_116, %c0_117, %c0_118] : memref<16x112x2xbf16, #tpu.memory_space<vmem>>, vector<1x112x2xbf16>
    %108 = vector.shape_cast %107 : vector<1x112x2xbf16> to vector<112x2xbf16>
    %cst_119 = arith.constant dense<0.000000e+00> : vector<8x2xf32>
    %109 = tpu.matmul %106, %108, %cst_119 {dimension_numbers = #tpu.dot_dimension_numbers<[1], [0], [0], [1], [0, 0, 1, 1], [], []>} : vector<8x112xbf16>, vector<112x2xbf16>, vector<8x2xf32> -> vector<8x2xf32>
    %110 = arith.addf %104, %109 : vector<8x2xf32>
    %c0_120 = arith.constant 0 : index
    %c8 = arith.constant 8 : index
    %c0_121 = arith.constant 0 : index
    %111 = vector.load %arg11[%c0_120, %c8, %c0_121] : memref<8x16x112xbf16, #tpu.memory_space<vmem>>, vector<8x1x112xbf16>
    %112 = vector.shape_cast %111 : vector<8x1x112xbf16> to vector<8x112xbf16>
    %c8_122 = arith.constant 8 : index
    %c0_123 = arith.constant 0 : index
    %c0_124 = arith.constant 0 : index
    %113 = vector.load %arg6[%c8_122, %c0_123, %c0_124] : memref<16x112x2xbf16, #tpu.memory_space<vmem>>, vector<1x112x2xbf16>
    %114 = vector.shape_cast %113 : vector<1x112x2xbf16> to vector<112x2xbf16>
    %cst_125 = arith.constant dense<0.000000e+00> : vector<8x2xf32>
    %115 = tpu.matmul %112, %114, %cst_125 {dimension_numbers = #tpu.dot_dimension_numbers<[1], [0], [0], [1], [0, 0, 1, 1], [], []>} : vector<8x112xbf16>, vector<112x2xbf16>, vector<8x2xf32> -> vector<8x2xf32>
    %116 = arith.addf %110, %115 : vector<8x2xf32>
    %c0_126 = arith.constant 0 : index
    %c9 = arith.constant 9 : index
    %c0_127 = arith.constant 0 : index
    %117 = vector.load %arg11[%c0_126, %c9, %c0_127] : memref<8x16x112xbf16, #tpu.memory_space<vmem>>, vector<8x1x112xbf16>
    %118 = vector.shape_cast %117 : vector<8x1x112xbf16> to vector<8x112xbf16>
    %c9_128 = arith.constant 9 : index
    %c0_129 = arith.constant 0 : index
    %c0_130 = arith.constant 0 : index
    %119 = vector.load %arg6[%c9_128, %c0_129, %c0_130] : memref<16x112x2xbf16, #tpu.memory_space<vmem>>, vector<1x112x2xbf16>
    %120 = vector.shape_cast %119 : vector<1x112x2xbf16> to vector<112x2xbf16>
    %cst_131 = arith.constant dense<0.000000e+00> : vector<8x2xf32>
    %121 = tpu.matmul %118, %120, %cst_131 {dimension_numbers = #tpu.dot_dimension_numbers<[1], [0], [0], [1], [0, 0, 1, 1], [], []>} : vector<8x112xbf16>, vector<112x2xbf16>, vector<8x2xf32> -> vector<8x2xf32>
    %122 = arith.addf %116, %121 : vector<8x2xf32>
    %c0_132 = arith.constant 0 : index
    %c10 = arith.constant 10 : index
    %c0_133 = arith.constant 0 : index
    %123 = vector.load %arg11[%c0_132, %c10, %c0_133] : memref<8x16x112xbf16, #tpu.memory_space<vmem>>, vector<8x1x112xbf16>
    %124 = vector.shape_cast %123 : vector<8x1x112xbf16> to vector<8x112xbf16>
    %c10_134 = arith.constant 10 : index
    %c0_135 = arith.constant 0 : index
    %c0_136 = arith.constant 0 : index
    %125 = vector.load %arg6[%c10_134, %c0_135, %c0_136] : memref<16x112x2xbf16, #tpu.memory_space<vmem>>, vector<1x112x2xbf16>
    %126 = vector.shape_cast %125 : vector<1x112x2xbf16> to vector<112x2xbf16>
    %cst_137 = arith.constant dense<0.000000e+00> : vector<8x2xf32>
    %127 = tpu.matmul %124, %126, %cst_137 {dimension_numbers = #tpu.dot_dimension_numbers<[1], [0], [0], [1], [0, 0, 1, 1], [], []>} : vector<8x112xbf16>, vector<112x2xbf16>, vector<8x2xf32> -> vector<8x2xf32>
    %128 = arith.addf %122, %127 : vector<8x2xf32>
    %c0_138 = arith.constant 0 : index
    %c11 = arith.constant 11 : index
    %c0_139 = arith.constant 0 : index
    %129 = vector.load %arg11[%c0_138, %c11, %c0_139] : memref<8x16x112xbf16, #tpu.memory_space<vmem>>, vector<8x1x112xbf16>
    %130 = vector.shape_cast %129 : vector<8x1x112xbf16> to vector<8x112xbf16>
    %c11_140 = arith.constant 11 : index
    %c0_141 = arith.constant 0 : index
    %c0_142 = arith.constant 0 : index
    %131 = vector.load %arg6[%c11_140, %c0_141, %c0_142] : memref<16x112x2xbf16, #tpu.memory_space<vmem>>, vector<1x112x2xbf16>
    %132 = vector.shape_cast %131 : vector<1x112x2xbf16> to vector<112x2xbf16>
    %cst_143 = arith.constant dense<0.000000e+00> : vector<8x2xf32>
    %133 = tpu.matmul %130, %132, %cst_143 {dimension_numbers = #tpu.dot_dimension_numbers<[1], [0], [0], [1], [0, 0, 1, 1], [], []>} : vector<8x112xbf16>, vector<112x2xbf16>, vector<8x2xf32> -> vector<8x2xf32>
    %134 = arith.addf %128, %133 : vector<8x2xf32>
    %c0_144 = arith.constant 0 : index
    %c12 = arith.constant 12 : index
    %c0_145 = arith.constant 0 : index
    %135 = vector.load %arg11[%c0_144, %c12, %c0_145] : memref<8x16x112xbf16, #tpu.memory_space<vmem>>, vector<8x1x112xbf16>
    %136 = vector.shape_cast %135 : vector<8x1x112xbf16> to vector<8x112xbf16>
    %c12_146 = arith.constant 12 : index
    %c0_147 = arith.constant 0 : index
    %c0_148 = arith.constant 0 : index
    %137 = vector.load %arg6[%c12_146, %c0_147, %c0_148] : memref<16x112x2xbf16, #tpu.memory_space<vmem>>, vector<1x112x2xbf16>
    %138 = vector.shape_cast %137 : vector<1x112x2xbf16> to vector<112x2xbf16>
    %cst_149 = arith.constant dense<0.000000e+00> : vector<8x2xf32>
    %139 = tpu.matmul %136, %138, %cst_149 {dimension_numbers = #tpu.dot_dimension_numbers<[1], [0], [0], [1], [0, 0, 1, 1], [], []>} : vector<8x112xbf16>, vector<112x2xbf16>, vector<8x2xf32> -> vector<8x2xf32>
    %140 = arith.addf %134, %139 : vector<8x2xf32>
    %c0_150 = arith.constant 0 : index
    %c13 = arith.constant 13 : index
    %c0_151 = arith.constant 0 : index
    %141 = vector.load %arg11[%c0_150, %c13, %c0_151] : memref<8x16x112xbf16, #tpu.memory_space<vmem>>, vector<8x1x112xbf16>
    %142 = vector.shape_cast %141 : vector<8x1x112xbf16> to vector<8x112xbf16>
    %c13_152 = arith.constant 13 : index
    %c0_153 = arith.constant 0 : index
    %c0_154 = arith.constant 0 : index
    %143 = vector.load %arg6[%c13_152, %c0_153, %c0_154] : memref<16x112x2xbf16, #tpu.memory_space<vmem>>, vector<1x112x2xbf16>
    %144 = vector.shape_cast %143 : vector<1x112x2xbf16> to vector<112x2xbf16>
    %cst_155 = arith.constant dense<0.000000e+00> : vector<8x2xf32>
    %145 = tpu.matmul %142, %144, %cst_155 {dimension_numbers = #tpu.dot_dimension_numbers<[1], [0], [0], [1], [0, 0, 1, 1], [], []>} : vector<8x112xbf16>, vector<112x2xbf16>, vector<8x2xf32> -> vector<8x2xf32>
    %146 = arith.addf %140, %145 : vector<8x2xf32>
    %c0_156 = arith.constant 0 : index
    %c14 = arith.constant 14 : index
    %c0_157 = arith.constant 0 : index
    %147 = vector.load %arg11[%c0_156, %c14, %c0_157] : memref<8x16x112xbf16, #tpu.memory_space<vmem>>, vector<8x1x112xbf16>
    %148 = vector.shape_cast %147 : vector<8x1x112xbf16> to vector<8x112xbf16>
    %c14_158 = arith.constant 14 : index
    %c0_159 = arith.constant 0 : index
    %c0_160 = arith.constant 0 : index
    %149 = vector.load %arg6[%c14_158, %c0_159, %c0_160] : memref<16x112x2xbf16, #tpu.memory_space<vmem>>, vector<1x112x2xbf16>
    %150 = vector.shape_cast %149 : vector<1x112x2xbf16> to vector<112x2xbf16>
    %cst_161 = arith.constant dense<0.000000e+00> : vector<8x2xf32>
    %151 = tpu.matmul %148, %150, %cst_161 {dimension_numbers = #tpu.dot_dimension_numbers<[1], [0], [0], [1], [0, 0, 1, 1], [], []>} : vector<8x112xbf16>, vector<112x2xbf16>, vector<8x2xf32> -> vector<8x2xf32>
    %152 = arith.addf %146, %151 : vector<8x2xf32>
    %c0_162 = arith.constant 0 : index
    %c15 = arith.constant 15 : index
    %c0_163 = arith.constant 0 : index
    %153 = vector.load %arg11[%c0_162, %c15, %c0_163] : memref<8x16x112xbf16, #tpu.memory_space<vmem>>, vector<8x1x112xbf16>
    %154 = vector.shape_cast %153 : vector<8x1x112xbf16> to vector<8x112xbf16>
    %c15_164 = arith.constant 15 : index
    %c0_165 = arith.constant 0 : index
    %c0_166 = arith.constant 0 : index
    %155 = vector.load %arg6[%c15_164, %c0_165, %c0_166] : memref<16x112x2xbf16, #tpu.memory_space<vmem>>, vector<1x112x2xbf16>
    %156 = vector.shape_cast %155 : vector<1x112x2xbf16> to vector<112x2xbf16>
    %cst_167 = arith.constant dense<0.000000e+00> : vector<8x2xf32>
    %157 = tpu.matmul %154, %156, %cst_167 {dimension_numbers = #tpu.dot_dimension_numbers<[1], [0], [0], [1], [0, 0, 1, 1], [], []>} : vector<8x112xbf16>, vector<112x2xbf16>, vector<8x2xf32> -> vector<8x2xf32>
    %158 = arith.addf %152, %157 : vector<8x2xf32>
    %c0_168 = arith.constant 0 : index
    %c0_169 = arith.constant 0 : index
    %159 = vector.load %arg7[%c0_168, %c0_169] : memref<1x2xf32, #tpu.memory_space<vmem>>, vector<1x2xf32>
    %160 = vector.broadcast %159 : vector<1x2xf32> to vector<8x2xf32>
    %161 = arith.addf %158, %160 : vector<8x2xf32>
    %162 = vector.shape_cast %161 : vector<8x2xf32> to vector<1x8x2xf32>
    %c0_170 = arith.constant 0 : index
    %c0_171 = arith.constant 0 : index
    %c0_172 = arith.constant 0 : index
    %163 = vector.load %arg8[%c0_170, %c0_171, %c0_172] : memref<1x8x2xf32, #tpu.memory_space<vmem>>, vector<1x8x2xf32>
    tpu.vector_store %arg8[%c0_170, %c0_171, %c0_172], %162 {strides = array<i32>} : memref<1x8x2xf32, #tpu.memory_space<vmem>>, vector<1x8x2xf32>,
    return
  }
  func.func @transform_0(%arg0: i32) -> (i32, i32, i32) {
    %c0_i32 = arith.constant 0 : i32
    %c0_i32_0 = arith.constant 0 : i32
    %c0_i32_1 = arith.constant 0 : i32
    return %arg0, %c0_i32, %c0_i32_0 : i32, i32, i32
  }
  func.func @transform_1(%arg0: i32) -> (i32, i32, i32) {
    %c0_i32 = arith.constant 0 : i32
    %c0_i32_0 = arith.constant 0 : i32
    %c0_i32_1 = arith.constant 0 : i32
    %c0_i32_2 = arith.constant 0 : i32
    return %c0_i32, %c0_i32_0, %c0_i32_1 : i32, i32, i32
  }
  func.func @transform_2(%arg0: i32) -> (i32, i32) {
    %c0_i32 = arith.constant 0 : i32
    %c0_i32_0 = arith.constant 0 : i32
    %c0_i32_1 = arith.constant 0 : i32
    return %c0_i32, %c0_i32_0 : i32, i32
  }
  func.func @transform_3(%arg0: i32) -> (i32, i32, i32) {
    %c0_i32 = arith.constant 0 : i32
    %c0_i32_0 = arith.constant 0 : i32
    %c0_i32_1 = arith.constant 0 : i32
    %c0_i32_2 = arith.constant 0 : i32
    return %c0_i32, %c0_i32_0, %c0_i32_1 : i32, i32, i32
  }
  func.func @transform_4(%arg0: i32) -> (i32, i32) {
    %c0_i32 = arith.constant 0 : i32
    %c0_i32_0 = arith.constant 0 : i32
    %c0_i32_1 = arith.constant 0 : i32
    return %c0_i32, %c0_i32_0 : i32, i32
  }
  func.func @transform_5(%arg0: i32) -> (i32, i32, i32) {
    %c0_i32 = arith.constant 0 : i32
    %c0_i32_0 = arith.constant 0 : i32
    %c0_i32_1 = arith.constant 0 : i32
    %c0_i32_2 = arith.constant 0 : i32
    return %c0_i32, %c0_i32_0, %c0_i32_1 : i32, i32, i32
  }
  func.func @transform_6(%arg0: i32) -> (i32, i32) {
    %c0_i32 = arith.constant 0 : i32
    %c0_i32_0 = arith.constant 0 : i32
    %c0_i32_1 = arith.constant 0 : i32
    return %c0_i32, %c0_i32_0 : i32, i32
  }
  func.func @transform_7(%arg0: i32) -> (i32, i32, i32) {
    %c0_i32 = arith.constant 0 : i32
    %c0_i32_0 = arith.constant 0 : i32
    %c0_i32_1 = arith.constant 0 : i32
    return %arg0, %c0_i32, %c0_i32_0 : i32, i32, i32
  }
}

</mosaic_0001>

<bundles_post_ra>
// kernel: forward.1
= control target key start
LH: loop header
LB: loop body
LE: loop exit
PB: predicated region body
PF: predicated region fallthrough
CT: control target
= control target key end

     0   :  { %s6700_s24 = smov 0   ;;  %s8719_s0 = inlined_call_operand.vmem [shape: bf16[16,16,64], index: 0, kind: input, shape index: {}]   ;;  %s8720_s1 = inlined_call_operand.vmem [shape: bf16[3,64,128], index: 1, kind: input, shape index: {}]   ;;  %s8721_s2 = inlined_call_operand.vmem [shape: f32[1,128], index: 2, kind: input, shape index: {}]   ;;  %s8722_s3 = inlined_call_operand.vmem [shape: bf16[3,120,128], index: 3, kind: input, shape index: {}]   ;;  %s8723_s4 = inlined_call_operand.vmem [shape: f32[1,128], index: 4, kind: input, shape index: {}]   ;;  %s8724_s5 = inlined_call_operand.vmem [shape: bf16[16,112,2], index: 5, kind: input, shape index: {}]   ;;  %s8725_s6 = inlined_call_operand.vmem [shape: f32[1,2], index: 6, kind: input, shape index: {}]   ;;  %s8726_s7 = inlined_call_operand.vmem [shape: f32[2,8,2], index: 7, kind: output, shape index: {}]  }
   0x1 LB: > { %s6706_s25 = sadd.s32 4294967295, %s6654_s24   ;;  %p5089_p0 = scmp.ge.s32.totalorder %s6654_s24, 1  ;;  %s6654_s24 = sphi %s6700_s24, %s17_s24  }
   0x2   : > { %p239_p1 = scmp.lt.s32.totalorder %s6654_s24, 3 }
   0x4   : > { %p240_p2 = pnand %p5089_p0, %p239_p1 }
   0x5   : > { %v6491_v0 = vld [vmem:[%s8720_s1 + $0x20] sm:$0xff] (!%p240_p2)   ;;  %s5090_s28 = sshll.u32 (!%p240_p2), %s6706_s25, 3  ;;  %v6492_v1 = vld [vmem:[%s8720_s1 + $0x28] sm:$0xff] (!%p240_p2)   ;;  %vm283_vm0 = vcmask (!%p240_p2), 516096   ;;  %v6493_v2 = vld [vmem:[%s8720_s1 + $0x30] sm:$0xff] (!%p240_p2)   ;;  %vm565_vm6 = vcmask (!%p240_p2), 519168  }
   0x6   : > { %243 = sbr.rel (%p240_p2) target bundleno = 1402 (0x57a), region = 48  ;;  %p272_p3 = scmp.lt.s32.totalorder (!%p240_p2), %s5090_s28, 15  ;;  %5876 = vmatprep.subr.bf16.mxu0 (!%p240_p2), %v6491_v0  ;;  %vm284_vm1 = vsmask.f32 (!%p240_p2), 256  ;;  %v286_v3 = vld [vmem:[#allocation2] sm:$0x1] (!%p240_p2) }
   0x7   : > { %5877 = vmatpush3.bf16.msra.mxu0 (!%p240_p2), %v6491_v0  ;;  %vm310_vm2 = vsmask.f32 (!%p240_p2), 7938  ;;  %vm6721_vm3 = vmand (!%p240_p2), %vm283_vm0, %vm284_vm1  ;;  %v312_v5 = vld [vmem:[#allocation2 + $0x8] sm:$0x1] (!%p240_p2)  ;;  %vm403_vm5 = vsmask.f32 (!%p240_p2), 4368 }
   0x8   : > { %5878 = vmatprep.subr.bf16.mxu0 (!%p240_p2), %v6492_v1  ;;  %v287_v6 = vsel (!%p240_p2), %vm6721_vm3, 0, %v286_v3  ;;  %vm6733_vm4 = vmand (!%p240_p2), %vm283_vm0, %vm310_vm2  ;;  %v6494_v8 = vld [vmem:[%s8720_s1 + $0x38] sm:$0xff] (!%p240_p2)   ;;  %v6747_v18 = vld [vmem:[%s8720_s1] sm:$0xff] (!%p240_p2)   ;;  %vm656_vm9 = vsmask.f32 (!%p240_p2), 3328  ;;  %vm908_vm11 = vcmask (!%p240_p2), 523264  }
   0x9   : > { %288 = vst [vmem:[#allocation2] sm:$0x1] (!%p240_p2), %v287_v6  ;;  %v313_v9 = vsel (!%p240_p2), %vm6733_vm4, 0, %v312_v5  ;;  %v289_v19 = vld [vmem:[#allocation2 + $0xc] sm:$0x1] (!%p240_p2)  ;;  %vm6751_vm7 = vmor (!%p240_p2), %vm284_vm1, %vm403_vm5  ;;  %vm1239_vm13 = vcmask (!%p240_p2), 1042432  }
   0xa   : > { %314 = vst [vmem:[#allocation2 + $0x8] sm:$0x1] (!%p240_p2), %v313_v9  ;;  %v315_v20 = vld [vmem:[#allocation2 + $0x14] sm:$0x1] (!%p240_p2)  ;;  %v290_v22 = vsel (!%p240_p2), %vm6721_vm3, 0, %v289_v19  ;;  %vm6763_vm8 = vmand (!%p240_p2), %vm565_vm6, %vm310_vm2  ;;  %vm1240_vm14 = vcmask (!%p240_p2), 1046532  }
   0xb   : > { %5879 = vmatpush3.bf16.msra.mxu0 (!%p240_p2), %v6492_v1  ;;  %v316_v23 = vsel (!%p240_p2), %vm6733_vm4, 0, %v315_v20  ;;  %291 = vst [vmem:[#allocation2 + $0xc] sm:$0x1] (!%p240_p2), %v290_v22  ;;  %v292_v31 = vld [vmem:[#allocation2 + $0x18] sm:$0x1] (!%p240_p2)  ;;  %vm7011_vm15 = vmor (!%p240_p2), %vm1239_vm13, %vm1240_vm14  ;;  %vm336_vm0 = vcmask (!%p240_p2), 974848  }
   0xc   : > { %5880 = vmatprep.subr.bf16.mxu0 (!%p240_p2), %v6493_v2  ;;  %317 = vst [vmem:[#allocation2 + $0x14] sm:$0x1] (!%p240_p2), %v316_v23  ;;  %v318_v32 = vld [vmem:[#allocation2 + $0x20] sm:$0x1] (!%p240_p2)  ;;  %v293_v40 = vsel (!%p240_p2), %vm6721_vm3, 0, %v292_v31  ;;  %s6656_s17 = smov (!%p240_p2), 120  }
   0xd   : > { %s8746_s28 = smov (!%p272_p3, %s5090_s28), 15  ;;  %v319_v41 = vsel %vm6733_vm4, 0, %v318_v32  ;;  %294 = vst [vmem:[#allocation2 + $0x18] sm:$0x1] %v293_v40  ;;  %vm657_vm10 = vsmask.f32 7440 }
   0xe   : > { %s5647_s10 = sshll.u32 %s8746_s28, 3  ;;  %320 = vst [vmem:[#allocation2 + $0x20] sm:$0x1] %v319_v41  ;;  %v295_v56 = vld [vmem:[#allocation2 + $0x24] sm:$0x1]  ;;  %vm6824_vm12 = vmor %vm656_vm9, %vm657_vm10  ;;  %vm1819_vm5 = vcmask 977920  }
   0xf   : > { %s6728_s13 = scalar_lea.vmem %s8719_s0, %s5647_s10  ;;  %5881 = vmatpush3.bf16.msra.mxu0 %v6493_v2  ;;  %v296_v59 = vsel %vm6721_vm3, 0, %v295_v56  ;;  %v321_v60 = vld [vmem:[#allocation2 + $0x2c] sm:$0x1]  ;;  %s6657_s22 = smov 112   ;;  %vm3024_vm9 = vcmask 1041409   ;;  %vm3027_vm10 = vcmask 1042434  }
  0x10   : > { %v387_v10 = vld [vmem:[%s6728_s13] sm:$0xf]  ;;  %v388_v11 = vld [vmem:[%s6728_s13 + $0x4] sm:$0xf]  ;;  %v389_v24 = vld [vmem:[%s6728_s13 + $0x8] sm:$0xf]  ;;  %5882 = vmatprep.subr.bf16.mxu0 %v6494_v8 }
  0x11   : > { %v406_v12 = vshrl.u32 %v387_v10, 16  ;;  %v409_v13 = vshll.u32 %v387_v10, 16  ;;  %v414_v14 = vshrl.u32 %v388_v11, 16  ;;  %v417_v15 = vshll.u32 %v388_v11, 16  ;;  %v390_v25 = vld [vmem:[%s6728_s13 + $0xc] sm:$0xf] }
  0x12   : > { %v423_v33 = vshrl.u32 %v389_v24, 16  ;;  %v426_v34 = vshll.u32 %v389_v24, 16  ;;  %v431_v35 = vshrl.u32 %v390_v25, 16  ;;  %v434_v36 = vshll.u32 %v390_v25, 16  ;;  %v391_v37 = vld [vmem:[%s6728_s13 + $0x10] sm:$0xf] }
  0x13   : > { %v408_v16 = vrot.slane %v406_v12, 7  ;;  %v416_v17 = vrot.slane %v414_v14, 7  ;;  %v567_v39 = vld [vmem:[#allocation2] sm:$0xf]  ;;  %v392_v42 = vld [vmem:[%s6728_s13 + $0x14] sm:$0xf]  ;;  %5883 = vmatpush3.bf16.msra.mxu0 %v6494_v8 }
  0x14   : > { %v572_v44 = vld [vmem:[#allocation2 + $0x8] sm:$0x1]  ;;  %v425_v45 = vrot.slane %v423_v33, 7  ;;  %v433_v46 = vrot.slane %v431_v35, 7  ;;  %v440_v47 = vshrl.u32 %v391_v37, 16  ;;  %5900 = vmatprep.subr.bf16.mxu0 %v6747_v18  ;;  %v443_v49 = vshll.u32 %v391_v37, 16 }
  0x15   : > { %v411_v26 = vor.u32 %v409_v13, %v408_v16  ;;  %v412_v27 = vrot.slane %v408_v16, 4  ;;  %v419_v28 = vor.u32 %v417_v15, %v416_v17  ;;  %v421_v29 = vrot.slane %v416_v17, 4  ;;  %v575_v62 = vld [vmem:[#allocation2 + $0xc] sm:$0xf]  ;;  %v579_v63 = vld [vmem:[#allocation2 + $0x14] sm:$0x1] }
  0x16   : > { %v448_v50 = vshrl.u32 %v392_v42, 16  ;;  %v451_v51 = vshll.u32 %v392_v42, 16  ;;  %v428_v52 = vor.u32 %v426_v34, %v425_v45  ;;  %v429_v53 = vrot.slane %v425_v45, 4  ;;  %297 = vst [vmem:[#allocation2 + $0x24] sm:$0x1] %v296_v59  ;;  %p278_p4 = scmp.lt.s32.totalorder %s6706_s25, 1 }
  0x17   : > { %v420_v38 = vsel %vm6751_vm7, %v412_v27, %v419_v28  ;;  %v568_v43 = vsel %vm6763_vm8, %v411_v26, %v567_v39  ;;  %v573_v48 = vsel %vm6721_vm3, %v421_v29, %v572_v44  ;;  %v436_v54 = vor.u32 %v434_v36, %v433_v46  ;;  %v393_v6 = vld [vmem:[%s6728_s13 + $0x18] sm:$0xf]  ;;  %v586_v14 = vld [vmem:[#allocation2 + $0x20] sm:$0x1]  ;;  %v6804_v22 = vld [vmem:[%s6728_s13 + $0x1c] sm:$0xf] }
  0x18   : > { %571 = vst.msk [vmem:[#allocation2 + $0x4] sm:$0xf] %vm565_vm6, %v420_v38  ;;  %569 = vst [vmem:[#allocation2] sm:$0xf] %v568_v43  ;;  %v438_v55 = vrot.slane %v433_v46, 4  ;;  %v442_v57 = vrot.slane %v440_v47, 7  ;;  %v576_v1 = vsel %vm6763_vm8, %v428_v52, %v575_v62 }
  0x19   : > { %574 = vst [vmem:[#allocation2 + $0x8] sm:$0x1] %v573_v48  ;;  %v450_v58 = vrot.slane %v448_v50, 7  ;;  %v437_v61 = vsel %vm6751_vm7, %v429_v53, %v436_v54  ;;  %v322_v0 = vsel %vm6733_vm4, 0, %v321_v60  ;;  %577 = vst [vmem:[#allocation2 + $0xc] sm:$0xf] %v576_v1 }
  0x1a   : > { %578 = vst.msk [vmem:[#allocation2 + $0x10] sm:$0xf] %vm565_vm6, %v437_v61  ;;  %v580_v2 = vsel %vm6721_vm3, %v438_v55, %v579_v63  ;;  %v445_v3 = vor.u32 %v443_v49, %v442_v57  ;;  %v446_v5 = vrot.slane %v442_v57, 4  ;;  %323 = vst [vmem:[#allocation2 + $0x2c] sm:$0x1] %v322_v0  ;;  %v457_v10 = vshrl.u32 %v393_v6, 16 }
  0x1b   : > { %581 = vst [vmem:[#allocation2 + $0x14] sm:$0x1] %v580_v2  ;;  %v453_v8 = vor.u32 %v451_v51, %v450_v58  ;;  %v455_v9 = vrot.slane %v450_v58, 4  ;;  %v460_v11 = vshll.u32 %v393_v6, 16  ;;  %v582_v13 = vld [vmem:[#allocation2 + $0x18] sm:$0xf] }
  0x1c   : > { %v583_v20 = vsel %vm6763_vm8, %v445_v3, %v582_v13  ;;  %v6813_v27 = vrot.slane %v457_v10, 7  ;;  %v465_v41 = vshrl.u32 %v6804_v22, 16  ;;  %v468_v56 = vshll.u32 %v6804_v22, 16  ;;  %v298_v62 = vld [vmem:[#allocation2 + $0x30] sm:$0x1]  ;;  %s8748_s25 = smov (!%p278_p4, %s6706_s25), 1 }
  0x1d   : > { %v454_v19 = vsel %vm6751_vm7, %v446_v5, %v453_v8  ;;  %584 = vst [vmem:[#allocation2 + $0x18] sm:$0xf] %v583_v20  ;;  %v587_v26 = vsel %vm6721_vm3, %v455_v9, %v586_v14  ;;  %v589_v36 = vld [vmem:[#allocation2 + $0x24] sm:$0xf]  ;;  %vm3036_vm13 = vcmask 1045509   ;;  %vm3039_vm14 = vcmask 1046534  }
  0x1e   : > { %585 = vst.msk [vmem:[#allocation2 + $0x1c] sm:$0xf] %vm565_vm6, %v454_v19  ;;  %588 = vst [vmem:[#allocation2 + $0x20] sm:$0x1] %v587_v26  ;;  %v462_v35 = vor.u32 %v460_v11, %v6813_v27  ;;  %v463_v40 = vrot.slane %v6813_v27, 4  ;;  %s5093_s16 = sshll.u32 %s8748_s25, 3 }
  0x1f   : > { %v6793_v12 = vld [vmem:[#allocation2 + $0x4] sm:$0xf]  ;;  %v6795_v15 = vld [vmem:[#allocation2] sm:$0xf]  ;;  %s281_s21 = scalar_lea.vmem %s8726_s7, %s5093_s16 }
  0x20   : > { %v669_v16 = vshll.u32 %v6793_v12, 16  ;;  %v673_v17 = vshrl.u32 %v6793_v12, 16  ;;  %v6806_v23 = vld [vmem:[#allocation2 + $0x8] sm:$0x1]  ;;  %v660_v24 = vshrl.u32 %v6795_v15, 16  ;;  %v663_v25 = vshll.u32 %v6795_v15, 16 }
  0x21   : > { %v679_v31 = vshll.u32 %v6806_v23, 16  ;;  %v1247_v34 = vrot.slane %v6806_v23, 5  ;;  %v6818_v39 = vld [vmem:[#allocation2 + $0x10] sm:$0xf]  ;;  %v6828_v44 = vld [vmem:[#allocation2 + $0xc] sm:$0xf]  ;;  %v590_v48 = vsel %vm6763_vm8, %v462_v35, %v589_v36 }
  0x22   : > { %v671_v28 = vrot.slane %v669_v16, 5  ;;  %v675_v29 = vrot.slane %v673_v17, 4  ;;  %v662_v32 = vrot.slane %v660_v24, 4  ;;  %v665_v33 = vrot.slane %v663_v25, 5  ;;  %v6830_v45 = vld [vmem:[#allocation2 + $0x14] sm:$0x1] }
  0x23   : > { %v681_v38 = vrot.slane %v679_v31, 5  ;;  %v693_v46 = vshll.u32 %v6818_v39, 16  ;;  %v697_v47 = vshrl.u32 %v6818_v39, 16  ;;  %v684_v50 = vshrl.u32 %v6828_v44, 16  ;;  %591 = vst [vmem:[#allocation2 + $0x24] sm:$0xf] %v590_v48 }
  0x24   : > { %v676_v37 = vor.u32 %v675_v29, %v671_v28  ;;  %v666_v43 = vor.u32 %v665_v33, %v662_v32  ;;  %v687_v51 = vshll.u32 %v6828_v44, 16  ;;  %v703_v52 = vshll.u32 %v6830_v45, 16  ;;  %v6843_v61 = vld [vmem:[#allocation2 + $0x18] sm:$0xf]  ;;  %v593_v25 = vld [vmem:[#allocation2 + $0x2c] sm:$0x1] }
  0x25   : > { %v695_v54 = vrot.slane %v693_v46, 5  ;;  %v699_v55 = vrot.slane %v697_v47, 4  ;;  %v686_v58 = vrot.slane %v684_v50, 4  ;;  %v1251_v60 = vrot.slane %v6818_v39, 5  ;;  %v6847_v2 = vld [vmem:[#allocation2 + $0x1c] sm:$0xf] }
  0x26   : > { %v677_v49 = vrot.slane %v676_v37, 4  ;;  %v667_v53 = vrot.slane %v666_v43, 4  ;;  %v689_v59 = vrot.slane %v687_v51, 5  ;;  %v705_v1 = vrot.slane %v703_v52, 5  ;;  %v6849_v3 = vld [vmem:[#allocation2 + $0x20] sm:$0x1] }
  0x27   : > { %v700_v0 = vor.u32 %v699_v55, %v695_v54  ;;  %v708_v5 = vshrl.u32 %v6843_v61, 16  ;;  %v711_v9 = vshll.u32 %v6843_v61, 16  ;;  %v717_v10 = vshll.u32 %v6847_v2, 16  ;;  %v324_v17 = vld [vmem:[#allocation2 + $0x38] sm:$0x1]  ;;  %v6496_v36 = vld [vmem:[%s8720_s1 + $0x8] sm:$0xff]  }
  0x28   : > { %v682_v57 = vsel %vm6824_vm12, %v677_v49, %v681_v38  ;;  %v672_v63 = vsel %vm6824_vm12, %v667_v53, %v671_v28  ;;  %v690_v8 = vor.u32 %v689_v59, %v686_v58  ;;  %v721_v14 = vshrl.u32 %v6847_v2, 16  ;;  %v396_v49 = vld [vmem:[%s6728_s13 + $0x24] sm:$0xf]  ;;  %v301_v50 = vld [vmem:[#allocation2 + $0x3c] sm:$0x1] }
  0x29   : > { %v5102_v6 = vcombine.low %v672_v63, %v682_v57  ;;  %v701_v11 = vrot.slane %v700_v0, 4  ;;  %v710_v13 = vrot.slane %v708_v5, 4  ;;  %v727_v16 = vshll.u32 %v6849_v3, 16  ;;  %v327_v55 = vld [vmem:[#allocation2 + $0x44] sm:$0x1] }
  0x2a   : > { %v691_v19 = vrot.slane %v690_v8, 4  ;;  %v713_v20 = vrot.slane %v711_v9, 5  ;;  %v719_v22 = vrot.slane %v717_v10, 5  ;;  %v467_v24 = vrot.slane %v465_v41, 7  ;;  %v6859_v31 = vld [vmem:[#allocation2 + $0x24] sm:$0xf] }
  0x2b   : > { %5884 = vmatprep.mubr.msk.bf16.mxu0 %vm908_vm11, %v5102_v6  ;;  %v706_v26 = vsel %vm6824_vm12, %v701_v11, %v705_v1  ;;  %v723_v28 = vrot.slane %v721_v14, 4  ;;  %v729_v29 = vrot.slane %v727_v16, 5  ;;  %v299_v32 = vsel %vm6721_vm3, 0, %v298_v62  ;;  %v395_v41 = vld [vmem:[%s6728_s13 + $0x20] sm:$0xf]  ;;  %v6497_v1 = vld [vmem:[%s8720_s1 + $0x10] sm:$0xff]  }
  0x2c   : > { %v696_v33 = vsel %vm6824_vm12, %v691_v19, %v695_v54  ;;  %v714_v35 = vor.u32 %v713_v20, %v710_v13  ;;  %v470_v37 = vor.u32 %v468_v56, %v467_v24  ;;  %v472_v38 = vrot.slane %v467_v24, 4  ;;  %300 = vst [vmem:[#allocation2 + $0x30] sm:$0x1] %v299_v32  ;;  %v397_v56 = vld [vmem:[%s6728_s13 + $0x28] sm:$0xf] }
  0x2d   : > { %v5103_v43 = vcombine.low %v696_v33, %v706_v26  ;;  %v724_v46 = vor.u32 %v723_v28, %v719_v22  ;;  %v732_v47 = vshrl.u32 %v6859_v31, 16  ;;  %v735_v48 = vshll.u32 %v6859_v31, 16  ;;  %v398_v9 = vld [vmem:[%s6728_s13 + $0x2c] sm:$0xf]  ;;  %v304_v10 = vld [vmem:[#allocation2 + $0x48] sm:$0x1] }
  0x2e   : > { %v715_v51 = vrot.slane %v714_v35, 4  ;;  %v471_v52 = vsel %vm6751_vm7, %v463_v40, %v470_v37  ;;  %v594_v53 = vsel %vm6721_vm3, %v472_v38, %v593_v25  ;;  %v325_v54 = vsel %vm6733_vm4, 0, %v324_v17  ;;  %v330_v17 = vld [vmem:[#allocation2 + $0x50] sm:$0x1]  ;;  %v400_v35 = vld [vmem:[%s6728_s13 + $0x34] sm:$0xf] }
  0x2f   : > { %5885 = vmatmul.mubr.msk.bf16.vlgmr.msra.gmra.mrb[0].mxu0 %vm908_vm11, %v5103_v43  ;;  %v725_v57 = vrot.slane %v724_v46, 4  ;;  %592 = vst.msk [vmem:[#allocation2 + $0x28] sm:$0xf] %vm565_vm6, %v471_v52  ;;  %595 = vst [vmem:[#allocation2 + $0x2c] sm:$0x1] %v594_v53  ;;  %v734_v58 = vrot.slane %v732_v47, 4  ;;  %v5123_v52 = vcombine.low %v6828_v44, %v6818_v39 }
  0x30   : > { %v737_v27 = vrot.slane %v735_v48, 5  ;;  %326 = vst [vmem:[#allocation2 + $0x38] sm:$0x1] %v325_v54  ;;  %v474_v59 = vshrl.u32 %v395_v41, 16  ;;  %5901 = vmatpush3.bf16.msra.mxu0 %v6747_v18  ;;  %v720_v40 = vsel %vm6824_vm12, %v715_v51, %v719_v22  ;;  %v477_v62 = vshll.u32 %v395_v41, 16 }
  0x31   : > { %v482_v63 = vshrl.u32 %v396_v49, 16  ;;  %v485_v0 = vshll.u32 %v396_v49, 16  ;;  %v730_v5 = vsel %vm6824_vm12, %v725_v57, %v729_v29  ;;  %5902 = vmatprep.subr.bf16.mxu0 %v6496_v36  ;;  %v302_v18 = vsel %vm6721_vm3, 0, %v301_v50  ;;  %v399_v26 = vld [vmem:[%s6728_s13 + $0x30] sm:$0xf]  ;;  %v6929_v57 = vld [vmem:[%s8720_s1 + $0x40] sm:$0xff]  }
  0x32   : > { %v738_v6 = vor.u32 %v737_v27, %v734_v58  ;;  %v476_v8 = vrot.slane %v474_v59, 7  ;;  %v5104_v11 = vcombine.low %v720_v40, %v730_v5  ;;  %303 = vst [vmem:[#allocation2 + $0x3c] sm:$0x1] %v302_v18  ;;  %v328_v14 = vsel %vm6733_vm4, 0, %v327_v55 }
  0x33   : > { %v484_v13 = vrot.slane %v482_v63, 7  ;;  %v491_v16 = vshrl.u32 %v397_v56, 16  ;;  %v596_v24 = vld [vmem:[#allocation2 + $0x30] sm:$0xf]  ;;  %329 = vst [vmem:[#allocation2 + $0x44] sm:$0x1] %v328_v14  ;;  %v5122_v51 = vcombine.low %v6795_v15, %v6793_v12 }
  0x34   : > { %v6896_v19 = vrot.slane %v738_v6, 4  ;;  %v479_v20 = vor.u32 %v477_v62, %v476_v8  ;;  %v480_v22 = vrot.slane %v476_v8, 4  ;;  %v494_v25 = vshll.u32 %v397_v56, 16  ;;  %5888 = vmatprep.mubr.msk.bf16.mxu0 %vm908_vm11, %v5104_v11  ;;  %5903 = vmatpush3.bf16.msra.mxu0 %v6496_v36  ;;  %v6498_v36 = vld [vmem:[%s8720_s1 + $0x18] sm:$0xff]  }
  0x35   : > { %v487_v28 = vor.u32 %v485_v0, %v484_v13  ;;  %v489_v29 = vrot.slane %v484_v13, 4  ;;  %v493_v32 = vrot.slane %v491_v16, 7  ;;  %v499_v33 = vshrl.u32 %v398_v9, 16  ;;  %5904 = vmatprep.subr.bf16.mxu0 %v6497_v1  ;;  %v6502_v15 = vld [vmem:[%s8720_s1 + $0x58] sm:$0xff]  }
  0x36   : > { %v597_v37 = vsel %vm6763_vm8, %v479_v20, %v596_v24  ;;  %v502_v38 = vshll.u32 %v398_v9, 16  ;;  %v305_v41 = vsel %vm6721_vm3, 0, %v304_v10  ;;  %v331_v43 = vsel %vm6733_vm4, 0, %v330_v17  ;;  %v6910_v46 = vld [vmem:[#allocation2 + $0x28] sm:$0xf] }
  0x37   : > { %v6912_v47 = vld [vmem:[#allocation2 + $0x2c] sm:$0x1]  ;;  %v488_v48 = vsel %vm6751_vm7, %v480_v22, %v487_v28  ;;  %598 = vst [vmem:[#allocation2 + $0x30] sm:$0xf] %v597_v37  ;;  %v600_v49 = vld [vmem:[#allocation2 + $0x38] sm:$0x1]  ;;  %v496_v50 = vor.u32 %v494_v25, %v493_v32 }
  0x38   : > { %306 = vst [vmem:[#allocation2 + $0x48] sm:$0x1] %v305_v41  ;;  %332 = vst [vmem:[#allocation2 + $0x50] sm:$0x1] %v331_v43  ;;  %v741_v53 = vshll.u32 %v6910_v46, 16  ;;  %v745_v54 = vshrl.u32 %v6910_v46, 16  ;;  %v601_v56 = vsel %vm6721_vm3, %v489_v29, %v600_v49  ;;  %5905 = vmatpush3.bf16.msra.mxu0 %v6497_v1 }
  0x39   : > { %v751_v55 = vshll.u32 %v6912_v47, 16  ;;  %599 = vst.msk [vmem:[#allocation2 + $0x34] sm:$0xf] %vm565_vm6, %v488_v48  ;;  %602 = vst [vmem:[#allocation2 + $0x38] sm:$0x1] %v601_v56  ;;  %v497_v58 = vrot.slane %v493_v32, 4  ;;  %5906 = vmatprep.subr.bf16.mxu0 %v6498_v36 }
  0x3a   : > { %v501_v27 = vrot.slane %v499_v33, 7  ;;  %v508_v59 = vshrl.u32 %v399_v26, 16  ;;  %v511_v40 = vshll.u32 %v399_v26, 16  ;;  %v743_v62 = vrot.slane %v741_v53, 5  ;;  %v603_v5 = vld [vmem:[#allocation2 + $0x3c] sm:$0xf] }
  0x3b   : > { %v747_v63 = vrot.slane %v745_v54, 4  ;;  %v753_v0 = vrot.slane %v751_v55, 5  ;;  %v516_v6 = vshrl.u32 %v400_v35, 16  ;;  %v604_v9 = vsel %vm6763_vm8, %v496_v50, %v603_v5  ;;  %v607_v10 = vld [vmem:[#allocation2 + $0x44] sm:$0x1] }
  0x3c   : > { %v504_v8 = vor.u32 %v502_v38, %v501_v27  ;;  %v506_v18 = vrot.slane %v501_v27, 4  ;;  %v510_v11 = vrot.slane %v508_v59, 7  ;;  %v744_v13 = vsel %vm6824_vm12, %v6896_v19, %v743_v62  ;;  %605 = vst [vmem:[#allocation2 + $0x3c] sm:$0xf] %v604_v9  ;;  %v307_v25 = vld [vmem:[#allocation2 + $0x54] sm:$0x1]  ;;  %5907 = vmatpush3.bf16.msra.mxu0 %v6498_v36 }
  0x3d   : > { %v748_v1 = vor.u32 %v747_v63, %v743_v62  ;;  %v518_v14 = vrot.slane %v516_v6, 7  ;;  %v519_v16 = vshll.u32 %v400_v35, 16  ;;  %v333_v33 = vld [vmem:[#allocation2 + $0x5c] sm:$0x1]  ;;  %5924 = vmatprep.subr.bf16.mxu0 %v6929_v57  ;;  %v5124_v35 = vcombine.low %v6843_v61, %v6847_v2  ;;  %v401_v55 = vld [vmem:[%s6728_s13 + $0x38] sm:$0xf] }
  0x3e   : > { %v505_v17 = vsel %vm6751_vm7, %v497_v58, %v504_v8  ;;  %v608_v20 = vsel %vm6721_vm3, %v506_v18, %v607_v10  ;;  %v513_v22 = vor.u32 %v511_v40, %v510_v11  ;;  %v514_v24 = vrot.slane %v510_v11, 4  ;;  %v6940_v28 = vld [vmem:[#allocation2 + $0x30] sm:$0xf] }
  0x3f   : > { %v749_v26 = vrot.slane %v748_v1, 4  ;;  %606 = vst.msk [vmem:[#allocation2 + $0x40] sm:$0xf] %vm565_vm6, %v505_v17  ;;  %609 = vst [vmem:[#allocation2 + $0x44] sm:$0x1] %v608_v20  ;;  %v521_v19 = vor.u32 %v519_v16, %v518_v14  ;;  %v523_v29 = vrot.slane %v518_v14, 4 }
  0x40   : > { %v610_v32 = vld [vmem:[#allocation2 + $0x48] sm:$0xf]  ;;  %v6946_v37 = vld [vmem:[#allocation2 + $0x34] sm:$0xf]  ;;  %v756_v38 = vshrl.u32 %v6940_v28, 16  ;;  %v759_v41 = vshll.u32 %v6940_v28, 16 }
  0x41   : > { %v611_v43 = vsel %vm6763_vm8, %v513_v22, %v610_v32  ;;  %v614_v36 = vld [vmem:[#allocation2 + $0x50] sm:$0x1]  ;;  %v754_v48 = vsel %vm6824_vm12, %v749_v26, %v753_v0  ;;  %v6954_v49 = vld [vmem:[#allocation2 + $0x38] sm:$0x1]  ;;  %v765_v50 = vshll.u32 %v6946_v37, 16  ;;  %v769_v53 = vshrl.u32 %v6946_v37, 16 }
  0x42   : > { %v522_v54 = vsel %vm6751_vm7, %v514_v24, %v521_v19  ;;  %612 = vst [vmem:[#allocation2 + $0x48] sm:$0xf] %v611_v43  ;;  %v5105_v56 = vcombine.low %v744_v13, %v754_v48  ;;  %v758_v58 = vrot.slane %v756_v38, 4  ;;  %v761_v27 = vrot.slane %v759_v41, 5 }
  0x43   : > { %v775_v59 = vshll.u32 %v6954_v49, 16  ;;  %613 = vst.msk [vmem:[#allocation2 + $0x4c] sm:$0xf] %vm565_vm6, %v522_v54  ;;  %v767_v40 = vrot.slane %v765_v50, 5  ;;  %v771_v62 = vrot.slane %v769_v53, 4  ;;  %v615_v63 = vsel %vm6721_vm3, %v523_v29, %v614_v36 }
  0x44   : > { %v308_v0 = vsel %vm6721_vm3, 0, %v307_v25  ;;  %5889 = vmatmul.mubr.msk.bf16.gmra.mrb[4].mxu0 %vm908_vm11, %v5105_v56  ;;  %v762_v5 = vor.u32 %v761_v27, %v758_v58  ;;  %v6968_v8 = vld [vmem:[#allocation2 + $0x3c] sm:$0xf]  ;;  %616 = vst [vmem:[#allocation2 + $0x50] sm:$0x1] %v615_v63  ;;  %v334_v18 = vsel %vm6733_vm4, 0, %v333_v33  ;;  %v5126_v39 = vcombine.low %v6940_v28, %v6946_v37  ;;  %vm7183_vm4 = vmand %vm336_vm0, %vm310_vm2 }
  0x45   : > { %v777_v6 = vrot.slane %v775_v59, 5  ;;  %309 = vst [vmem:[#allocation2 + $0x54] sm:$0x1] %v308_v0  ;;  %v525_v9 = vshrl.u32 %v401_v55, 16  ;;  %v772_v10 = vor.u32 %v771_v62, %v767_v40  ;;  %v780_v11 = vshrl.u32 %v6968_v8, 16 }
  0x46   : > { %v783_v13 = vshll.u32 %v6968_v8, 16  ;;  %335 = vst [vmem:[#allocation2 + $0x5c] sm:$0x1] %v334_v18  ;;  %v528_v1 = vshll.u32 %v401_v55, 16  ;;  %v763_v14 = vrot.slane %v762_v5, 4  ;;  %v1254_v26 = vrot.slane %v6830_v45, 5 }
  0x47   : > { %v6974_v16 = vld [vmem:[#allocation2 + $0x40] sm:$0xf]  ;;  %v6976_v17 = vld [vmem:[#allocation2 + $0x44] sm:$0x1]  ;;  %v6978_v20 = vrot.slane %v525_v9, 7  ;;  %v773_v22 = vrot.slane %v772_v10, 4 }
  0x48   : > { %v782_v7 = vrot.slane %v780_v11, 4  ;;  %v785_v24 = vrot.slane %v783_v13, 5  ;;  %v789_v25 = vshll.u32 %v6974_v16, 16  ;;  %v768_v19 = vsel %vm6824_vm12, %v763_v14, %v767_v40  ;;  %v402_v55 = vld [vmem:[%s6728_s13 + $0x3c] sm:$0xf] }
  0x49   : > { %v793_v29 = vshrl.u32 %v6974_v16, 16  ;;  %v799_v32 = vshll.u32 %v6976_v17, 16  ;;  %v6986_v33 = vld [vmem:[#allocation2 + $0x48] sm:$0xf]  ;;  %v778_v38 = vsel %vm6824_vm12, %v773_v22, %v777_v6  ;;  %v530_v56 = vor.u32 %v528_v1, %v6978_v20  ;;  %v1215_v63 = vld [vmem:[#allocation2] sm:$0xe] }
  0x4a   : > { %v786_v41 = vor.u32 %v785_v24, %v782_v7  ;;  %v791_v43 = vrot.slane %v789_v25, 5  ;;  %v6990_v36 = vld [vmem:[#allocation2 + $0x4c] sm:$0xf]  ;;  %v804_v48 = vshrl.u32 %v6986_v33, 16  ;;  %v5106_v50 = vcombine.low %v768_v19, %v778_v38 }
  0x4b   : > { %v795_v53 = vrot.slane %v793_v29, 4  ;;  %v807_v54 = vshll.u32 %v6986_v33, 16  ;;  %v6996_v27 = vld [vmem:[#allocation2 + $0x50] sm:$0x1]  ;;  %v813_v40 = vshll.u32 %v6990_v36, 16  ;;  %v817_v62 = vshrl.u32 %v6990_v36, 16 }
  0x4c   : > { %v787_v58 = vrot.slane %v786_v41, 4  ;;  %v806_v59 = vrot.slane %v804_v48, 4  ;;  %5892 = vmatprep.mubr.msk.bf16.mxu0 %vm908_vm11, %v5106_v50  ;;  %v801_v5 = vrot.slane %v799_v32, 5  ;;  %v823_v18 = vshll.u32 %v6996_v27, 16  ;;  %v617_v9 = vld [vmem:[#allocation2 + $0x54] sm:$0xf] }
  0x4d   : > { %v796_v0 = vor.u32 %v795_v53, %v791_v43  ;;  %v809_v6 = vrot.slane %v807_v54, 5  ;;  %v815_v10 = vrot.slane %v813_v40, 5  ;;  %v819_v11 = vrot.slane %v817_v62, 4  ;;  %v1216_v14 = vld [vmem:[#allocation2 + $0xc] sm:$0xe] }
  0x4e   : > { %v531_v13 = vrot.slane %v6978_v20, 4  ;;  %v533_v1 = vshrl.u32 %v402_v55, 16  ;;  %v792_v22 = vsel %vm6824_vm12, %v787_v58, %v791_v43  ;;  %v536_v25 = vshll.u32 %v402_v55, 16  ;;  %v621_v19 = vld [vmem:[#allocation2 + $0x5c] sm:$0x1] }
  0x4f   : > { %v797_v7 = vrot.slane %v796_v0, 4  ;;  %v810_v24 = vor.u32 %v809_v6, %v806_v59  ;;  %v1217_v29 = vld [vmem:[#allocation2 + $0x18] sm:$0xe]  ;;  %v820_v38 = vor.u32 %v819_v11, %v815_v10  ;;  %v825_v32 = vrot.slane %v823_v18, 5  ;;  %v1218_v54 = vld [vmem:[#allocation2 + $0x24] sm:$0xe] }
  0x50   : > { %v535_v41 = vrot.slane %v533_v1, 7  ;;  %v618_v48 = vsel %vm6763_vm8, %v530_v56, %v617_v9  ;;  %v5142_v53 = vrot.slane %v1215_v63, 9  ;;  %v1244_v56 = vrot.slane %v6793_v12, 5  ;;  %v1219_v0 = vld [vmem:[#allocation2 + $0x30] sm:$0xe] }
  0x51   : > { %v802_v50 = vsel %vm6824_vm12, %v797_v7, %v801_v5  ;;  %v811_v20 = vrot.slane %v810_v24, 4  ;;  %619 = vst [vmem:[#allocation2 + $0x54] sm:$0xf] %v618_v48  ;;  %v821_v43 = vrot.slane %v820_v38, 4  ;;  %v5143_v62 = vrot.slane %v1216_v14, 9 }
  0x52   : > { %v5107_v40 = vcombine.low %v792_v22, %v802_v50  ;;  %v538_v58 = vor.u32 %v536_v25, %v535_v41  ;;  %v540_v59 = vrot.slane %v535_v41, 4  ;;  %v1253_v63 = vrot.slane %v1251_v60, 4 }
  0x53   : > { %v816_v30 = vsel %vm6824_vm12, %v811_v20, %v815_v10  ;;  %v826_v5 = vsel %vm6824_vm12, %v821_v43, %v825_v32  ;;  %v5144_v9 = vrot.slane %v1217_v29, 9  ;;  %v7030_v11 = vsel %vm7011_vm15, %v5142_v53, %v1244_v56 }
  0x54   : > { %5893 = vmatmul.mubr.msk.bf16.gmra.mrb[8].mxu0 %vm908_vm11, %v5107_v40  ;;  %v539_v6 = vsel %vm6751_vm7, %v531_v13, %v538_v58  ;;  %v622_v18 = vsel %vm6721_vm3, %v540_v59, %v621_v19  ;;  %v5108_v10 = vcombine.low %v816_v30, %v826_v5  ;;  %v1246_v1 = vrot.slane %v1244_v56, 4  ;;  %v1220_v13 = vld [vmem:[#allocation2 + $0x3c] sm:$0xe]  ;;  %v1221_v59 = vld [vmem:[#allocation2 + $0x48] sm:$0xe]  ;;  %vm7176_vm3 = vmand %vm336_vm0, %vm284_vm1 }
  0x55   : > { %620 = vst.msk [vmem:[#allocation2 + $0x58] sm:$0xf] %vm565_vm6, %v539_v6  ;;  %623 = vst [vmem:[#allocation2 + $0x5c] sm:$0x1] %v622_v18  ;;  %v7036_v14 = vsel %vm7011_vm15, %v5143_v62, %v1251_v60  ;;  %v7042_v4 = vsel %vm7011_vm15, %v1253_v63, %v1254_v26  ;;  %v1258_v22 = vrot.slane %v6847_v2, 5  ;;  %v1261_v7 = vrot.slane %v6849_v3, 5 }
  0x56   : > { %v5145_v24 = vrot.slane %v1218_v54, 9  ;;  %5896 = vmatprep.mubr.msk.bf16.mxu0 %vm908_vm11, %v5108_v10  ;;  %v7051_v60 = vsel %vm7011_vm15, %v1246_v1, %v1247_v34  ;;  %v5159_v45 = vcombine.low %v7036_v14, %v7042_v4  ;;  %v1265_v25 = vrot.slane %v6910_v46, 5  ;;  %v341_v14 = vld [vmem:[#allocation3 + $0xc] sm:$0x1]  ;;  %v366_v4 = vld [vmem:[#allocation3 + $0x14] sm:$0x1]  ;;  %vm7368_vm6 = vmand %vm1819_vm5, %vm310_vm2 }
  0x57   : > { %v1268_v26 = vrot.slane %v6912_v47, 5  ;;  %v5158_v3 = vcombine.low %v7030_v11, %v7051_v60  ;;  %v7063_v29 = vsel %vm7011_vm15, %v5144_v9, %v1258_v22  ;;  %v1260_v23 = vrot.slane %v1258_v22, 4 }
  0x58   : > { %v7057_v19 = vld [vmem:[#allocation2 + $0x54] sm:$0xf]  ;;  %v5146_v38 = vrot.slane %v1219_v0, 9  ;;  %v7069_v41 = vsel %vm7011_vm15, %v5145_v24, %v1265_v25  ;;  %v1267_v47 = vrot.slane %v1265_v25, 4  ;;  %v1272_v50 = vrot.slane %v6946_v37, 5  ;;  %v6504_v37 = vld [vmem:[%s8722_s3 + $0x3c] sm:$0xff]  }
  0x59   : > { %v828_v34 = vshrl.u32 %v7057_v19, 16  ;;  %v831_v32 = vshll.u32 %v7057_v19, 16  ;;  %v7073_v48 = vsel %vm7011_vm15, %v1260_v23, %v1261_v7  ;;  %v1275_v20 = vrot.slane %v6954_v49, 5  ;;  %v1222_v5 = vld [vmem:[#allocation2 + $0x54] sm:$0xe]  ;;  %5948 = vmatprep.subr.bf16.mxu1 %v6504_v37 }
  0x5a   : > { %v5147_v53 = vrot.slane %v1220_v13, 9  ;;  %v5160_v43 = vcombine.low %v7063_v29, %v7073_v48  ;;  %v7081_v58 = vsel %vm7011_vm15, %v1267_v47, %v1268_v26  ;;  %v7089_v49 = vsel %vm7011_vm15, %v5146_v38, %v1272_v50  ;;  %5949 = vmatpush3.bf16.msra.mxu1 %v6504_v37  ;;  %v6505_v29 = vld [vmem:[%s8722_s3 + $0x44] sm:$0xff]   ;;  %v350_v37 = vld [vmem:[#allocation3 + $0x30] sm:$0x1] }
  0x5b   : > { %v830_v54 = vrot.slane %v828_v34, 4  ;;  %v833_v40 = vrot.slane %v831_v32, 5  ;;  %v5161_v62 = vcombine.low %v7069_v41, %v7081_v58  ;;  %v1274_v63 = vrot.slane %v1272_v50, 4  ;;  %5950 = vmatprep.subr.bf16.mxu1 %v6505_v29 }
  0x5c   : > { %v7083_v30 = vld [vmem:[#allocation2 + $0x58] sm:$0xf]  ;;  %v655_v56 = vld [vmem:[#allocation2 + $0x5c] sm:$0x1]  ;;  %v1279_v0 = vrot.slane %v6974_v16, 5  ;;  %v1282_v38 = vrot.slane %v6976_v17, 5  ;;  %v5125_v12 = vcombine.low %v6859_v31, %v6910_v46  ;;  %v5127_v44 = vcombine.low %v6968_v8, %v6974_v16 }
  0x5d   : > { %v834_v6 = vor.u32 %v833_v40, %v830_v54  ;;  %v837_v18 = vshll.u32 %v7083_v30, 16  ;;  %v841_v9 = vshrl.u32 %v7083_v30, 16  ;;  %v847_v10 = vshll.u32 %v655_v56, 16  ;;  %v338_v31 = vld [vmem:[#allocation3] sm:$0x1] }
  0x5e   : > { %v1276_v1 = vsel %vm7011_vm15, %v1274_v63, %v1275_v20  ;;  %v1280_v13 = vsel %vm7011_vm15, %v5147_v53, %v1279_v0  ;;  %v1281_v22 = vrot.slane %v1279_v0, 4  ;;  %v5148_v34 = vrot.slane %v1221_v59, 9  ;;  %v363_v46 = vld [vmem:[#allocation3 + $0x8] sm:$0x1]  ;;  %5951 = vmatpush3.bf16.msra.mxu1 %v6505_v29 }
  0x5f   : > { %v835_v7 = vrot.slane %v834_v6, 4  ;;  %v839_v24 = vrot.slane %v837_v18, 5  ;;  %v843_v25 = vrot.slane %v841_v9, 4  ;;  %v849_v26 = vrot.slane %v847_v10, 5 }
  0x60   : > { %v5162_v23 = vcombine.low %v7089_v49, %v1276_v1  ;;  %v1286_v32 = vrot.slane %v6990_v36, 5  ;;  %v1289_v50 = vrot.slane %v6996_v27, 5  ;;  %v5149_v54 = vrot.slane %v1222_v5, 9 }
  0x61   : > { %v844_v47 = vor.u32 %v843_v25, %v839_v24  ;;  %v1283_v20 = vsel %vm7011_vm15, %v1281_v22, %v1282_v38  ;;  %v1293_v63 = vrot.slane %v7083_v30, 5  ;;  %v840_v49 = vsel %vm6824_vm12, %v835_v7, %v839_v24  ;;  %v344_v7 = vld [vmem:[#allocation3 + $0x18] sm:$0x1]  ;;  %v369_v24 = vld [vmem:[#allocation3 + $0x20] sm:$0x1] }
  0x62   : > { %v1287_v53 = vsel %vm7011_vm15, %v5148_v34, %v1286_v32  ;;  %v1288_v40 = vrot.slane %v1286_v32, 4  ;;  %v5163_v59 = vcombine.low %v1280_v13, %v1283_v20  ;;  %v1296_v0 = vrot.slane %v655_v56, 5  ;;  %v6500_v56 = vld [vmem:[%s8720_s1 + $0x48] sm:$0xff]   ;;  %v6501_v13 = vld [vmem:[%s8720_s1 + $0x50] sm:$0xff]  }
  0x63   : > { %v845_v17 = vrot.slane %v844_v47, 4  ;;  %v1294_v27 = vsel %vm7011_vm15, %v5149_v54, %v1293_v63  ;;  %v1295_v5 = vrot.slane %v1293_v63, 4  ;;  %v5128_v61 = vcombine.low %v6986_v33, %v6990_v36 }
  0x64   : > { %v1290_v6 = vsel %vm7011_vm15, %v1288_v40, %v1289_v50  ;;  %v5129_v2 = vcombine.low %v7057_v19, %v7083_v30  ;;  %v364_v28 = vsel %vm7183_vm4, 0, %v363_v46  ;;  %v342_v19 = vsel %vm7176_vm3, 0, %v341_v14  ;;  %v6506_v50 = vld [vmem:[%s8722_s3 + $0x4c] sm:$0xff]  }
  0x65   : > { %v850_v18 = vsel %vm6824_vm12, %v845_v17, %v849_v26  ;;  %v5164_v9 = vcombine.low %v1287_v53, %v1290_v6  ;;  %v1297_v1 = vsel %vm7011_vm15, %v1295_v5, %v1296_v0  ;;  %365 = vst [vmem:[#allocation3 + $0x8] sm:$0x1] %v364_v28  ;;  %343 = vst [vmem:[#allocation3 + $0xc] sm:$0x1] %v342_v19  ;;  %v345_v26 = vsel %vm7176_vm3, 0, %v344_v7  ;;  %v6507_v0 = vld [vmem:[%s8722_s3 + $0x54] sm:$0xff]  }
  0x66   : > { %v5109_v10 = vcombine.low %v840_v49, %v850_v18  ;;  %v5165_v22 = vcombine.low %v1294_v27, %v1297_v1  ;;  %346 = vst [vmem:[#allocation3 + $0x18] sm:$0x1] %v345_v26  ;;  %5952 = vmatprep.subr.bf16.mxu1 %v6506_v50  ;;  %v347_v17 = vld [vmem:[#allocation3 + $0x24] sm:$0x1]  ;;  %vm2219_vm1 = vcmask 1043456   ;;  %vm2194_vm2 = vcmask 982016  }
  0x67   : > { %5953 = vmatpush3.bf16.msra.mxu1 %v6506_v50  ;;  %v348_v18 = vsel %vm7176_vm3, 0, %v347_v17  ;;  %v6509_v17 = vld [vmem:[%s8722_s3 + $0x64] sm:$0xff]   ;;  %vm2961_vm8 = vcmask 916480   ;;  %vm5030_vm0 = vcmask 15360  }
  0x68   : > { %5897 = vmatmul.mubr.msk.bf16.gmra.mrb[12].mxu0 %vm908_vm11, %v5109_v10  ;;  %349 = vst [vmem:[#allocation3 + $0x24] sm:$0x1] %v348_v18  ;;  %5954 = vmatprep.subr.bf16.mxu1 %v6507_v0 }
  0x69   : > { %5908 = vmatprep.mubr.msk.bf16.mxu0 %vm908_vm11, %v5122_v51 }
  0x6b   : > { %5955 = vmatpush3.bf16.msra.mxu1 %v6507_v0  ;;  %v359_v0 = vld [vmem:[#allocation3 + $0x54] sm:$0x1] }
  0x70   : > { %5909 = vmatmul.mubr.msk.bf16.vlgmr.msra.gmra.mrb[0].mxu0 %vm908_vm11, %v5123_v52  ;;  %v339_v52 = vsel %vm7176_vm3, 0, %v338_v31 }
  0x71   : > { %5925 = vmatpush3.bf16.msra.mxu0 %v6929_v57  ;;  %5912 = vmatprep.mubr.msk.bf16.mxu0 %vm908_vm11, %v5124_v35  ;;  %340 = vst [vmem:[#allocation3] sm:$0x1] %v339_v52  ;;  %v7192_v35 = vld [vmem:[%s8721_s2] ss:$0 sm:$0xff] }
  0x72   : > { %5926 = vmatprep.subr.bf16.mxu0 %v6500_v56  ;;  %v7355_v57 = vld [vmem:[%s8722_s3] sm:$0xff]  }
  0x75   : > { %5927 = vmatpush3.bf16.msra.mxu0 %v6500_v56 }
  0x76   : > { %5928 = vmatprep.subr.bf16.mxu0 %v6501_v13 }
  0x78   : > { %5913 = vmatmul.mubr.msk.bf16.gmra.mrb[4].mxu0 %vm908_vm11, %v5125_v12 }
  0x79   : > { %5916 = vmatprep.mubr.msk.bf16.mxu0 %vm908_vm11, %v5126_v39  ;;  %5929 = vmatpush3.bf16.msra.mxu0 %v6501_v13  ;;  %v353_v39 = vld [vmem:[#allocation3 + $0x3c] sm:$0x1] }
  0x7a   : > { %5930 = vmatprep.subr.bf16.mxu0 %v6502_v15  ;;  %v354_v31 = vsel %vm7176_vm3, 0, %v353_v39  ;;  %v6510_v39 = vld [vmem:[%s8722_s3 + $0x6c] sm:$0xff]  }
  0x7b   : > { %355 = vst [vmem:[#allocation3 + $0x3c] sm:$0x1] %v354_v31 }
  0x7d   : > { %5931 = vmatpush3.bf16.msra.mxu0 %v6502_v15 }
  0x80   : > { %5917 = vmatmul.mubr.msk.bf16.gmra.mrb[8].mxu0 %vm908_vm11, %v5127_v44  ;;  %v378_v44 = vld [vmem:[#allocation3 + $0x44] sm:$0x1] }
  0x81   : > { %5920 = vmatprep.mubr.msk.bf16.mxu0 %vm908_vm11, %v5128_v61  ;;  %v379_v46 = vsel %vm7183_vm4, 0, %v378_v44  ;;  %v6511_v44 = vld [vmem:[%s8722_s3 + $0x74] ss:$0 sps:$4 sm:$0xff]  }
  0x82   : > { %380 = vst [vmem:[#allocation3 + $0x44] sm:$0x1] %v379_v46 }
  0x88   : > { %5921 = vmatmul.mubr.msk.bf16.gmra.mrb[12].mxu0 %vm908_vm11, %v5129_v2 }
  0x89   : > { %5932 = vmatprep.mubr.msk.bf16.mxu0 %vm908_vm11, %v5158_v3  ;;  %v367_v3 = vsel %vm7183_vm4, 0, %v366_v4 }
  0x8a   : > { %368 = vst [vmem:[#allocation3 + $0x14] sm:$0x1] %v367_v3 }
  0x90   : > { %5933 = vmatmul.mubr.msk.bf16.vlgmr.msra.gmra.mrb[0].mxu0 %vm908_vm11, %v5159_v45 }
  0x91   : > { %5936 = vmatprep.mubr.msk.bf16.mxu0 %vm908_vm11, %v5160_v43 }
  0x98   : > { %5937 = vmatmul.mubr.msk.bf16.gmra.mrb[4].mxu0 %vm908_vm11, %v5161_v62 }
  0x99   : > { %5940 = vmatprep.mubr.msk.bf16.mxu0 %vm908_vm11, %v5162_v23  ;;  %v370_v23 = vsel %vm7183_vm4, 0, %v369_v24  ;;  %v6508_v24 = vld [vmem:[%s8722_s3 + $0x5c] sm:$0xff]  }
  0x9a   : > { %371 = vst [vmem:[#allocation3 + $0x20] sm:$0x1] %v370_v23  ;;  %5956 = vmatprep.subr.bf16.mxu1 %v6508_v24 }
  0x9b   : > { %5957 = vmatpush3.bf16.msra.mxu1 %v6508_v24 }
  0x9c   : > { %5958 = vmatprep.subr.bf16.mxu1 %v6509_v17 }
  0x9f   : > { %5959 = vmatpush3.bf16.msra.mxu1 %v6509_v17 }
  0xa0   : > { %5941 = vmatmul.mubr.msk.bf16.gmra.mrb[8].mxu0 %vm908_vm11, %v5163_v59  ;;  %v372_v59 = vld [vmem:[#allocation3 + $0x2c] sm:$0x1]  ;;  %5960 = vmatprep.subr.bf16.mxu1 %v6510_v39 }
  0xa1   : > { %5944 = vmatprep.mubr.msk.bf16.mxu0 %vm908_vm11, %v5164_v9  ;;  %v373_v9 = vsel %vm7183_vm4, 0, %v372_v59 }
  0xa2   : > { %374 = vst [vmem:[#allocation3 + $0x2c] sm:$0x1] %v373_v9  ;;  %v356_v9 = vld [vmem:[#allocation3 + $0x48] sm:$0x1] }
  0xa3   : > { %5961 = vmatpush3.bf16.msra.mxu1 %v6510_v39 }
  0xa4   : > { %6396 = vmatprep.subr.msk.bf16.mxu1 %vm2219_vm1, %v6511_v44 }
  0xa8   : > { %5945 = vmatmul.mubr.msk.bf16.gmra.mrb[12].mxu0 %vm908_vm11, %v5165_v22  ;;  %vm3030_vm11 = vcmask 1043459  }
 0x163   : > { %v5934_v8 = vpop.f32.mrb[0].mxu0 }
 0x164   : > { %v1413_v16 = vpop.f32.mrb[1].mxu0  ;;  %v7214_v41 = vadd.f32 %v5934_v8, %v7192_v35  ;;  %v375_v8 = vld [vmem:[#allocation3 + $0x38] sm:$0x1] }
 0x165   : > { %v7198_v33 = vadd.f32 %v7192_v35, %v1413_v16  ;;  %v5935_v36 = vpop.f32.mrb[2].mxu0  ;;  %v376_v14 = vsel %vm7183_vm4, 0, %v375_v8 }
 0x166   : > { %v1416_v11 = vpop.f32.mrb[3].mxu0  ;;  %v7201_v60 = vadd.f32 %v5935_v36, %v7192_v35  ;;  %v1517_v38 = vmax.f32 %v7214_v41, 0.0  ;;  %377 = vst [vmem:[#allocation3 + $0x38] sm:$0x1] %v376_v14 }
 0x167   : > { %v7204_v45 = vadd.f32 %v7192_v35, %v1416_v11  ;;  %v1515_v48 = vmax.f32 %v7198_v33, 0.0  ;;  %v351_v11 = vsel %vm7176_vm3, 0, %v350_v37 }
 0x168   : > { %v1518_v58 = vmax.f32 %v7201_v60, 0.0  ;;  %352 = vst [vmem:[#allocation3 + $0x30] sm:$0x1] %v351_v11 }
 0x169   : > { %v1516_v43 = vmax.f32 %v7204_v45, 0.0 }
 0x16a   : > { %v6416_v54 = vpack.i.bf16 %v1518_v58, %v1517_v38 }
 0x16b   : > { %v5938_v30 = vpop.f32.mrb[4].mxu0  ;;  %v6411_v62 = vpack.i.bf16 %v1516_v43, %v1515_v48 }
 0x16c   : > { %v1429_v25 = vpop.f32.mrb[5].mxu0  ;;  %v7246_v40 = vadd.f32 %v5938_v30, %v7192_v35 }
 0x16d   : > { %v7229_v34 = vadd.f32 %v7192_v35, %v1429_v25  ;;  %6412 = vrot.lane.b32.xlu0 %v6411_v62, %s6656_s17  ;;  %v5939_v32 = vpop.f32.mrb[6].mxu0 }
 0x16e   : > { %v1432_v47 = vpop.f32.mrb[7].mxu0  ;;  %v7240_v20 = vadd.f32 %v5939_v32, %v7192_v35  ;;  %v1521_v22 = vmax.f32 %v7246_v40, 0.0  ;;  %v1836_v40 = vld [vmem:[#allocation3 + $0x18] sm:$0xf] }
 0x16f   : > { %v7243_v53 = vadd.f32 %v7192_v35, %v1432_v47  ;;  %v1519_v63 = vmax.f32 %v7229_v34, 0.0 }
 0x170   : > { %v1522_v6 = vmax.f32 %v7240_v20, 0.0 }
 0x171   : > { %v1520_v49 = vmax.f32 %v7243_v53, 0.0  ;;  %6417 = vrot.lane.b32.xlu0 %v6416_v54, %s6656_s17 }
 0x172   : > { %v6426_v61 = vpack.i.bf16 %v1522_v6, %v1521_v22 }
 0x173   : > { %v5942_v27 = vpop.f32.mrb[8].mxu0  ;;  %v6421_v5 = vpack.i.bf16 %v1520_v49, %v1519_v63 }
 0x174   : > { %v7264_v10 = vadd.f32 %v5942_v27, %v7192_v35  ;;  %v1445_v1 = vpop.f32.mrb[9].mxu0  ;;  %v384_v27 = vld [vmem:[#allocation3 + $0x5c] sm:$0x1] }
 0x175   : > { %v7268_v56 = vadd.f32 %v7192_v35, %v1445_v1  ;;  %6422 = vrot.lane.b32.xlu1 %v6421_v5, %s6656_s17  ;;  %v5943_v13 = vpop.f32.mrb[10].mxu0  ;;  %v360_v5 = vsel %vm7176_vm3, 0, %v359_v0  ;;  %v385_v18 = vsel %vm7183_vm4, 0, %v384_v27  ;;  %v381_v1 = vld [vmem:[#allocation3 + $0x50] sm:$0x1] }
 0x176   : > { %v7272_v12 = vadd.f32 %v5943_v13, %v7192_v35  ;;  %v1448_v15 = vpop.f32.mrb[11].mxu0  ;;  %v1525_v52 = vmax.f32 %v7264_v10, 0.0  ;;  %361 = vst [vmem:[#allocation3 + $0x54] sm:$0x1] %v360_v5  ;;  %386 = vst [vmem:[#allocation3 + $0x5c] sm:$0x1] %v385_v18 }
 0x177   : > { %v7279_v2 = vadd.f32 %v7192_v35, %v1448_v15  ;;  %v1523_v16 = vmax.f32 %v7268_v56, 0.0  ;;  %v357_v13 = vsel %vm7176_vm3, 0, %v356_v9  ;;  %v382_v15 = vsel %vm7183_vm4, 0, %v381_v1  ;;  %v1821_v27 = vld [vmem:[#allocation3] sm:$0xf] }
 0x178   : > { %v1526_v28 = vmax.f32 %v7272_v12, 0.0  ;;  %358 = vst [vmem:[#allocation3 + $0x48] sm:$0x1] %v357_v13  ;;  %383 = vst [vmem:[#allocation3 + $0x50] sm:$0x1] %v382_v15 }
 0x179   : > { %v1524_v36 = vmax.f32 %v7279_v2, 0.0  ;;  %6427 = vrot.lane.b32.xlu1 %v6426_v61, %s6656_s17  ;;  %v2221_v61 = vsel %vm2219_vm1, %v6511_v44, 0  ;;  %v1826_v5 = vld [vmem:[#allocation3 + $0x8] sm:$0x1] }
 0x17a   : > { %v6436_v4 = vpack.i.bf16 %v1526_v28, %v1525_v52  ;;  %5963 = vmatpush3.bf16.msra.mxu1 %v2221_v61 }
 0x17b   : > { %v6431_v19 = vpack.i.bf16 %v1524_v36, %v1523_v16  ;;  %v5946_v3 = vpop.f32.mrb[12].mxu0  ;;  %5980 = vmatprep.subr.bf16.mxu1 %v7355_v57 }
 0x17c   : > { %v7303_v29 = vadd.f32 %v5946_v3, %v7192_v35  ;;  %v1461_v30 = vpop.f32.mrb[13].mxu0 }
 0x17d   : > { %v7306_v62 = vadd.f32 %v7192_v35, %v1461_v30  ;;  %6437 = vrot.lane.b32.xlu1 %v6436_v4, %s6656_s17  ;;  %6432 = vrot.lane.b32.xlu0 %v6431_v19, %s6656_s17  ;;  %v5947_v7 = vpop.f32.mrb[14].mxu0 }
 0x17e   : > { %v7314_v25 = vadd.f32 %v5947_v7, %v7192_v35  ;;  %v1464_v26 = vpop.f32.mrb[15].mxu0  ;;  %v1529_v32 = vmax.f32 %v7303_v29, 0.0 }
 0x17f   : > { %v7317_v23 = vadd.f32 %v7192_v35, %v1464_v26  ;;  %v1527_v50 = vmax.f32 %v7306_v62, 0.0 }
 0x180   : > { %v1530_v47 = vmax.f32 %v7314_v25, 0.0 }
 0x181   : > { %v1528_v54 = vmax.f32 %v7317_v23, 0.0 }
 0x182   : > { %v6446_v35 = vpack.i.bf16 %v1530_v47, %v1529_v32 }
 0x183   : > { %v6441_v59 = vpack.i.bf16 %v1528_v54, %v1527_v50 }
 0x184   : > { %6447 = vrot.lane.b32.xlu1 %v6446_v35, %s6656_s17 }
 0x185   : > { %6442 = vrot.lane.b32.xlu0 %v6441_v59, %s6656_s17 }
 0x1df   : > { %v6413_v31 = vpop.permute.xlu0 %6412 }
 0x1e0   : > { %v6415_v46 = vunpack.i.h.bf16 %v6413_v31  ;;  %v6414_v37 = vunpack.i.l.bf16 %v6413_v31 }
 0x1e2   : > { %v1596_v8 = vmax.f32 %v1516_v43, %v6415_v46  ;;  %v1595_v11 = vmax.f32 %v1515_v48, %v6414_v37 }
 0x1e3   : > { %v6418_v14 = vpop.permute.xlu0 %6417 }
 0x1e4   : > { %v5649_v4 = vpack.c.bf16 %v1596_v8, %v1596_v8  ;;  %v5648_v19 = vpack.c.bf16 %v1595_v11, %v1595_v11  ;;  %v6420_v3 = vunpack.i.h.bf16 %v6418_v14  ;;  %v6419_v30 = vunpack.i.l.bf16 %v6418_v14 }
 0x1e6   : > { %v1668_v7 = vshrl.u32 %v5649_v4, 16  ;;  %v1660_v24 = vshrl.u32 %v5648_v19, 16  ;;  %v1671_v26 = vshll.u32 %v5649_v4, 16  ;;  %v1598_v17 = vmax.f32 %v1518_v58, %v6420_v3  ;;  %v1829_v3 = vld [vmem:[#allocation3 + $0xc] sm:$0xf] }
 0x1e7   : > { %v1597_v35 = vmax.f32 %v1517_v38, %v6419_v30  ;;  %v6423_v45 = vpop.permute.xlu1 %6422  ;;  %v1663_v33 = vshll.u32 %v5648_v19, 16  ;;  %v1833_v30 = vld [vmem:[#allocation3 + $0x14] sm:$0x1] }
 0x1e8   : > { %v1670_v43 = vrot.slane %v1668_v7, 7  ;;  %v1662_v59 = vrot.slane %v1660_v24, 7  ;;  %v6425_v48 = vunpack.i.h.bf16 %v6423_v45  ;;  %v5651_v18 = vpack.c.bf16 %v1598_v17, %v1598_v17 }
 0x1e9   : > { %v5650_v9 = vpack.c.bf16 %v1597_v35, %v1597_v35  ;;  %v6424_v60 = vunpack.i.l.bf16 %v6423_v45 }
 0x1ea   : > { %v1673_v58 = vor.u32 %v1671_v26, %v1670_v43  ;;  %v1675_v1 = vrot.slane %v1670_v43, 4  ;;  %v1665_v41 = vor.u32 %v1663_v33, %v1662_v59  ;;  %v1666_v38 = vrot.slane %v1662_v59, 4 }
 0x1eb   : > { %v1685_v13 = vshrl.u32 %v5651_v18, 16  ;;  %v1688_v15 = vshll.u32 %v5651_v18, 16  ;;  %v1677_v39 = vshrl.u32 %v5650_v9, 16  ;;  %v1680_v44 = vshll.u32 %v5650_v9, 16  ;;  %v6428_v61 = vpop.permute.xlu1 %6427 }
 0x1ec   : > { %v1827_v31 = vsel %vm7176_vm3, %v1675_v1, %v1826_v5  ;;  %v1674_v46 = vsel %vm6751_vm7, %v1666_v38, %v1673_v58  ;;  %v1822_v37 = vsel %vm7368_vm6, %v1665_v41, %v1821_v27  ;;  %v1600_v8 = vmax.f32 %v1520_v49, %v6425_v48 }
 0x1ed   : > { %1828 = vst [vmem:[#allocation3 + $0x8] sm:$0x1] %v1827_v31  ;;  %1823 = vst [vmem:[#allocation3] sm:$0xf] %v1822_v37  ;;  %v1687_v11 = vrot.slane %v1685_v13, 7  ;;  %v1679_v14 = vrot.slane %v1677_v39, 7  ;;  %v1599_v4 = vmax.f32 %v1519_v63, %v6424_v60  ;;  %v6430_v19 = vunpack.i.h.bf16 %v6428_v61 }
 0x1ee   : > { %1825 = vst.msk [vmem:[#allocation3 + $0x4] sm:$0xf] %vm1819_vm5, %v1674_v46  ;;  %v5653_v7 = vpack.c.bf16 %v1600_v8, %v1600_v8  ;;  %v6429_v24 = vunpack.i.l.bf16 %v6428_v61  ;;  %v1840_v60 = vld [vmem:[#allocation3 + $0x20] sm:$0x1] }
 0x1ef   : > { %v1690_v26 = vor.u32 %v1688_v15, %v1687_v11  ;;  %v1692_v17 = vrot.slane %v1687_v11, 4  ;;  %v1682_v35 = vor.u32 %v1680_v44, %v1679_v14  ;;  %v1683_v45 = vrot.slane %v1679_v14, 4  ;;  %v6438_v33 = vpop.permute.xlu1 %6437  ;;  %v7385_v48 = vpop.permute.xlu0 %6432 }
 0x1f0   : > { %v1702_v53 = vshrl.u32 %v5653_v7, 16  ;;  %v1705_v49 = vshll.u32 %v5653_v7, 16  ;;  %v5652_v43 = vpack.c.bf16 %v1599_v4, %v1599_v4  ;;  %v1602_v59 = vmax.f32 %v1522_v6, %v6430_v19  ;;  %v1847_v4 = vld [vmem:[#allocation3 + $0x2c] sm:$0x1] }
 0x1f1   : > { %v1834_v34 = vsel %vm7176_vm3, %v1692_v17, %v1833_v30  ;;  %v1691_v63 = vsel %vm6751_vm7, %v1683_v45, %v1690_v26  ;;  %v1830_v27 = vsel %vm7368_vm6, %v1682_v35, %v1829_v3  ;;  %v1601_v5 = vmax.f32 %v1521_v22, %v6429_v24  ;;  %v1843_v24 = vld [vmem:[#allocation3 + $0x24] sm:$0xf] }
 0x1f2   : > { %1835 = vst [vmem:[#allocation3 + $0x14] sm:$0x1] %v1834_v34  ;;  %1831 = vst [vmem:[#allocation3 + $0xc] sm:$0xf] %v1830_v27  ;;  %v1704_v20 = vrot.slane %v1702_v53, 7  ;;  %v1694_v6 = vshrl.u32 %v5652_v43, 16  ;;  %v5655_v9 = vpack.c.bf16 %v1602_v59, %v1602_v59  ;;  %v6440_v1 = vunpack.i.h.bf16 %v6438_v33 }
 0x1f3   : > { %1832 = vst.msk [vmem:[#allocation3 + $0x10] sm:$0xf] %vm1819_vm5, %v1691_v63  ;;  %v1697_v18 = vshll.u32 %v5652_v43, 16  ;;  %v5654_v58 = vpack.c.bf16 %v1601_v5, %v1601_v5  ;;  %v6439_v41 = vunpack.i.l.bf16 %v6438_v33  ;;  %v6435_v38 = vunpack.i.h.bf16 %v7385_v48  ;;  %v1861_v5 = vld [vmem:[#allocation3 + $0x44] sm:$0x1] }
 0x1f4   : > { %v1707_v13 = vor.u32 %v1705_v49, %v1704_v20  ;;  %v1709_v15 = vrot.slane %v1704_v20, 4  ;;  %v1696_v39 = vrot.slane %v1694_v6, 7  ;;  %v1719_v44 = vshrl.u32 %v5655_v9, 16 }
 0x1f5   : > { %v1722_v22 = vshll.u32 %v5655_v9, 16  ;;  %v1711_v61 = vshrl.u32 %v5654_v58, 16  ;;  %v1714_v31 = vshll.u32 %v5654_v58, 16  ;;  %v1606_v46 = vmax.f32 %v1526_v28, %v6440_v1 }
 0x1f6   : > { %v1841_v37 = vsel %vm7176_vm3, %v1709_v15, %v1840_v60  ;;  %v1699_v8 = vor.u32 %v1697_v18, %v1696_v39  ;;  %v1700_v11 = vrot.slane %v1696_v39, 4  ;;  %v1721_v14 = vrot.slane %v1719_v44, 7  ;;  %v6448_v35 = vpop.permute.xlu1 %6447  ;;  %v1857_v39 = vld [vmem:[#allocation3 + $0x3c] sm:$0xf] }
 0x1f7   : > { %1842 = vst [vmem:[#allocation3 + $0x20] sm:$0x1] %v1841_v37  ;;  %v1713_v19 = vrot.slane %v1711_v61, 7  ;;  %v5659_v3 = vpack.c.bf16 %v1606_v46, %v1606_v46  ;;  %v1605_v30 = vmax.f32 %v1525_v52, %v6439_v41  ;;  %v1604_v7 = vmax.f32 %v1524_v36, %v6435_v38  ;;  %v6443_v27 = vpop.permute.xlu0 %6442 }
 0x1f8   : > { %v1708_v12 = vsel %vm6751_vm7, %v1700_v11, %v1707_v13  ;;  %v1837_v28 = vsel %vm7368_vm6, %v1699_v8, %v1836_v40  ;;  %v1724_v26 = vor.u32 %v1722_v22, %v1721_v14  ;;  %v1726_v17 = vrot.slane %v1721_v14, 4  ;;  %v1854_v40 = vld [vmem:[#allocation3 + $0x38] sm:$0x1]  ;;  %v7424_v11 = vld [vmem:[#allocation3] sm:$0xf] }
 0x1f9   : > { %1838 = vst [vmem:[#allocation3 + $0x18] sm:$0xf] %v1837_v28  ;;  %1839 = vst.msk [vmem:[#allocation3 + $0x1c] sm:$0xf] %vm1819_vm5, %v1708_v12  ;;  %v1716_v45 = vor.u32 %v1714_v31, %v1713_v19  ;;  %v1717_v53 = vrot.slane %v1713_v19, 4  ;;  %v1753_v10 = vshrl.u32 %v5659_v3, 16  ;;  %v5658_v36 = vpack.c.bf16 %v1605_v30, %v1605_v30 }
 0x1fa   : > { %v1756_v52 = vshll.u32 %v5659_v3, 16  ;;  %v1848_v2 = vsel %vm7176_vm3, %v1726_v17, %v1847_v4  ;;  %v5657_v49 = vpack.c.bf16 %v1604_v7, %v1604_v7  ;;  %v6434_v43 = vunpack.i.l.bf16 %v7385_v48  ;;  %v7434_v30 = vld [vmem:[#allocation3 + $0x4] sm:$0xf]  ;;  %v1850_v7 = vld [vmem:[#allocation3 + $0x30] sm:$0xf] }
 0x1fb   : > { %1849 = vst [vmem:[#allocation3 + $0x2c] sm:$0x1] %v1848_v2  ;;  %v1725_v59 = vsel %vm6751_vm7, %v1717_v53, %v1724_v26  ;;  %v1844_v33 = vsel %vm7368_vm6, %v1716_v45, %v1843_v24  ;;  %v1755_v34 = vrot.slane %v1753_v10, 7  ;;  %v6450_v63 = vunpack.i.h.bf16 %v6448_v35  ;;  %v1875_v17 = vld [vmem:[#allocation3 + $0x5c] sm:$0x1] }
 0x1fc   : > { %1845 = vst [vmem:[#allocation3 + $0x24] sm:$0xf] %v1844_v33  ;;  %1846 = vst.msk [vmem:[#allocation3 + $0x28] sm:$0xf] %vm1819_vm5, %v1725_v59  ;;  %v1745_v20 = vshrl.u32 %v5658_v36, 16  ;;  %v1748_v6 = vshll.u32 %v5658_v36, 16  ;;  %v1603_v58 = vmax.f32 %v1523_v16, %v6434_v43  ;;  %v6449_v13 = vunpack.i.l.bf16 %v6448_v35 }
 0x1fd   : > { %v1736_v18 = vshrl.u32 %v5657_v49, 16  ;;  %v1739_v9 = vshll.u32 %v5657_v49, 16  ;;  %v1758_v60 = vor.u32 %v1756_v52, %v1755_v34  ;;  %v1760_v48 = vrot.slane %v1755_v34, 4 }
 0x1fe   : > { %v1610_v1 = vmax.f32 %v1530_v47, %v6450_v63  ;;  %v1747_v41 = vrot.slane %v1745_v20, 7  ;;  %v6445_v15 = vunpack.i.h.bf16 %v6443_v27  ;;  %v5656_v22 = vpack.c.bf16 %v1603_v58, %v1603_v58  ;;  %v1871_v20 = vld [vmem:[#allocation3 + $0x54] sm:$0xf] }
 0x1ff   : > { %v1738_v38 = vrot.slane %v1736_v18, 7  ;;  %v1862_v44 = vsel %vm7176_vm3, %v1760_v48, %v1861_v5  ;;  %v6444_v31 = vunpack.i.l.bf16 %v6443_v27  ;;  %v1609_v3 = vmax.f32 %v1529_v32, %v6449_v13  ;;  %v7451_v5 = vld [vmem:[#allocation3 + $0x8] sm:$0x1] }
 0x200   : > { %v5663_v61 = vpack.c.bf16 %v1610_v1, %v1610_v1  ;;  %1863 = vst [vmem:[#allocation3 + $0x44] sm:$0x1] %v1862_v44  ;;  %v1750_v46 = vor.u32 %v1748_v6, %v1747_v41  ;;  %v1751_v37 = vrot.slane %v1747_v41, 4  ;;  %v1728_v8 = vshrl.u32 %v5656_v22, 16  ;;  %v1868_v1 = vld [vmem:[#allocation3 + $0x50] sm:$0x1] }
 0x201   : > { %v1743_v56 = vrot.slane %v1738_v38, 4  ;;  %v1741_v16 = vor.u32 %v1739_v9, %v1738_v38  ;;  %v1731_v25 = vshll.u32 %v5656_v22, 16  ;;  %v1608_v24 = vmax.f32 %v1528_v54, %v6445_v15  ;;  %v7476_v51 = vld [vmem:[#allocation3 + $0x18] sm:$0xf]  ;;  %v7481_v21 = vld [vmem:[#allocation3 + $0x1c] sm:$0xf] }
 0x202   : > { %v1787_v47 = vshrl.u32 %v5663_v61, 16  ;;  %v1759_v14 = vsel %vm6751_vm7, %v1751_v37, %v1758_v60  ;;  %v1858_v4 = vsel %vm7368_vm6, %v1750_v46, %v1857_v39  ;;  %v1730_v12 = vrot.slane %v1728_v8, 7 }
 0x203   : > { %v1855_v19 = vsel %vm7176_vm3, %v1743_v56, %v1854_v40  ;;  %1859 = vst [vmem:[#allocation3 + $0x3c] sm:$0xf] %v1858_v4  ;;  %1860 = vst.msk [vmem:[#allocation3 + $0x40] sm:$0xf] %vm1819_vm5, %v1759_v14  ;;  %v1607_v26 = vmax.f32 %v1527_v50, %v6444_v31  ;;  %v1790_v35 = vshll.u32 %v5663_v61, 16  ;;  %v5662_v45 = vpack.c.bf16 %v1609_v3, %v1609_v3 }
 0x204   : > { %1856 = vst [vmem:[#allocation3 + $0x38] sm:$0x1] %v1855_v19  ;;  %v1789_v28 = vrot.slane %v1787_v47, 7  ;;  %v1918_v29 = vshrl.u32 %v7424_v11, 16  ;;  %v1921_v32 = vshll.u32 %v7424_v11, 16  ;;  %v1733_v53 = vor.u32 %v1731_v25, %v1730_v12 }
 0x205   : > { %v1734_v10 = vrot.slane %v1730_v12, 4  ;;  %v1927_v2 = vshll.u32 %v7434_v30, 16  ;;  %v1779_v49 = vshrl.u32 %v5662_v45, 16  ;;  %v5661_v43 = vpack.c.bf16 %v1608_v24, %v1608_v24  ;;  %v7455_v40 = vld [vmem:[#allocation3 + $0xc] sm:$0xf] }
 0x206   : > { %v1794_v52 = vrot.slane %v1789_v28, 4  ;;  %v1792_v36 = vor.u32 %v1790_v35, %v1789_v28  ;;  %v5660_v23 = vpack.c.bf16 %v1607_v26, %v1607_v26  ;;  %v1851_v50 = vsel %vm7368_vm6, %v1733_v53, %v1850_v7  ;;  %v1864_v31 = vld [vmem:[#allocation3 + $0x48] sm:$0xf]  ;;  %v7462_v47 = vld [vmem:[#allocation3 + $0x10] sm:$0xf] }
 0x207   : > { %v1742_v62 = vsel %vm6751_vm7, %v1734_v10, %v1741_v16  ;;  %v1920_v59 = vrot.slane %v1918_v29, 4  ;;  %1852 = vst [vmem:[#allocation3 + $0x30] sm:$0xf] %v1851_v50  ;;  %v1781_v33 = vrot.slane %v1779_v49, 7  ;;  %v1782_v34 = vshll.u32 %v5662_v45, 16 }
 0x208   : > { %v1876_v54 = vsel %vm7176_vm3, %v1794_v52, %v1875_v17  ;;  %1853 = vst.msk [vmem:[#allocation3 + $0x34] sm:$0xf] %vm1819_vm5, %v1742_v62  ;;  %v1770_v63 = vshrl.u32 %v5661_v43, 16  ;;  %v1762_v27 = vshrl.u32 %v5660_v23, 16  ;;  %v1773_v6 = vshll.u32 %v5661_v43, 16 }
 0x209   : > { %1877 = vst [vmem:[#allocation3 + $0x5c] sm:$0x1] %v1876_v54  ;;  %v1923_v18 = vrot.slane %v1921_v32, 5  ;;  %v1929_v9 = vrot.slane %v1927_v2, 5  ;;  %v1931_v60 = vshrl.u32 %v7434_v30, 16  ;;  %v1784_v48 = vor.u32 %v1782_v34, %v1781_v33 }
 0x20a   : > { %v1785_v58 = vrot.slane %v1781_v33, 4  ;;  %v1772_v41 = vrot.slane %v1770_v63, 7  ;;  %v1764_v38 = vrot.slane %v1762_v27, 7  ;;  %v1765_v13 = vshll.u32 %v5660_v23, 16  ;;  %v7466_v19 = vld [vmem:[#allocation3 + $0x14] sm:$0x1] }
 0x20b   : > { %v1924_v15 = vor.u32 %v1923_v18, %v1920_v59  ;;  %v1933_v39 = vrot.slane %v1931_v60, 4  ;;  %v1937_v44 = vshll.u32 %v7451_v5, 16  ;;  %v1872_v61 = vsel %vm7368_vm6, %v1784_v48, %v1871_v20  ;;  %v7486_v53 = vld [vmem:[#allocation3 + $0x20] sm:$0x1]  ;;  %v7488_v49 = vld [vmem:[#allocation3 + $0x24] sm:$0xf] }
 0x20c   : > { %v1793_v22 = vsel %vm6751_vm7, %v1785_v58, %v1792_v36  ;;  %v1775_v46 = vor.u32 %v1773_v6, %v1772_v41  ;;  %v1777_v37 = vrot.slane %v1772_v41, 4  ;;  %1873 = vst [vmem:[#allocation3 + $0x54] sm:$0xf] %v1872_v61  ;;  %v1767_v56 = vor.u32 %v1765_v13, %v1764_v38  ;;  %v7496_v63 = vld [vmem:[#allocation3 + $0x28] sm:$0xf] }
 0x20d   : > { %1874 = vst.msk [vmem:[#allocation3 + $0x58] sm:$0xf] %vm1819_vm5, %v1793_v22  ;;  %v1768_v16 = vrot.slane %v1764_v38, 4  ;;  %v1925_v8 = vrot.slane %v1924_v15, 4  ;;  %v1934_v25 = vor.u32 %v1933_v39, %v1929_v9  ;;  %v1939_v4 = vrot.slane %v1937_v44, 5 }
 0x20e   : > { %v1869_v14 = vsel %vm7176_vm3, %v1777_v37, %v1868_v1  ;;  %v1942_v3 = vshrl.u32 %v7455_v40, 16  ;;  %v1945_v7 = vshll.u32 %v7455_v40, 16  ;;  %v1865_v28 = vsel %vm7368_vm6, %v1767_v56, %v1864_v31  ;;  %v7498_v18 = vld [vmem:[#allocation3 + $0x2c] sm:$0x1]  ;;  %v7505_v39 = vld [vmem:[#allocation3 + $0x30] sm:$0xf] }
 0x20f   : > { %1870 = vst [vmem:[#allocation3 + $0x50] sm:$0x1] %v1869_v14  ;;  %v1776_v12 = vsel %vm6751_vm7, %v1768_v16, %v1775_v46  ;;  %v1930_v24 = vsel %vm6824_vm12, %v1925_v8, %v1929_v9  ;;  %v1935_v26 = vrot.slane %v1934_v25, 4  ;;  %1866 = vst [vmem:[#allocation3 + $0x48] sm:$0xf] %v1865_v28  ;;  %v1951_v45 = vshll.u32 %v7462_v47, 16 }
 0x210   : > { %1867 = vst.msk [vmem:[#allocation3 + $0x4c] sm:$0xf] %vm1819_vm5, %v1776_v12  ;;  %v1944_v17 = vrot.slane %v1942_v3, 4  ;;  %v1947_v35 = vrot.slane %v1945_v7, 5  ;;  %v1955_v29 = vshrl.u32 %v7462_v47, 16  ;;  %v1961_v32 = vshll.u32 %v7466_v19, 16 }
 0x211   : > { %v1940_v0 = vsel %vm6824_vm12, %v1935_v26, %v1939_v4  ;;  %v1953_v2 = vrot.slane %v1951_v45, 5  ;;  %v1966_v23 = vshrl.u32 %v7476_v51, 16  ;;  %v1969_v62 = vshll.u32 %v7476_v51, 16  ;;  %v7511_v46 = vld [vmem:[#allocation3 + $0x34] sm:$0xf]  ;;  %v6513_v56 = vld [vmem:[%s8722_s3 + $0x8] sm:$0xff]  }
 0x212   : > { %v5210_v10 = vcombine.low %v1930_v24, %v1940_v0  ;;  %v1948_v52 = vor.u32 %v1947_v35, %v1944_v17  ;;  %v1957_v36 = vrot.slane %v1955_v29, 4  ;;  %v1963_v43 = vrot.slane %v1961_v32, 5  ;;  %v7520_v24 = vld [vmem:[#allocation3 + $0x38] sm:$0x1]  ;;  %v7524_v35 = vld [vmem:[#allocation3 + $0x3c] sm:$0xf] }
 0x213   : > { %v1975_v50 = vshll.u32 %v7481_v21, 16  ;;  %v1979_v33 = vshrl.u32 %v7481_v21, 16  ;;  %v1985_v34 = vshll.u32 %v7486_v53, 16  ;;  %v1968_v27 = vrot.slane %v1966_v23, 4 }
 0x214   : > { %5964 = vmatprep.mubr.msk.bf16.mxu1 %vm2194_vm2, %v5210_v10  ;;  %v1949_v54 = vrot.slane %v1948_v52, 4  ;;  %v1958_v59 = vor.u32 %v1957_v36, %v1953_v2  ;;  %v1971_v20 = vrot.slane %v1969_v62, 5  ;;  %v1990_v9 = vshrl.u32 %v7488_v49, 16  ;;  %v7530_v10 = vld [vmem:[#allocation3 + $0x40] sm:$0xf] }
 0x215   : > { %v1977_v6 = vrot.slane %v1975_v50, 5  ;;  %v1981_v58 = vrot.slane %v1979_v33, 4  ;;  %v1987_v1 = vrot.slane %v1985_v34, 5  ;;  %v1993_v13 = vshll.u32 %v7488_v49, 16  ;;  %v7540_v34 = vld [vmem:[#allocation3 + $0x44] sm:$0x1] }
 0x216   : > { %v1954_v60 = vsel %vm6824_vm12, %v1949_v54, %v1953_v2  ;;  %v1959_v48 = vrot.slane %v1958_v59, 4  ;;  %v1972_v41 = vor.u32 %v1971_v20, %v1968_v27  ;;  %v1992_v38 = vrot.slane %v1990_v9, 4  ;;  %v6514_v2 = vld [vmem:[%s8722_s3 + $0x10] sm:$0xff]  }
 0x217   : > { %v1999_v15 = vshll.u32 %v7496_v63, 16  ;;  %v1982_v22 = vor.u32 %v1981_v58, %v1977_v6  ;;  %v2003_v61 = vshrl.u32 %v7496_v63, 16  ;;  %v2009_v31 = vshll.u32 %v7498_v18, 16 }
 0x218   : > { %v1964_v44 = vsel %vm6824_vm12, %v1959_v48, %v1963_v43  ;;  %v1973_v16 = vrot.slane %v1972_v41, 4  ;;  %v1995_v8 = vrot.slane %v1993_v13, 5  ;;  %v2014_v7 = vshrl.u32 %v7505_v39, 16 }
 0x219   : > { %v5211_v37 = vcombine.low %v1954_v60, %v1964_v44  ;;  %v2001_v25 = vrot.slane %v1999_v15, 5  ;;  %v1983_v14 = vrot.slane %v1982_v22, 4  ;;  %v2005_v4 = vrot.slane %v2003_v61, 4 }
 0x21a   : > { %v2011_v3 = vrot.slane %v2009_v31, 5  ;;  %v1978_v12 = vsel %vm6824_vm12, %v1973_v16, %v1977_v6  ;;  %v1996_v28 = vor.u32 %v1995_v8, %v1992_v38  ;;  %v2017_v26 = vshll.u32 %v7505_v39, 16  ;;  %v7544_v6 = vld [vmem:[#allocation3 + $0x48] sm:$0xf]  ;;  %v6515_v38 = vld [vmem:[%s8722_s3 + $0x18] sm:$0xff]  }
 0x21b   : > { %5965 = vmatmul.mubr.msk.bf16.vlgmr.msra.gmra.mrb[0].mxu1 %vm2194_vm2, %v5211_v37  ;;  %v2023_v17 = vshll.u32 %v7511_v46, 16  ;;  %v1988_v45 = vsel %vm6824_vm12, %v1983_v14, %v1987_v1  ;;  %v2006_v29 = vor.u32 %v2005_v4, %v2001_v25  ;;  %v2016_v0 = vrot.slane %v2014_v7, 4  ;;  %v7548_v1 = vld [vmem:[#allocation3 + $0x4c] sm:$0xf]  ;;  %v7561_v14 = vld [vmem:[#allocation3 + $0x54] sm:$0xf] }
 0x21c   : > { %5981 = vmatpush3.bf16.msra.mxu1 %v7355_v57  ;;  %v2027_v32 = vshrl.u32 %v7511_v46, 16  ;;  %v5212_v52 = vcombine.low %v1978_v12, %v1988_v45  ;;  %v1997_v36 = vrot.slane %v1996_v28, 4  ;;  %v2019_v43 = vrot.slane %v2017_v26, 5  ;;  %v7565_v7 = vld [vmem:[#allocation3 + $0x50] sm:$0x1] }
 0x21d   : > { %5982 = vmatprep.subr.bf16.mxu1 %v6513_v56  ;;  %v2025_v23 = vrot.slane %v2023_v17, 5  ;;  %v2007_v62 = vrot.slane %v2006_v29, 4  ;;  %v2033_v50 = vshll.u32 %v7520_v24, 16  ;;  %v2038_v54 = vshrl.u32 %v7524_v35, 16  ;;  %v7567_v28 = vld [vmem:[#allocation3 + $0x58] sm:$0xf] }
 0x21e   : > { %v2029_v57 = vrot.slane %v2027_v32, 4  ;;  %5968 = vmatprep.mubr.msk.bf16.mxu1 %vm2194_vm2, %v5212_v52  ;;  %v2002_v59 = vsel %vm6824_vm12, %v1997_v36, %v2001_v25  ;;  %v2020_v33 = vor.u32 %v2019_v43, %v2016_v0  ;;  %v2041_v27 = vshll.u32 %v7524_v35, 16  ;;  %v6516_v17 = vld [vmem:[%s8722_s3 + $0x20] sm:$0xff]  }
 0x21f   : > { %v2047_v20 = vshll.u32 %v7530_v10, 16  ;;  %v2012_v9 = vsel %vm6824_vm12, %v2007_v62, %v2011_v3  ;;  %v2035_v48 = vrot.slane %v2033_v50, 5  ;;  %v2040_v58 = vrot.slane %v2038_v54, 4  ;;  %v7576_v62 = vld [vmem:[#allocation3 + $0x5c] sm:$0x1] }
 0x220   : > { %5983 = vmatpush3.bf16.msra.mxu1 %v6513_v56  ;;  %v2030_v60 = vor.u32 %v2029_v57, %v2025_v23  ;;  %v5213_v41 = vcombine.low %v2002_v59, %v2012_v9  ;;  %v2021_v13 = vrot.slane %v2020_v33, 4  ;;  %v2043_v15 = vrot.slane %v2041_v27, 5 }
 0x221   : > { %5984 = vmatprep.subr.bf16.mxu1 %v6514_v2  ;;  %v2049_v44 = vrot.slane %v2047_v20, 5  ;;  %v2051_v61 = vshrl.u32 %v7530_v10, 16  ;;  %v2057_v31 = vshll.u32 %v7540_v34, 16  ;;  %v2062_v37 = vshrl.u32 %v7544_v6, 16  ;;  %v6517_v20 = vld [vmem:[%s8722_s3 + $0x28] sm:$0xff]  }
 0x222   : > { %v2031_v22 = vrot.slane %v2030_v60, 4  ;;  %v2026_v56 = vsel %vm6824_vm12, %v2021_v13, %v2025_v23  ;;  %v2044_v16 = vor.u32 %v2043_v15, %v2040_v58  ;;  %v2065_v8 = vshll.u32 %v7544_v6, 16  ;;  %v6520_v15 = vld [vmem:[%s8722_s3 + $0x38] ss:$0 sps:$4 sm:$0xff]  }
 0x223   : > { %5969 = vmatmul.mubr.msk.bf16.gmra.mrb[4].mxu1 %vm2194_vm2, %v5213_v41  ;;  %v2071_v25 = vshll.u32 %v7548_v1, 16  ;;  %v2053_v3 = vrot.slane %v2051_v61, 4  ;;  %v2064_v12 = vrot.slane %v2062_v37, 4  ;;  %v2059_v29 = vrot.slane %v2057_v31, 5 }
 0x224   : > { %5985 = vmatpush3.bf16.msra.mxu1 %v6514_v2  ;;  %v2036_v4 = vsel %vm6824_vm12, %v2031_v22, %v2035_v48  ;;  %v2045_v45 = vrot.slane %v2044_v16, 4  ;;  %v2067_v0 = vrot.slane %v2065_v8, 5  ;;  %v2075_v2 = vshrl.u32 %v7548_v1, 16  ;;  %v2529_v8 = vld [vmem:[#allocation3] sm:$0xe] }
 0x225   : > { %5986 = vmatprep.subr.bf16.mxu1 %v6515_v38  ;;  %v5214_v26 = vcombine.low %v2026_v56, %v2036_v4  ;;  %v2054_v32 = vor.u32 %v2053_v3, %v2049_v44  ;;  %v2073_v52 = vrot.slane %v2071_v25, 5  ;;  %v2086_v36 = vshrl.u32 %v7561_v14, 16  ;;  %v6518_v25 = vld [vmem:[%s8722_s3 + $0x30] sm:$0xff]  }
 0x226   : > { %v2068_v43 = vor.u32 %v2067_v0, %v2064_v12  ;;  %v2081_v23 = vshll.u32 %v7565_v7, 16  ;;  %v2089_v57 = vshll.u32 %v7561_v14, 16  ;;  %v2095_v50 = vshll.u32 %v7567_v28, 16  ;;  %v2530_v12 = vld [vmem:[#allocation3 + $0xc] sm:$0xe] }
 0x227   : > { %5972 = vmatprep.mubr.msk.bf16.mxu1 %vm2194_vm2, %v5214_v26  ;;  %v2050_v54 = vsel %vm6824_vm12, %v2045_v45, %v2049_v44  ;;  %v2055_v59 = vrot.slane %v2054_v32, 4  ;;  %v2077_v33 = vrot.slane %v2075_v2, 4  ;;  %v2088_v27 = vrot.slane %v2086_v36, 4  ;;  %v2531_v26 = vld [vmem:[#allocation3 + $0x18] sm:$0xe] }
 0x228   : > { %5987 = vmatpush3.bf16.msra.mxu1 %v6515_v38  ;;  %v2069_v9 = vrot.slane %v2068_v43, 4  ;;  %v2091_v60 = vrot.slane %v2089_v57, 5  ;;  %v2097_v48 = vrot.slane %v2095_v50, 5  ;;  %v2099_v58 = vshrl.u32 %v7567_v28, 16  ;;  %v2532_v43 = vld [vmem:[#allocation3 + $0x24] sm:$0xe] }
 0x229   : > { %5988 = vmatprep.subr.bf16.mxu1 %v6516_v17  ;;  %v2060_v41 = vsel %vm6824_vm12, %v2055_v59, %v2059_v29  ;;  %v2078_v38 = vor.u32 %v2077_v33, %v2073_v52  ;;  %v2105_v13 = vshll.u32 %v7576_v62, 16  ;;  %v2562_v31 = vrot.slane %v7462_v47, 5 }
 0x22a   : > { %v5215_v44 = vcombine.low %v2050_v54, %v2060_v41  ;;  %v2092_v22 = vor.u32 %v2091_v60, %v2088_v27  ;;  %v2101_v61 = vrot.slane %v2099_v58, 4  ;;  %v2074_v37 = vsel %vm6824_vm12, %v2069_v9, %v2073_v52 }
 0x22b   : > { %v2079_v56 = vrot.slane %v2078_v38, 4  ;;  %v2083_v16 = vrot.slane %v2081_v23, 5  ;;  %v2558_v45 = vrot.slane %v7451_v5, 5  ;;  %v2107_v29 = vrot.slane %v2105_v13, 5  ;;  %v2533_v38 = vld [vmem:[#allocation3 + $0x30] sm:$0xe] }
 0x22c   : > { %5989 = vmatpush3.bf16.msra.mxu1 %v6516_v17  ;;  %v2093_v4 = vrot.slane %v2092_v22, 4  ;;  %v2102_v3 = vor.u32 %v2101_v61, %v2097_v48  ;;  %v2430_v0 = vsel %vm2219_vm1, %v6520_v15, 0  ;;  %v5258_v36 = vrot.slane %v2529_v8, 9  ;;  %v6521_v22 = vld [vmem:[%s8722_s3 + $0x78] sm:$0xff]  }
 0x22d   : > { %5973 = vmatmul.mubr.msk.bf16.gmra.mrb[8].mxu1 %vm2194_vm2, %v5215_v44  ;;  %5990 = vmatprep.subr.bf16.mxu1 %v6517_v20  ;;  %v2084_v17 = vsel %vm6824_vm12, %v2079_v56, %v2083_v16  ;;  %v2555_v23 = vrot.slane %v7434_v30, 5  ;;  %v5259_v57 = vrot.slane %v2530_v12, 9  ;;  %v2564_v50 = vrot.slane %v2562_v31, 4  ;;  %v2534_v44 = vld [vmem:[#allocation3 + $0x3c] sm:$0xe] }
 0x22e   : > { %v5216_v32 = vcombine.low %v2074_v37, %v2084_v17  ;;  %v2098_v52 = vsel %vm6824_vm12, %v2093_v4, %v2097_v48  ;;  %v2103_v2 = vrot.slane %v2102_v3, 4  ;;  %v5260_v54 = vrot.slane %v2531_v26, 9 }
 0x22f   : > { %v2565_v5 = vrot.slane %v7466_v19, 5  ;;  %v5234_v33 = vcombine.low %v7424_v11, %v7434_v30  ;;  %v2569_v27 = vrot.slane %v7481_v21, 5  ;;  %v2572_v60 = vrot.slane %v7486_v53, 5 }
 0x230   : > { %5991 = vmatpush3.bf16.msra.mxu1 %v6517_v20  ;;  %5976 = vmatprep.mubr.msk.bf16.mxu1 %vm2194_vm2, %v5216_v32  ;;  %v2108_v59 = vsel %vm6824_vm12, %v2103_v2, %v2107_v29  ;;  %v2557_v20 = vrot.slane %v2555_v23, 4  ;;  %v5261_v48 = vrot.slane %v2532_v43, 9  ;;  %v7616_v58 = vsel %vm7011_vm15, %v5259_v57, %v2562_v31 }
 0x231   : > { %5992 = vmatprep.subr.bf16.mxu1 %v6518_v25  ;;  %v5217_v9 = vcombine.low %v2098_v52, %v2108_v59  ;;  %v7620_v19 = vsel %vm7011_vm15, %v2564_v50, %v2565_v5  ;;  %v2571_v42 = vrot.slane %v2569_v27, 4  ;;  %v2576_v41 = vrot.slane %v7496_v63, 5 }
 0x232   : > { %v7625_v11 = vsel %vm7011_vm15, %v5258_v36, %v2555_v23  ;;  %v7629_v30 = vsel %vm7011_vm15, %v2557_v20, %v2558_v45  ;;  %v5282_v53 = vcombine.low %v7616_v58, %v7620_v19  ;;  %v7635_v13 = vsel %vm7011_vm15, %v5260_v54, %v2569_v27 }
 0x233   : > { %v5281_v61 = vcombine.low %v7625_v11, %v7629_v30  ;;  %v7646_v31 = vsel %vm7011_vm15, %v2571_v42, %v2572_v60  ;;  %v2578_v37 = vrot.slane %v2576_v41, 4  ;;  %v2579_v56 = vrot.slane %v7498_v18, 5  ;;  %v2536_v18 = vld [vmem:[#allocation3 + $0x54] sm:$0xe] }
 0x234   : > { %5993 = vmatpush3.bf16.msra.mxu1 %v6518_v25  ;;  %v5283_v16 = vcombine.low %v7635_v13, %v7646_v31  ;;  %v2583_v8 = vrot.slane %v7511_v46, 5  ;;  %v7655_v25 = vsel %vm7011_vm15, %v5261_v48, %v2576_v41  ;;  %v5263_v3 = vrot.slane %v2534_v44, 9 }
 0x235   : > { %5977 = vmatmul.mubr.msk.bf16.gmra.mrb[12].mxu1 %vm2194_vm2, %v5217_v9  ;;  %6397 = vmatprep.subr.msk.bf16.mxu1 %vm2219_vm1, %v6520_v15  ;;  %v5262_v15 = vrot.slane %v2533_v38, 9  ;;  %v7659_v4 = vsel %vm7011_vm15, %v2578_v37, %v2579_v56  ;;  %v2590_v12 = vrot.slane %v7530_v10, 5  ;;  %v2586_v17 = vrot.slane %v7520_v24, 5  ;;  %v6524_v24 = vld [vmem:[%s8722_s3 + $0x80] sm:$0xff]   ;;  %v6529_v9 = vld [vmem:[%s8722_s3 + $0x98] sm:$0xff]  }
 0x236   : > { %5996 = vmatprep.mubr.msk.bf16.mxu1 %vm2194_vm2, %v5234_v33  ;;  %v5284_v26 = vcombine.low %v7655_v25, %v7659_v4  ;;  %v2585_v45 = vrot.slane %v2583_v8, 4  ;;  %v2593_v32 = vrot.slane %v7540_v34, 5  ;;  %v5265_v36 = vrot.slane %v2536_v18, 9  ;;  %v6528_v33 = vld [vmem:[%s8722_s3 + $0x90] sm:$0xff]  }
 0x237   : > { %v2592_v29 = vrot.slane %v2590_v12, 4  ;;  %v2584_v52 = vsel %vm7011_vm15, %v5262_v15, %v2583_v8  ;;  %v2604_v43 = vrot.slane %v7567_v28, 5  ;;  %v2591_v34 = vsel %vm7011_vm15, %v5263_v3, %v2590_v12 }
 0x238   : > { %5995 = vmatpush3.bf16.msra.mxu1 %v2430_v0  ;;  %v2587_v2 = vsel %vm7011_vm15, %v2585_v45, %v2586_v17  ;;  %v5235_v0 = vcombine.low %v7455_v40, %v7462_v47  ;;  %v5236_v50 = vcombine.low %v7476_v51, %v7481_v21  ;;  %v2607_v59 = vrot.slane %v7576_v62, 5  ;;  %v6525_v51 = vld [vmem:[%s8722_s3 + $0x88] sm:$0xff]   ;;  %v6536_v17 = vld [vmem:[%s8724_s5 + $0x38] sm:$0xff]  }
 0x239   : > { %6012 = vmatprep.subr.bf16.mxu1 %v6521_v22  ;;  %v5285_v23 = vcombine.low %v2584_v52, %v2587_v2  ;;  %v2594_v57 = vsel %vm7011_vm15, %v2592_v29, %v2593_v32  ;;  %v2606_v5 = vrot.slane %v2604_v43, 4  ;;  %v2605_v40 = vsel %vm7011_vm15, %v5265_v36, %v2604_v43 }
 0x23a   : > { %v5286_v54 = vcombine.low %v2591_v34, %v2594_v57  ;;  %v5237_v62 = vcombine.low %v7488_v49, %v7496_v63  ;;  %v5238_v27 = vcombine.low %v7505_v39, %v7511_v46  ;;  %v5239_v49 = vcombine.low %v7524_v35, %v7530_v10  ;;  %v6532_v63 = vld [vmem:[%s8722_s3 + $0xa0] sm:$0xff]   ;;  %v6533_v46 = vld [vmem:[%s8722_s3 + $0xa8] sm:$0xff]   ;;  %v6535_v10 = vld [vmem:[%s8722_s3 + $0xb0] ss:$0 sps:$4 sm:$0xff]  }
 0x23b   : > { %v2608_v47 = vsel %vm7011_vm15, %v2606_v5, %v2607_v59  ;;  %v5240_v39 = vcombine.low %v7544_v6, %v7548_v1  ;;  %v5241_v35 = vcombine.low %v7561_v14, %v7567_v28  ;;  %v2719_v6 = vsel %vm2219_vm1, %v6535_v10, 0  ;;  %v2535_v28 = vld [vmem:[#allocation3 + $0x48] sm:$0xe]  ;;  %v6538_v5 = vld [vmem:[%s8724_s5 + $0x40] sm:$0xff]  }
 0x23c   : > { %v5288_v21 = vcombine.low %v2605_v40, %v2608_v47  ;;  %v2597_v14 = vrot.slane %v7548_v1, 5  ;;  %v5264_v60 = vrot.slane %v2535_v28, 9  ;;  %v2600_v48 = vrot.slane %v7565_v7, 5  ;;  %v7750_v1 = vld [vmem:[%s8723_s4] ss:$0 sm:$0xff] }
 0x23d   : > { %5997 = vmatmul.mubr.msk.bf16.vlgmr.msra.gmra.mrb[0].mxu1 %vm2194_vm2, %v5235_v0  ;;  %v6658_v52 = vmov 0.0   ;;  %vm6659_vm7 = vmmov 0   ;;  %vm3033_vm12 = vcmask 1044484  }
 0x23e   : > { %6013 = vmatpush3.bf16.msra.mxu1 %v6521_v22  ;;  %6000 = vmatprep.mubr.msk.bf16.mxu1 %vm2194_vm2, %v5236_v50  ;;  %v2599_v20 = vrot.slane %v2597_v14, 4  ;;  %v2598_v19 = vsel %vm7011_vm15, %v5264_v60, %v2597_v14  ;;  %v6541_v14 = vld [vmem:[%s8724_s5 + $0x10] sm:$0xff]  }
 0x23f   : > { %6014 = vmatprep.subr.bf16.mxu1 %v6524_v24  ;;  %6044 = vmatprep.subr.bf16.mxu0 %v6658_v52 }
 0x240   : > { %v2601_v58 = vsel %vm7011_vm15, %v2599_v20, %v2600_v48  ;;  %6045 = vmatpush3.bf16.msra.mxu0 %v6536_v17  ;;  %6058 = vmatprep.mubr.msk.bf16.mxu0 %vm6659_vm7, %v6658_v52  ;;  %v6542_v48 = vld [vmem:[%s8724_s5 + $0x50] sm:$0xff]   ;;  %vm3042_vm15 = vcmask 1047559  }
 0x241   : > { %v5287_v42 = vcombine.low %v2598_v19, %v2601_v58  ;;  %6046 = vmatprep.subr.bf16.mxu0 %v6658_v52 }
 0x242   : > { %6015 = vmatpush3.bf16.msra.mxu1 %v6524_v24 }
 0x243   : > { %6016 = vmatprep.subr.bf16.mxu1 %v6525_v51 }
 0x244   : > { %6047 = vmatpush3.bf16.msra.mxu0 %v6538_v5 }
 0x245   : > { %6001 = vmatmul.mubr.msk.bf16.gmra.mrb[4].mxu1 %vm2194_vm2, %v5237_v62  ;;  %6048 = vmatprep.subr.bf16.mxu0 %v6658_v52 }
 0x246   : > { %6017 = vmatpush3.bf16.msra.mxu1 %v6525_v51  ;;  %6004 = vmatprep.mubr.msk.bf16.mxu1 %vm2194_vm2, %v5238_v27  ;;  %v6539_v51 = vld [vmem:[%s8724_s5 + $0x8] sm:$0xff]  }
 0x247   : > { %6018 = vmatprep.subr.bf16.mxu1 %v6528_v33 }
 0x24a   : > { %6019 = vmatpush3.bf16.msra.mxu1 %v6528_v33 }
 0x24b   : > { %6020 = vmatprep.subr.bf16.mxu1 %v6529_v9 }
 0x24d   : > { %6005 = vmatmul.mubr.msk.bf16.gmra.mrb[8].mxu1 %vm2194_vm2, %v5239_v49 }
 0x24e   : > { %6021 = vmatpush3.bf16.msra.mxu1 %v6529_v9  ;;  %6008 = vmatprep.mubr.msk.bf16.mxu1 %vm2194_vm2, %v5240_v39 }
 0x24f   : > { %6022 = vmatprep.subr.bf16.mxu1 %v6532_v63 }
 0x252   : > { %6023 = vmatpush3.bf16.msra.mxu1 %v6532_v63 }
 0x253   : > { %6024 = vmatprep.subr.bf16.mxu1 %v6533_v46 }
 0x255   : > { %6009 = vmatmul.mubr.msk.bf16.gmra.mrb[12].mxu1 %vm2194_vm2, %v5241_v35 }
 0x256   : > { %6025 = vmatpush3.bf16.msra.mxu1 %v6533_v46  ;;  %6028 = vmatprep.mubr.msk.bf16.mxu1 %vm2194_vm2, %v5281_v61 }
 0x257   : > { %6398 = vmatprep.subr.msk.bf16.mxu1 %vm2219_vm1, %v6535_v10 }
 0x25a   : > { %6027 = vmatpush3.bf16.msra.mxu1 %v2719_v6  ;;  %v6540_v6 = vld [vmem:[%s8724_s5 + $0x48] sm:$0xff]  }
 0x25b   : > { %6062 = vmatprep.subr.bf16.mxu1 %v6658_v52  ;;  %6049 = vmatpush3.bf16.msra.mxu0 %v6540_v6 }
 0x25c   : > { %6050 = vmatprep.subr.bf16.mxu0 %v6658_v52 }
 0x25d   : > { %6029 = vmatmul.mubr.msk.bf16.vlgmr.msra.gmra.mrb[0].mxu1 %vm2194_vm2, %v5282_v53 }
 0x25e   : > { %6032 = vmatprep.mubr.msk.bf16.mxu1 %vm2194_vm2, %v5283_v16 }
 0x25f   : > { %6051 = vmatpush3.bf16.msra.mxu0 %v6542_v48 }
 0x260   : > { %6052 = vmatprep.subr.bf16.mxu0 %v6658_v52 }
 0x265   : > { %6033 = vmatmul.mubr.msk.bf16.gmra.mrb[4].mxu1 %vm2194_vm2, %v5284_v26 }
 0x266   : > { %6036 = vmatprep.mubr.msk.bf16.mxu1 %vm2194_vm2, %v5285_v23 }
 0x26d   : > { %6037 = vmatmul.mubr.msk.bf16.gmra.mrb[8].mxu1 %vm2194_vm2, %v5286_v54  ;;  %v6537_v54 = vld [vmem:[%s8724_s5] sm:$0xff]  }
 0x26e   : > { %6040 = vmatprep.mubr.msk.bf16.mxu1 %vm2194_vm2, %v5287_v42  ;;  %6063 = vmatpush3.bf16.msra.mxu1 %v6537_v54  ;;  %v6543_v42 = vld [vmem:[%s8724_s5 + $0x18] sm:$0xff]  }
 0x26f   : > { %6064 = vmatprep.subr.bf16.mxu1 %v6658_v52 }
 0x272   : > { %6065 = vmatpush3.bf16.msra.mxu1 %v6539_v51 }
 0x273   : > { %6066 = vmatprep.subr.bf16.mxu1 %v6658_v52 }
 0x275   : > { %6041 = vmatmul.mubr.msk.bf16.gmra.mrb[12].mxu1 %vm2194_vm2, %v5288_v21 }
 0x276   : > { %6076 = vmatprep.mubr.msk.bf16.mxu1 %vm6659_vm7, %v6658_v52  ;;  %6067 = vmatpush3.bf16.msra.mxu1 %v6541_v14 }
 0x277   : > { %6068 = vmatprep.subr.bf16.mxu1 %v6658_v52 }
 0x27a   : > { %6069 = vmatpush3.bf16.msra.mxu1 %v6543_v42 }
 0x27b   : > { %6070 = vmatprep.subr.bf16.mxu1 %v6658_v52 }
 0x330   : > { %v6030_v41 = vpop.f32.mrb[0].mxu1 }
 0x331   : > { %v7753_v7 = vadd.f32 %v6030_v41, %v7750_v1  ;;  %v2755_v38 = vpop.f32.mrb[1].mxu1 }
 0x332   : > { %v6031_v11 = vpop.f32.mrb[2].mxu1  ;;  %v7763_v44 = vadd.f32 %v7750_v1, %v2755_v38  ;;  %v6544_v38 = vld [vmem:[%s8724_s5 + $0x58] sm:$0xff]  }
 0x333   : > { %v7756_v55 = vadd.f32 %v6031_v11, %v7750_v1  ;;  %v2758_v30 = vpop.f32.mrb[3].mxu1  ;;  %v2859_v13 = vmax.f32 %v7753_v7, 0.0  ;;  %v6545_v11 = vld [vmem:[%s8724_s5 + $0x20] sm:$0xff]   ;;  %6053 = vmatpush3.bf16.msra.mxu0 %v6544_v38 }
 0x334   : > { %v7759_v53 = vadd.f32 %v7750_v1, %v2758_v30  ;;  %v2857_v56 = vmax.f32 %v7763_v44, 0.0  ;;  %v6546_v30 = vld [vmem:[%s8724_s5 + $0x60] sm:$0xff]   ;;  %6071 = vmatpush3.bf16.msra.mxu1 %v6545_v11  ;;  %6054 = vmatprep.subr.bf16.mxu0 %v6658_v52 }
 0x335   : > { %v2860_v22 = vmax.f32 %v7756_v55, 0.0  ;;  %6072 = vmatprep.subr.bf16.mxu1 %v6658_v52 }
 0x336   : > { %v2858_v31 = vmax.f32 %v7759_v53, 0.0 }
 0x337   : > { %v6451_v61 = vpack.i.bf16 %v2860_v22, %v2859_v13  ;;  %6055 = vmatpush3.bf16.msra.mxu0 %v6546_v30 }
 0x338   : > { %v6034_v37 = vpop.f32.mrb[4].mxu1  ;;  %v6456_v25 = vpack.i.bf16 %v2858_v31, %v2857_v56  ;;  %6056 = vmatprep.subr.bf16.mxu0 %v6658_v52 }
 0x339   : > { %v7773_v16 = vadd.f32 %v6034_v37, %v7750_v1  ;;  %6452 = vrot.lane.b32.xlu0 %v6451_v61, %s6657_s22  ;;  %v2771_v15 = vpop.f32.mrb[5].mxu1  ;;  %v6547_v61 = vld [vmem:[%s8724_s5 + $0x28] sm:$0xff]  }
 0x33a   : > { %v6035_v8 = vpop.f32.mrb[6].mxu1  ;;  %v7788_v26 = vadd.f32 %v7750_v1, %v2771_v15  ;;  %v6548_v37 = vld [vmem:[%s8724_s5 + $0x68] sm:$0xff]   ;;  %6073 = vmatpush3.bf16.msra.mxu1 %v6547_v61  ;;  %v6549_v15 = vld [vmem:[%s8724_s5 + $0x30] sm:$0xff]  }
 0x33b   : > { %v7781_v4 = vadd.f32 %v6035_v8, %v7750_v1  ;;  %v2774_v3 = vpop.f32.mrb[7].mxu1  ;;  %v2863_v18 = vmax.f32 %v7773_v16, 0.0  ;;  %6074 = vmatprep.subr.bf16.mxu1 %v6658_v52  ;;  %6057 = vmatpush3.bf16.msra.mxu0 %v6548_v37 }
 0x33c   : > { %v7784_v12 = vadd.f32 %v7750_v1, %v2774_v3  ;;  %v2861_v36 = vmax.f32 %v7788_v26, 0.0  ;;  %6080 = vmatprep.subr.bf16.mxu0 %v6658_v52 }
 0x33d   : > { %v2864_v45 = vmax.f32 %v7781_v4, 0.0  ;;  %6457 = vrot.lane.b32.xlu0 %v6456_v25, %s6657_s22 }
 0x33e   : > { %v2862_v32 = vmax.f32 %v7784_v12, 0.0  ;;  %6075 = vmatpush3.bf16.msra.mxu1 %v6549_v15 }
 0x33f   : > { %v6461_v29 = vpack.i.bf16 %v2864_v45, %v2863_v18  ;;  %6098 = vmatprep.subr.bf16.mxu1 %v6658_v52 }
 0x340   : > { %v6038_v2 = vpop.f32.mrb[8].mxu1  ;;  %v6466_v34 = vpack.i.bf16 %v2862_v32, %v2861_v36 }
 0x341   : > { %v7804_v43 = vadd.f32 %v6038_v2, %v7750_v1  ;;  %6462 = vrot.lane.b32.xlu1 %v6461_v29, %s6657_s22  ;;  %v2787_v0 = vpop.f32.mrb[9].mxu1 }
 0x342   : > { %v7809_v24 = vadd.f32 %v7750_v1, %v2787_v0  ;;  %v6039_v23 = vpop.f32.mrb[10].mxu1 }
 0x343   : > { %v7816_v57 = vadd.f32 %v6039_v23, %v7750_v1  ;;  %v2790_v50 = vpop.f32.mrb[11].mxu1  ;;  %v2867_v40 = vmax.f32 %v7804_v43, 0.0 }
 0x344   : > { %v7825_v59 = vadd.f32 %v7750_v1, %v2790_v50  ;;  %v2865_v21 = vmax.f32 %v7809_v24, 0.0 }
 0x345   : > { %v2868_v47 = vmax.f32 %v7816_v57, 0.0  ;;  %6467 = vrot.lane.b32.xlu1 %v6466_v34, %s6657_s22 }
 0x346   : > { %v2866_v62 = vmax.f32 %v7825_v59, 0.0 }
 0x347   : > { %v6471_v33 = vpack.i.bf16 %v2868_v47, %v2867_v40 }
 0x348   : > { %v6476_v27 = vpack.i.bf16 %v2866_v62, %v2865_v21  ;;  %v6042_v9 = vpop.f32.mrb[12].mxu1 }
 0x349   : > { %v7846_v49 = vadd.f32 %v6042_v9, %v7750_v1  ;;  %6472 = vrot.lane.b32.xlu1 %v6471_v33, %s6657_s22  ;;  %v2803_v63 = vpop.f32.mrb[13].mxu1 }
 0x34a   : > { %v7850_v39 = vadd.f32 %v7750_v1, %v2803_v63  ;;  %6477 = vrot.lane.b32.xlu0 %v6476_v27, %s6657_s22  ;;  %v6043_v46 = vpop.f32.mrb[14].mxu1 }
 0x34b   : > { %v7855_v35 = vadd.f32 %v6043_v46, %v7750_v1  ;;  %v2806_v10 = vpop.f32.mrb[15].mxu1  ;;  %v2871_v20 = vmax.f32 %v7846_v49, 0.0 }
 0x34c   : > { %v7864_v28 = vadd.f32 %v7750_v1, %v2806_v10  ;;  %v2869_v58 = vmax.f32 %v7850_v39, 0.0 }
 0x34d   : > { %v2872_v60 = vmax.f32 %v7855_v35, 0.0 }
 0x34e   : > { %v2870_v19 = vmax.f32 %v7864_v28, 0.0 }
 0x34f   : > { %v6486_v1 = vpack.i.bf16 %v2872_v60, %v2871_v20 }
 0x350   : > { %v6481_v41 = vpack.i.bf16 %v2870_v19, %v2869_v58 }
 0x351   : > { %6487 = vrot.lane.b32.xlu1 %v6486_v1, %s6657_s22 }
 0x352   : > { %6482 = vrot.lane.b32.xlu0 %v6481_v41, %s6657_s22 }
 0x3ab   : > { %v6453_v8 = vpop.permute.xlu0 %6452 }
 0x3ac   : > { %v6455_v25 = vunpack.i.h.bf16 %v6453_v8  ;;  %v6454_v3 = vunpack.i.l.bf16 %v6453_v8 }
 0x3ae   : > { %v2940_v17 = vmax.f32 %v2860_v22, %v6455_v25  ;;  %v2939_v29 = vmax.f32 %v2859_v13, %v6454_v3 }
 0x3af   : > { %v6458_v2 = vpop.permute.xlu0 %6457 }
 0x3b0   : > { %v2954_v0 = vpack.c.bf16 %v2940_v17, %v2939_v29  ;;  %v6460_v23 = vunpack.i.h.bf16 %v6458_v2  ;;  %v6459_v34 = vunpack.i.l.bf16 %v6458_v2 }
 0x3b2   : > { %2963 = vst.msk [vmem:[#allocation4 + $0x8] sm:$0xff] %vm2961_vm8, %v2954_v0  ;;  %v2938_v50 = vmax.f32 %v2858_v31, %v6460_v23  ;;  %v2937_v54 = vmax.f32 %v2857_v56, %v6459_v34 }
 0x3b3   : > { %v6463_v5 = vpop.permute.xlu1 %6462 }
 0x3b4   : > { %v2953_v51 = vpack.c.bf16 %v2938_v50, %v2937_v54  ;;  %v6465_v55 = vunpack.i.h.bf16 %v6463_v5  ;;  %v6464_v22 = vunpack.i.l.bf16 %v6463_v5 }
 0x3b6   : > { %2962 = vst.msk [vmem:[#allocation4] sm:$0xff] %vm2961_vm8, %v2953_v51  ;;  %v2944_v7 = vmax.f32 %v2864_v45, %v6465_v55  ;;  %v2943_v13 = vmax.f32 %v2863_v18, %v6464_v22 }
 0x3b7   : > { %v6468_v33 = vpop.permute.xlu1 %6467 }
 0x3b8   : > { %v2956_v27 = vpack.c.bf16 %v2944_v7, %v2943_v13  ;;  %v6470_v9 = vunpack.i.h.bf16 %v6468_v33  ;;  %v6469_v53 = vunpack.i.l.bf16 %v6468_v33 }
 0x3b9   : > { %v2971_v12 = vld [vmem:[#allocation4 + $0x8] sm:$0x1]  ;;  %v7946_v1 = vld [vmem:[#allocation4 + $0x8] sm:$0x4]  ;;  %v7948_v41 = vld [vmem:[#allocation4 + $0x8] sm:$0x8] }
 0x3ba   : > { %2965 = vst.msk [vmem:[#allocation4 + $0x18] sm:$0xff] %vm2961_vm8, %v2956_v27  ;;  %v2942_v44 = vmax.f32 %v2862_v32, %v6470_v9  ;;  %v2941_v31 = vmax.f32 %v2861_v36, %v6469_v53  ;;  %v3231_v32 = vld [vmem:[#allocation4 + $0x8] sm:$0x2]  ;;  %v3774_v11 = vunpack.c.l.b16 %v7948_v41 }
 0x3bb   : > { %v6473_v56 = vpop.permute.xlu1 %6472  ;;  %v3262_v38 = vunpack.c.l.b16 %v3231_v32 }
 0x3bc   : > { %v2955_v63 = vpack.c.bf16 %v2942_v44, %v2941_v31  ;;  %v6475_v46 = vunpack.i.h.bf16 %v6473_v56  ;;  %v6474_v4 = vunpack.i.l.bf16 %v6473_v56  ;;  %v6478_v45 = vpop.permute.xlu0 %6477 }
 0x3bd   : > { %v6480_v10 = vunpack.i.h.bf16 %v6478_v45  ;;  %v6479_v16 = vunpack.i.l.bf16 %v6478_v45  ;;  %v2970_v14 = vld [vmem:[#allocation4] sm:$0x1]  ;;  %v3230_v42 = vld [vmem:[#allocation4] sm:$0x2]  ;;  %v7950_v43 = vld [vmem:[#allocation4] sm:$0x4] }
 0x3be   : > { %2964 = vst.msk [vmem:[#allocation4 + $0x10] sm:$0xff] %vm2961_vm8, %v2955_v63  ;;  %v2948_v18 = vmax.f32 %v2868_v47, %v6475_v46  ;;  %v2947_v6 = vmax.f32 %v2867_v40, %v6474_v4  ;;  %v3016_v47 = vunpack.c.l.b16 %v2971_v12  ;;  %v7952_v40 = vld [vmem:[#allocation4 + $0x8] sm:$0x10]  ;;  %v3015_v59 = vunpack.c.l.b16 %v2970_v14  ;;  %v7964_v5 = vld [vmem:[#allocation4] sm:$0x8] }
 0x3bf   : > { %v2946_v26 = vmax.f32 %v2866_v62, %v6480_v10  ;;  %v2945_v36 = vmax.f32 %v2865_v21, %v6479_v16  ;;  %v3261_v21 = vunpack.c.l.b16 %v3230_v42  ;;  %v3518_v62 = vunpack.c.l.b16 %v7946_v1 }
 0x3c0   : > { %v2958_v48 = vpack.c.bf16 %v2948_v18, %v2947_v6  ;;  %v3517_v15 = vunpack.c.l.b16 %v7950_v43  ;;  %v4030_v8 = vunpack.c.h.b16 %v7952_v40  ;;  %v3130_v29 = vrot.slane %v3016_v47, 7 }
 0x3c1   : > { %v2957_v57 = vpack.c.bf16 %v2946_v26, %v2945_v36  ;;  %v3270_v2 = vrot.slane %v3262_v38, 1  ;;  %v3023_v50 = vrot.slane %v3015_v59, 1  ;;  %v2973_v22 = vld [vmem:[#allocation4 + $0x18] sm:$0x1]  ;;  %v7970_v7 = vld [vmem:[#allocation4 + $0x18] sm:$0x2]  ;;  %v3773_v4 = vunpack.c.l.b16 %v7964_v5 }
 0x3c2   : > { %2967 = vst.msk [vmem:[#allocation4 + $0x28] sm:$0xff] %vm2961_vm8, %v2958_v48  ;;  %v3269_v13 = vrot.slane %v3261_v21, 2  ;;  %v3385_v35 = vrot.slane %v3261_v21, 3  ;;  %v3386_v33 = vrot.slane %v3262_v38, 2  ;;  %v3525_v49 = vrot.slane %v3517_v15, 4 }
 0x3c3   : > { %2966 = vst.msk [vmem:[#allocation4 + $0x20] sm:$0xff] %vm2961_vm8, %v2957_v57  ;;  %v6488_v24 = vpop.permute.xlu1 %6487  ;;  %v3131_v53 = vsel %vm3024_vm9, %v3130_v29, %v3015_v59  ;;  %v7977_v39 = vld [vmem:[#allocation4 + $0x18] sm:$0x4]  ;;  %v3018_v31 = vunpack.c.l.b16 %v2973_v22  ;;  %v3025_v56 = vsel %vm3024_vm9, %v3016_v47, %v3023_v50  ;;  %v3264_v46 = vunpack.c.l.b16 %v7970_v7 }
 0x3c4   : > { %v6490_v30 = vunpack.i.h.bf16 %v6488_v24  ;;  %v6489_v61 = vunpack.i.l.bf16 %v6488_v24  ;;  %v6483_v37 = vpop.permute.xlu0 %6482  ;;  %v3271_v18 = vsel %vm3024_vm9, %v3270_v2, %v3269_v13  ;;  %v3387_v6 = vsel %vm3024_vm9, %v3386_v33, %v3385_v35 }
 0x3c5   : > { %v6485_v25 = vunpack.i.h.bf16 %v6483_v37  ;;  %v6484_v3 = vunpack.i.l.bf16 %v6483_v37  ;;  %v2972_v17 = vld [vmem:[#allocation4 + $0x10] sm:$0x1]  ;;  %v3232_v54 = vld [vmem:[#allocation4 + $0x10] sm:$0x2]  ;;  %v3520_v32 = vunpack.c.l.b16 %v7977_v39  ;;  %v7989_v36 = vrot.slane %v3517_v15, 5 }
 0x3c6   : > { %v2952_v0 = vmax.f32 %v2872_v60, %v6490_v30  ;;  %v2951_v23 = vmax.f32 %v2871_v20, %v6489_v61  ;;  %v3017_v34 = vunpack.c.l.b16 %v2972_v17  ;;  %v3526_v20 = vrot.slane %v3518_v62, 3 }
 0x3c7   : > { %v2950_v51 = vmax.f32 %v2870_v19, %v6485_v25  ;;  %v2949_v55 = vmax.f32 %v2869_v58, %v6484_v3  ;;  %v3263_v28 = vunpack.c.l.b16 %v3232_v54  ;;  %v7975_v19 = vld [vmem:[#allocation4 + $0x10] sm:$0x4]  ;;  %v3029_v38 = vrot.slane %v3018_v31, 6 }
 0x3c8   : > { %v2960_v60 = vpack.c.bf16 %v2952_v0, %v2951_v23  ;;  %v3026_v9 = vrot.slane %v3017_v34, 7  ;;  %v3132_v10 = vrot.slane %v3017_v34, 6  ;;  %v3519_v12 = vunpack.c.l.b16 %v7975_v19 }
 0x3c9   : > { %v2959_v27 = vpack.c.bf16 %v2950_v51, %v2949_v55  ;;  %v2975_v44 = vld [vmem:[#allocation4 + $0x28] sm:$0x1]  ;;  %v3235_v16 = vld [vmem:[#allocation4 + $0x28] sm:$0x2]  ;;  %v3527_v26 = vsel %vm3024_vm9, %v3526_v20, %v3525_v49  ;;  %v3272_v42 = vsel %vm3027_vm10, %v3263_v28, %v3271_v18  ;;  %v3388_v57 = vrot.slane %v3263_v28, 1 }
 0x3ca   : > { %2969 = vst.msk [vmem:[#allocation4 + $0x38] sm:$0xff] %vm2961_vm8, %v2960_v60  ;;  %v2974_v58 = vld [vmem:[#allocation4 + $0x20] sm:$0x1]  ;;  %v3234_v63 = vld [vmem:[#allocation4 + $0x20] sm:$0x2]  ;;  %v3020_v14 = vunpack.c.l.b16 %v2975_v44  ;;  %v3028_v47 = vsel %vm3027_vm10, %v3026_v9, %v3025_v56  ;;  %v3266_v43 = vunpack.c.l.b16 %v3235_v16  ;;  %v3273_v59 = vrot.slane %v3264_v46, 7 }
 0x3cb   : > { %2968 = vst.msk [vmem:[#allocation4 + $0x30] sm:$0xff] %vm2961_vm8, %v2959_v27  ;;  %v3019_v45 = vunpack.c.l.b16 %v2974_v58  ;;  %v3265_v48 = vunpack.c.l.b16 %v3234_v63  ;;  %v3133_v21 = vsel %vm3027_vm10, %v3132_v10, %v3131_v53  ;;  %v3134_v30 = vrot.slane %v3018_v31, 5  ;;  %v8003_v34 = vld [vmem:[#allocation4 + $0x20] sm:$0x4]  ;;  %v8009_v20 = vld [vmem:[#allocation4 + $0x28] sm:$0x4] }
 0x3cc   : > { %v3274_v37 = vsel %vm3030_vm11, %v3273_v59, %v3272_v42  ;;  %v3528_v15 = vrot.slane %v3519_v12, 2  ;;  %v3530_v25 = vrot.slane %v3520_v32, 1  ;;  %v3642_v3 = vrot.slane %v3518_v62, 4  ;;  %v6550_v16 = vld [vmem:[%s8724_s5 + $0x70] sm:$0xff]   ;;  %v3745_v59 = vld [vmem:[#allocation4 + $0x18] sm:$0x8] }
 0x3cd   : > { %v3032_v24 = vrot.slane %v3019_v45, 5  ;;  %v3136_v61 = vrot.slane %v3019_v45, 4  ;;  %v3031_v29 = vsel %vm3030_vm11, %v3029_v38, %v3028_v47  ;;  %v3035_v2 = vrot.slane %v3020_v14, 4 }
 0x3ce   : > { %v3275_v0 = vrot.slane %v3265_v48, 6  ;;  %v3389_v23 = vsel %vm3027_vm10, %v3388_v57, %v3387_v6  ;;  %v3135_v51 = vsel %vm3030_vm11, %v3134_v30, %v3133_v21  ;;  %v3138_v55 = vrot.slane %v3020_v14, 3  ;;  %v8025_v14 = vld [vmem:[#allocation4 + $0x10] sm:$0x8]  ;;  %v6551_v57 = vld [vmem:[%s8724_s5 + $0xa8] sm:$0xff]  }
 0x3cf   : > { %v3277_v7 = vrot.slane %v3266_v43, 5  ;;  %v3034_v1 = vsel %vm3033_vm12, %v3032_v24, %v3031_v29  ;;  %v3137_v62 = vsel %vm3033_vm12, %v3136_v61, %v3135_v51  ;;  %v3391_v35 = vrot.slane %v3265_v48, 7 }
 0x3d0   : > { %v3390_v33 = vsel %vm3030_vm11, %v3264_v46, %v3389_v23  ;;  %v3393_v49 = vrot.slane %v3266_v43, 6  ;;  %v3521_v27 = vunpack.c.l.b16 %v8003_v34  ;;  %v3276_v28 = vsel %vm3033_vm12, %v3275_v0, %v3274_v37  ;;  %v3746_v37 = vld [vmem:[#allocation4 + $0x20] sm:$0x8] }
 0x3d1   : > { %v2977_v17 = vld [vmem:[#allocation4 + $0x38] sm:$0x1]  ;;  %v3529_v58 = vsel %vm3027_vm10, %v3528_v15, %v3527_v26  ;;  %v3037_v44 = vsel %vm3036_vm13, %v3035_v2, %v3034_v1  ;;  %v3139_v56 = vsel %vm3036_vm13, %v3138_v55, %v3137_v62  ;;  %v3237_v45 = vld [vmem:[#allocation4 + $0x38] sm:$0x2]  ;;  %v3392_v18 = vsel %vm3033_vm12, %v3391_v35, %v3390_v33  ;;  %v8032_v38 = vld [vmem:[#allocation4 + $0x38] sm:$0x4] }
 0x3d2   : > { %v2976_v50 = vld [vmem:[#allocation4 + $0x30] sm:$0x1]  ;;  %v3022_v54 = vunpack.c.l.b16 %v2977_v17  ;;  %v3236_v22 = vld [vmem:[#allocation4 + $0x30] sm:$0x2]  ;;  %v8022_v6 = vld [vmem:[#allocation4 + $0x30] sm:$0x4]  ;;  %v3522_v26 = vunpack.c.l.b16 %v8009_v20  ;;  %v3531_v43 = vsel %vm3030_vm11, %v3530_v25, %v3529_v58  ;;  %v3268_v30 = vunpack.c.l.b16 %v3237_v45 }
 0x3d3   : > { %v3021_v13 = vunpack.c.l.b16 %v2976_v50  ;;  %v3267_v60 = vunpack.c.l.b16 %v3236_v22  ;;  %v3278_v61 = vsel %vm3036_vm13, %v3277_v7, %v3276_v28  ;;  %v3747_v15 = vld [vmem:[#allocation4 + $0x28] sm:$0x8]  ;;  %v3394_v17 = vsel %vm3036_vm13, %v3393_v49, %v3392_v18  ;;  %v8038_v0 = vld [vmem:[#allocation4 + $0x38] sm:$0x8]  ;;  %v6553_v22 = vld [vmem:[%s8724_s5 + $0xb0] sm:$0xff]  }
 0x3d4   : > { %v3041_v31 = vrot.slane %v3022_v54, 2  ;;  %v3142_v63 = vrot.slane %v3022_v54, 1  ;;  %v3523_v2 = vunpack.c.l.b16 %v8022_v6  ;;  %v3775_v23 = vunpack.c.l.b16 %v8025_v14  ;;  %v6552_v55 = vld [vmem:[%s8724_s5 + $0x78] sm:$0xff]   ;;  %v3748_v1 = vld [vmem:[#allocation4 + $0x30] sm:$0x8]  ;;  %v6554_v58 = vld [vmem:[%s8724_s5 + $0x80] sm:$0xff]  }
 0x3d5   : > { %v3038_v9 = vrot.slane %v3021_v13, 3  ;;  %v3140_v53 = vrot.slane %v3021_v13, 2  ;;  %v3279_v47 = vrot.slane %v3267_v60, 4  ;;  %v3395_v29 = vrot.slane %v3267_v60, 5  ;;  %v8090_v45 = vld [vmem:[#allocation4] sm:$0x10] }
 0x3d6   : > { %v3524_v25 = vunpack.c.l.b16 %v8032_v38  ;;  %v8047_v50 = vsel %vm3033_vm12, %v3521_v27, %v3531_v43  ;;  %v8051_v54 = vsel %vm3024_vm9, %v3642_v3, %v7989_v36  ;;  %v3776_v51 = vunpack.c.l.b16 %v3745_v59  ;;  %v4000_v59 = vld [vmem:[#allocation4 + $0x10] sm:$0x10] }
 0x3d7   : > { %v3040_v46 = vsel %vm3039_vm14, %v3038_v9, %v3037_v44  ;;  %v3141_v10 = vsel %vm3039_vm14, %v3140_v53, %v3139_v56  ;;  %v3280_v7 = vsel %vm3039_vm14, %v3279_v47, %v3278_v61  ;;  %v8062_v13 = vrot.slane %v3522_v26, 7  ;;  %v6576_v20 = vld [vmem:[%s8724_s5 + $0x110] sm:$0xff]  }
 0x3d8   : > { %v3043_v48 = vsel %vm3042_vm15, %v3041_v31, %v3040_v46  ;;  %v3143_v42 = vsel %vm3042_vm15, %v3142_v63, %v3141_v10  ;;  %v3777_v36 = vunpack.c.l.b16 %v3746_v37  ;;  %v3778_v3 = vunpack.c.l.b16 %v3747_v15  ;;  %v6555_v46 = vld [vmem:[%s8724_s5 + $0xb8] sm:$0xff]   ;;  %v4004_v15 = vld [vmem:[#allocation4 + $0x30] sm:$0x10] }
 0x3d9   : > { %v3044_v24 = vpack.c.b16 %v3043_v48, %v3043_v48  ;;  %v3144_v21 = vpack.c.b16 %v3143_v42, %v3143_v42  ;;  %v3281_v62 = vrot.slane %v3268_v30, 3  ;;  %v8066_v35 = vrot.slane %v3268_v30, 4  ;;  %v8100_v48 = vld [vmem:[#allocation4 + $0x18] sm:$0x10]  ;;  %v6578_v38 = vld [vmem:[%s8724_s5 + $0x150] sm:$0xff]  }
 0x3da   : > { %v3780_v60 = vunpack.c.l.b16 %v8038_v0  ;;  %v3781_v33 = vrot.slane %v3773_v4, 6  ;;  %v8076_v49 = vsel %vm3039_vm14, %v3395_v29, %v3394_v17  ;;  %v8080_v9 = vrot.slane %v3523_v2, 6  ;;  %v8111_v17 = vld [vmem:[#allocation4 + $0x38] sm:$0x10] }
 0x3db   : > { %6059 = vmatmul.mubr.msk.bf16.vlgmr.msra.gmra.mrb[16].mxu0 %vm2961_vm8, %v3044_v24  ;;  %6077 = vmatmul.mubr.msk.bf16.vlgmr.msra.gmra.mrb[16].mxu1 %vm2961_vm8, %v3144_v21  ;;  %v3782_v53 = vrot.slane %v3774_v11, 5  ;;  %v3784_v28 = vrot.slane %v3775_v23, 4  ;;  %v8088_v44 = vsel %vm3042_vm15, %v3281_v62, %v3280_v7  ;;  %v3779_v31 = vunpack.c.l.b16 %v3748_v1  ;;  %v4002_v24 = vld [vmem:[#allocation4 + $0x20] sm:$0x10]  ;;  %v4003_v21 = vld [vmem:[#allocation4 + $0x28] sm:$0x10] }
 0x3dc   : > { %6081 = vmatpush3.bf16.msra.mxu0 %v6550_v16  ;;  %6099 = vmatpush3.bf16.msra.mxu1 %v6551_v57  ;;  %v3786_v56 = vrot.slane %v3776_v51, 3  ;;  %v3788_v63 = vrot.slane %v3777_v36, 2  ;;  %v3790_v16 = vrot.slane %v3778_v3, 1  ;;  %v3897_v18 = vrot.slane %v3773_v4, 7 }
 0x3dd   : > { %6082 = vmatprep.subr.bf16.mxu0 %v6658_v52  ;;  %6100 = vmatprep.subr.bf16.mxu1 %v6658_v52  ;;  %v3783_v10 = vsel %vm3024_vm9, %v3782_v53, %v3781_v33  ;;  %v3898_v14 = vrot.slane %v3774_v11, 6  ;;  %v3793_v57 = vrot.slane %v3780_v60, 7  ;;  %v3900_v47 = vrot.slane %v3775_v23, 5  ;;  %v6556_v23 = vld [vmem:[%s8724_s5 + $0x88] sm:$0xff]  }
 0x3de   : > { %6094 = vmatprep.mubr.msk.bf16.mxu0 %vm6659_vm7, %v6658_v52  ;;  %6112 = vmatprep.mubr.msk.bf16.mxu1 %vm6659_vm7, %v6658_v52  ;;  %v3785_v42 = vsel %vm3027_vm10, %v3784_v28, %v3783_v10  ;;  %v3902_v43 = vrot.slane %v3776_v51, 4  ;;  %v3904_v41 = vrot.slane %v3777_v36, 3  ;;  %v3906_v11 = vrot.slane %v3778_v3, 2  ;;  %v6557_v51 = vld [vmem:[%s8724_s5 + $0xc0] sm:$0xff]   ;;  %v6558_v10 = vld [vmem:[%s8724_s5 + $0x90] sm:$0xff]  }
 0x3df   : > { %v3787_v5 = vsel %vm3030_vm11, %v3786_v56, %v3785_v42  ;;  %v3899_v4 = vsel %vm3024_vm9, %v3898_v14, %v3897_v18  ;;  %v3908_v37 = vrot.slane %v3779_v31, 1  ;;  %v4029_v29 = vunpack.c.h.b16 %v8090_v45 }
 0x3e0   : > { %6083 = vmatpush3.bf16.msra.mxu0 %v6552_v55  ;;  %6101 = vmatpush3.bf16.msra.mxu1 %v6553_v22  ;;  %v3789_v30 = vsel %vm3033_vm12, %v3788_v63, %v3787_v5  ;;  %v3901_v61 = vsel %vm3027_vm10, %v3900_v47, %v3899_v4  ;;  %v4031_v7 = vunpack.c.h.b16 %v4000_v59  ;;  %v4032_v1 = vunpack.c.h.b16 %v8100_v48  ;;  %v8157_v48 = vld [vmem:[#allocation4 + $0x8] sm:$0x20]  ;;  %v4254_v59 = vld [vmem:[#allocation4] sm:$0x20]  ;;  %v6560_v4 = vld [vmem:[%s8724_s5 + $0x98] sm:$0xff]  }
 0x3e1   : > { %6084 = vmatprep.subr.bf16.mxu0 %v6658_v52  ;;  %6102 = vmatprep.subr.bf16.mxu1 %v6658_v52  ;;  %v3791_v55 = vsel %vm3036_vm13, %v3790_v16, %v3789_v30  ;;  %v3903_v22 = vsel %vm3030_vm11, %v3902_v43, %v3901_v61  ;;  %v4033_v62 = vunpack.c.h.b16 %v4002_v24  ;;  %v4034_v33 = vunpack.c.h.b16 %v4003_v21  ;;  %v6559_v16 = vld [vmem:[%s8724_s5 + $0xc8] sm:$0xff]   ;;  %v4258_v30 = vld [vmem:[#allocation4 + $0x20] sm:$0x20]  ;;  %v6561_v61 = vld [vmem:[%s8724_s5 + $0xd0] sm:$0xff]  }
 0x3e2   : > { %v3792_v36 = vsel %vm3039_vm14, %v3779_v31, %v3791_v55  ;;  %v3905_v3 = vsel %vm3033_vm12, %v3904_v41, %v3903_v22  ;;  %v4036_v56 = vunpack.c.h.b16 %v8111_v17  ;;  %v8134_v63 = vrot.slane %v3519_v12, 3 }
 0x3e3   : > { %v8128_v53 = vsel %vm3042_vm15, %v3793_v57, %v3792_v36  ;;  %v3907_v28 = vsel %vm3036_vm13, %v3906_v11, %v3905_v3  ;;  %v4037_v31 = vrot.slane %v4030_v8, 7  ;;  %v3283_v19 = vpack.c.b16 %v8088_v44, %v8088_v44  ;;  %v4261_v36 = vld [vmem:[#allocation4 + $0x38] sm:$0x20]  ;;  %v6567_v44 = vld [vmem:[%s8724_s5 + $0x120] sm:$0xff]  }
 0x3e4   : > { %6085 = vmatpush3.bf16.msra.mxu0 %v6554_v58  ;;  %6103 = vmatpush3.bf16.msra.mxu1 %v6555_v46  ;;  %v4035_v58 = vunpack.c.h.b16 %v4004_v15  ;;  %v3909_v45 = vsel %vm3039_vm14, %v3908_v37, %v3907_v28  ;;  %v4039_v46 = vrot.slane %v4031_v7, 6  ;;  %v8150_v12 = vsel %vm3042_vm15, %v8066_v35, %v8076_v49 }
 0x3e5   : > { %6086 = vmatprep.subr.bf16.mxu0 %v6658_v52  ;;  %6104 = vmatprep.subr.bf16.mxu1 %v6658_v52  ;;  %v8155_v18 = vsel %vm3042_vm15, %v3780_v60, %v3909_v45  ;;  %v4043_v14 = vrot.slane %v4033_v62, 4  ;;  %v4038_v42 = vsel %vm3024_vm9, %v4037_v31, %v4029_v29  ;;  %v4041_v57 = vrot.slane %v4032_v1, 5  ;;  %v8163_v60 = vld [vmem:[#allocation4 + $0x18] sm:$0x20] }
 0x3e6   : > { %v4045_v47 = vrot.slane %v4034_v33, 3  ;;  %v4047_v43 = vrot.slane %v4035_v58, 2  ;;  %v4040_v35 = vsel %vm3027_vm10, %v4039_v46, %v4038_v42  ;;  %v4049_v49 = vrot.slane %v4036_v56, 1  ;;  %v6563_v46 = vld [vmem:[%s8724_s5 + $0xd8] sm:$0xff]  }
 0x3e7   : > { %v4153_v0 = vrot.slane %v4029_v29, 1  ;;  %v4155_v5 = vrot.slane %v4031_v7, 7  ;;  %v4042_v41 = vsel %vm3030_vm11, %v4041_v57, %v4040_v35  ;;  %v4157_v11 = vrot.slane %v4032_v1, 6  ;;  %v4259_v29 = vld [vmem:[#allocation4 + $0x28] sm:$0x20] }
 0x3e8   : > { %6087 = vmatpush3.bf16.msra.mxu0 %v6556_v23  ;;  %6105 = vmatpush3.bf16.msra.mxu1 %v6557_v51  ;;  %v4159_v24 = vrot.slane %v4033_v62, 5  ;;  %v4161_v21 = vrot.slane %v4034_v33, 4  ;;  %v4044_v37 = vsel %vm3033_vm12, %v4043_v14, %v4042_v41  ;;  %v4163_v17 = vrot.slane %v4035_v58, 3  ;;  %v4260_v23 = vld [vmem:[#allocation4 + $0x30] sm:$0x20] }
 0x3e9   : > { %6088 = vmatprep.subr.bf16.mxu0 %v6658_v52  ;;  %6106 = vmatprep.subr.bf16.mxu1 %v6658_v52  ;;  %v4154_v15 = vsel %vm3024_vm9, %v4030_v8, %v4153_v0  ;;  %v4285_v51 = vunpack.c.h.b16 %v4254_v59  ;;  %v4046_v55 = vsel %vm3036_vm13, %v4045_v47, %v4044_v37  ;;  %v4165_v7 = vrot.slane %v4036_v56, 2  ;;  %v4256_v1 = vld [vmem:[#allocation4 + $0x10] sm:$0x20]  ;;  %v6562_v56 = vld [vmem:[%s8724_s5 + $0xa0] sm:$0xff]   ;;  %v4512_v37 = vld [vmem:[#allocation4 + $0x10] sm:$0x40] }
 0x3ea   : > { %v4156_v22 = vsel %vm3027_vm10, %v4155_v5, %v4154_v15  ;;  %v4286_v3 = vunpack.c.h.b16 %v8157_v48  ;;  %v4048_v40 = vsel %vm3039_vm14, %v4047_v43, %v4046_v55  ;;  %v4288_v62 = vunpack.c.h.b16 %v8163_v60  ;;  %v8208_v5 = vld [vmem:[#allocation4 + $0x8] sm:$0x40]  ;;  %v8214_v41 = vld [vmem:[#allocation4] sm:$0x40] }
 0x3eb   : > { %v4158_v8 = vsel %vm3030_vm11, %v4157_v11, %v4156_v22  ;;  %v4289_v33 = vunpack.c.h.b16 %v4258_v30  ;;  %v8185_v28 = vsel %vm3042_vm15, %v4049_v49, %v4048_v40  ;;  %v4290_v45 = vunpack.c.h.b16 %v4259_v29  ;;  %v6565_v11 = vld [vmem:[%s8724_s5 + $0x118] sm:$0xff]   ;;  %v8224_v55 = vld [vmem:[#allocation4 + $0x28] sm:$0x40] }
 0x3ec   : > { %6089 = vmatpush3.bf16.msra.mxu0 %v6558_v10  ;;  %6107 = vmatpush3.bf16.msra.mxu1 %v6559_v16  ;;  %v4160_v58 = vsel %vm3033_vm12, %v4159_v24, %v4158_v8  ;;  %v4291_v31 = vunpack.c.h.b16 %v4260_v23  ;;  %v4287_v16 = vunpack.c.h.b16 %v4256_v1  ;;  %v4292_v14 = vunpack.c.h.b16 %v4261_v36  ;;  %v4514_v1 = vld [vmem:[#allocation4 + $0x20] sm:$0x40]  ;;  %v4516_v36 = vld [vmem:[#allocation4 + $0x30] sm:$0x40] }
 0x3ed   : > { %6090 = vmatprep.subr.bf16.mxu0 %v6658_v52  ;;  %6108 = vmatprep.subr.bf16.mxu1 %v6658_v52  ;;  %v4162_v10 = vsel %vm3036_vm13, %v4161_v21, %v4160_v58  ;;  %v4293_v48 = vrot.slane %v4285_v51, 2  ;;  %v3399_v42 = vpack.c.b16 %v8150_v12, %v8150_v12  ;;  %v8202_v57 = vsel %vm3027_vm10, %v8134_v63, %v8051_v54  ;;  %v6564_v12 = vld [vmem:[%s8724_s5 + $0xe0] sm:$0xff]  }
 0x3ee   : > { %v4164_v47 = vsel %vm3039_vm14, %v4163_v17, %v4162_v10  ;;  %v4294_v43 = vrot.slane %v4286_v3, 1  ;;  %v4297_v35 = vrot.slane %v4288_v62, 7  ;;  %v4299_v49 = vrot.slane %v4289_v33, 6 }
 0x3ef   : > { %v8206_v59 = vsel %vm3042_vm15, %v4165_v7, %v4164_v47  ;;  %v4301_v0 = vrot.slane %v4290_v45, 5  ;;  %v4409_v54 = vrot.slane %v4285_v51, 3  ;;  %v4410_v63 = vrot.slane %v4286_v3, 2  ;;  %v4513_v51 = vld [vmem:[#allocation4 + $0x18] sm:$0x40] }
 0x3f0   : > { %6091 = vmatpush3.bf16.msra.mxu0 %v6560_v4  ;;  %6109 = vmatpush3.bf16.msra.mxu1 %v6561_v61  ;;  %v4295_v60 = vsel %vm3024_vm9, %v4294_v43, %v4293_v48  ;;  %v4303_v4 = vrot.slane %v4291_v31, 4  ;;  %v4305_v21 = vrot.slane %v4292_v14, 3  ;;  %v4412_v30 = vrot.slane %v4287_v16, 1 }
 0x3f1   : > { %6092 = vmatprep.subr.bf16.mxu0 %v6658_v52  ;;  %6110 = vmatprep.subr.bf16.mxu1 %v6658_v52  ;;  %v4296_v24 = vsel %vm3027_vm10, %v4287_v16, %v4295_v60  ;;  %v4415_v61 = vrot.slane %v4289_v33, 7  ;;  %v4411_v17 = vsel %vm3024_vm9, %v4410_v63, %v4409_v54  ;;  %v4417_v29 = vrot.slane %v4290_v45, 6  ;;  %v8237_v45 = vld [vmem:[#allocation4 + $0x38] sm:$0x40]  ;;  %v8272_v54 = vld [vmem:[#allocation4 + $0x8] sm:$0x80] }
 0x3f2   : > { %v4298_v15 = vsel %vm3030_vm11, %v4297_v35, %v4296_v24  ;;  %v4419_v23 = vrot.slane %v4291_v31, 5  ;;  %v4413_v7 = vsel %vm3027_vm10, %v4412_v30, %v4411_v17  ;;  %v4541_v3 = vunpack.c.h.b16 %v8214_v41  ;;  %v6569_v63 = vld [vmem:[%s8724_s5 + $0x128] sm:$0xff]  }
 0x3f3   : > { %v4300_v22 = vsel %vm3033_vm12, %v4299_v49, %v4298_v15  ;;  %v4542_v40 = vunpack.c.h.b16 %v8208_v5  ;;  %v4414_v33 = vsel %vm3030_vm11, %v4288_v62, %v4413_v7  ;;  %v4421_v58 = vrot.slane %v4292_v14, 4 }
 0x3f4   : > { %6093 = vmatpush3.bf16.msra.mxu0 %v6562_v56  ;;  %6111 = vmatpush3.bf16.msra.mxu1 %v6563_v46  ;;  %v4302_v8 = vsel %vm3036_vm13, %v4301_v0, %v4300_v22  ;;  %v4543_v31 = vunpack.c.h.b16 %v4512_v37  ;;  %v6566_v56 = vld [vmem:[%s8724_s5 + $0xe8] sm:$0xff]   ;;  %v4416_v46 = vsel %vm3033_vm12, %v4415_v61, %v4414_v33  ;;  %v4544_v10 = vunpack.c.h.b16 %v4513_v51  ;;  %v6568_v0 = vld [vmem:[%s8724_s5 + $0xf0] sm:$0xff]  }
 0x3f5   : > { %6116 = vmatprep.subr.bf16.mxu0 %v6658_v52  ;;  %6134 = vmatprep.subr.bf16.mxu1 %v6658_v52  ;;  %v4546_v62 = vunpack.c.h.b16 %v8224_v55  ;;  %v4418_v14 = vsel %vm3036_vm13, %v4417_v29, %v4416_v46  ;;  %v4545_v48 = vunpack.c.h.b16 %v4514_v1  ;;  %v4548_v43 = vunpack.c.h.b16 %v8237_v45  ;;  %v4768_v61 = vld [vmem:[#allocation4 + $0x10] sm:$0x80]  ;;  %v4769_v1 = vld [vmem:[#allocation4 + $0x18] sm:$0x80] }
 0x3f6   : > { %v4420_v47 = vsel %vm3039_vm14, %v4419_v23, %v4418_v14  ;;  %v4549_v35 = vrot.slane %v4541_v3, 4  ;;  %v4550_v49 = vrot.slane %v4542_v40, 3  ;;  %v3646_v5 = vrot.slane %v3520_v32, 2  ;;  %v4770_v23 = vld [vmem:[#allocation4 + $0x20] sm:$0x80] }
 0x3f7   : > { %6095 = vmatmul.mubr.msk.bf16.vlgmr.msra.gmra.mrb[20].mxu0 %vm2961_vm8, %v3283_v19  ;;  %6113 = vmatmul.mubr.msk.bf16.vlgmr.msra.gmra.mrb[20].mxu1 %vm2961_vm8, %v3399_v42  ;;  %v4304_v19 = vsel %vm3039_vm14, %v4303_v4, %v4302_v8  ;;  %v4547_v42 = vunpack.c.h.b16 %v4516_v36  ;;  %v8270_v60 = vsel %vm3042_vm15, %v4421_v58, %v4420_v47  ;;  %v4552_v4 = vrot.slane %v4543_v31, 2  ;;  %v4771_v58 = vld [vmem:[#allocation4 + $0x28] sm:$0x80]  ;;  %v8301_v46 = vld [vmem:[#allocation4 + $0x38] sm:$0x80] }
 0x3f8   : > { %6117 = vmatpush3.bf16.msra.mxu0 %v6564_v12  ;;  %6135 = vmatpush3.bf16.msra.mxu1 %v6565_v11  ;;  %v8251_v16 = vsel %vm3042_vm15, %v4305_v21, %v4304_v19  ;;  %v8267_v12 = vrot.slane %v3521_v27, 1  ;;  %v4551_v41 = vsel %vm3024_vm9, %v4550_v49, %v4549_v35  ;;  %v4554_v39 = vrot.slane %v4544_v10, 1  ;;  %v4766_v27 = vld [vmem:[#allocation4] sm:$0x80]  ;;  %v4772_v47 = vld [vmem:[#allocation4 + $0x30] sm:$0x80] }
 0x3f9   : > { %6118 = vmatprep.subr.bf16.mxu0 %v6658_v52  ;;  %6136 = vmatprep.subr.bf16.mxu1 %v6658_v52  ;;  %v4557_v32 = vrot.slane %v4546_v62, 7  ;;  %v4559_v34 = vrot.slane %v4547_v42, 6  ;;  %v4553_v11 = vsel %vm3027_vm10, %v4552_v4, %v4551_v41  ;;  %v4665_v24 = vrot.slane %v4541_v3, 5  ;;  %v6570_v3 = vld [vmem:[%s8724_s5 + $0xf8] sm:$0xff]  }
 0x3fa   : > { %6130 = vmatprep.mubr.msk.bf16.mxu0 %vm6659_vm7, %v6658_v52  ;;  %6148 = vmatprep.mubr.msk.bf16.mxu1 %vm6659_vm7, %v6658_v52  ;;  %v4666_v21 = vrot.slane %v4542_v40, 4  ;;  %v4668_v30 = vrot.slane %v4543_v31, 3  ;;  %v4555_v37 = vsel %vm3030_vm11, %v4554_v39, %v4553_v11  ;;  %v4561_v15 = vrot.slane %v4548_v43, 5  ;;  %v6571_v40 = vld [vmem:[%s8724_s5 + $0x130] sm:$0xff]  }
 0x3fb   : > { %v4670_v17 = vrot.slane %v4544_v10, 2  ;;  %v4672_v29 = vrot.slane %v4545_v48, 1  ;;  %v4556_v51 = vsel %vm3033_vm12, %v4545_v48, %v4555_v37  ;;  %v4675_v7 = vrot.slane %v4547_v42, 7  ;;  %v6575_v37 = vld [vmem:[%s8724_s5 + $0x140] sm:$0xff]  }
 0x3fc   : > { %6119 = vmatpush3.bf16.msra.mxu0 %v6566_v56  ;;  %6137 = vmatpush3.bf16.msra.mxu1 %v6567_v44  ;;  %v4667_v22 = vsel %vm3024_vm9, %v4666_v21, %v4665_v24  ;;  %v4797_v36 = vunpack.c.h.b16 %v4766_v27  ;;  %v4558_v8 = vsel %vm3036_vm13, %v4557_v32, %v4556_v51  ;;  %v4798_v45 = vunpack.c.h.b16 %v8272_v54 }
 0x3fd   : > { %6120 = vmatprep.subr.bf16.mxu0 %v6658_v52  ;;  %6138 = vmatprep.subr.bf16.mxu1 %v6658_v52  ;;  %v4669_v33 = vsel %vm3027_vm10, %v4668_v30, %v4667_v22  ;;  %v4799_v31 = vunpack.c.h.b16 %v4768_v61  ;;  %v3651_v56 = vrot.slane %v3523_v2, 7  ;;  %v4560_v44 = vsel %vm3039_vm14, %v4559_v34, %v4558_v8 }
 0x3fe   : > { %v4671_v19 = vsel %vm3030_vm11, %v4670_v17, %v4669_v33  ;;  %v4801_v10 = vunpack.c.h.b16 %v4770_v23  ;;  %v3647_v14 = vsel %vm3030_vm11, %v3646_v5, %v8202_v57  ;;  %v8306_v48 = vsel %vm3042_vm15, %v4561_v15, %v4560_v44  ;;  %v6572_v57 = vld [vmem:[%s8724_s5 + $0x100] sm:$0xff]   ;;  %v6573_v5 = vld [vmem:[%s8724_s5 + $0x138] sm:$0xff]  }
 0x3ff   : > { %v4673_v42 = vsel %vm3033_vm12, %v4672_v29, %v4671_v19  ;;  %v4800_v35 = vunpack.c.h.b16 %v4769_v1  ;;  %v4677_v2 = vrot.slane %v4548_v43, 6  ;;  %v4802_v49 = vunpack.c.h.b16 %v4771_v58 }
 0x400   : > { %6121 = vmatpush3.bf16.msra.mxu0 %v6568_v0  ;;  %6139 = vmatpush3.bf16.msra.mxu1 %v6569_v63  ;;  %v4674_v6 = vsel %vm3036_vm13, %v4546_v62, %v4673_v42  ;;  %v4805_v0 = vrot.slane %v4797_v36, 6  ;;  %v4804_v54 = vunpack.c.h.b16 %v8301_v46  ;;  %v4806_v55 = vrot.slane %v4798_v45, 5 }
 0x401   : > { %6122 = vmatprep.subr.bf16.mxu0 %v6658_v52  ;;  %6140 = vmatprep.subr.bf16.mxu1 %v6658_v52  ;;  %v4676_v4 = vsel %vm3039_vm14, %v4675_v7, %v4674_v6  ;;  %v4808_v63 = vrot.slane %v4799_v31, 4  ;;  %v3649_v62 = vsel %vm3033_vm12, %v8267_v12, %v3647_v14  ;;  %v4803_v41 = vunpack.c.h.b16 %v4772_v47  ;;  %v6574_v12 = vld [vmem:[%s8724_s5 + $0x108] sm:$0xff]   ;;  %v6580_v47 = vld [vmem:[%s8724_s5 + $0x158] sm:$0xff]   ;;  %v6582_v6 = vld [vmem:[%s8724_s5 + $0x160] sm:$0xff]  }
 0x402   : > { %v8325_v43 = vsel %vm3042_vm15, %v4677_v2, %v4676_v4  ;;  %v4812_v39 = vrot.slane %v4801_v10, 2  ;;  %v4807_v32 = vsel %vm3024_vm9, %v4806_v55, %v4805_v0  ;;  %v4810_v34 = vrot.slane %v4800_v35, 3  ;;  %v6583_v2 = vld [vmem:[%s8724_s5 + $0x198] sm:$0xff]   ;;  %v6585_v0 = vld [vmem:[%s8724_s5 + $0x1a0] sm:$0xff]  }
 0x403   : > { %v4921_v27 = vrot.slane %v4797_v36, 7  ;;  %v4922_v11 = vrot.slane %v4798_v45, 6  ;;  %v4809_v24 = vsel %vm3027_vm10, %v4808_v63, %v4807_v32  ;;  %v4814_v21 = vrot.slane %v4802_v49, 1  ;;  %v6588_v4 = vld [vmem:[%s8724_s5 + $0x178] sm:$0xff]   ;;  %v6590_v55 = vld [vmem:[%s8724_s5 + $0x180] sm:$0xff]  }
 0x404   : > { %6123 = vmatpush3.bf16.msra.mxu0 %v6570_v3  ;;  %6141 = vmatpush3.bf16.msra.mxu1 %v6571_v40  ;;  %v4924_v30 = vrot.slane %v4799_v31, 5  ;;  %v4928_v61 = vrot.slane %v4801_v10, 3  ;;  %v4811_v15 = vsel %vm3030_vm11, %v4810_v34, %v4809_v24  ;;  %v4817_v17 = vrot.slane %v4804_v54, 7  ;;  %v6591_v63 = vld [vmem:[%s8724_s5 + $0x1b8] sm:$0xff]   ;;  %v6594_v34 = vld [vmem:[%s8724_s5 + $0x1c8] sm:$0xff]   ;;  %v6599_v24 = vld [vmem:[%s8724_s5 + $0x210] sm:$0xff]  }
 0x405   : > { %6124 = vmatprep.subr.bf16.mxu0 %v6658_v52  ;;  %6142 = vmatprep.subr.bf16.mxu1 %v6658_v52  ;;  %v4923_v29 = vsel %vm3024_vm9, %v4922_v11, %v4921_v27  ;;  %v4926_v23 = vrot.slane %v4800_v35, 4  ;;  %v3534_v51 = vsel %vm3036_vm13, %v8062_v13, %v8047_v50  ;;  %v4813_v22 = vsel %vm3033_vm12, %v4812_v39, %v4811_v15  ;;  %v6581_v35 = vld [vmem:[%s8724_s5 + $0x190] sm:$0xff]   ;;  %v6597_v27 = vld [vmem:[%s8724_s5 + $0x208] sm:$0xff]   ;;  %v6598_v11 = vld [vmem:[%s8724_s5 + $0x1d8] sm:$0xff]  }
 0x406   : > { %v4925_v7 = vsel %vm3027_vm10, %v4924_v30, %v4923_v29  ;;  %v4932_v1 = vrot.slane %v4803_v41, 1  ;;  %v3650_v36 = vsel %vm3036_vm13, %v3522_v26, %v3649_v62  ;;  %v4815_v3 = vsel %vm3036_vm13, %v4814_v21, %v4813_v22  ;;  %v6577_v26 = vld [vmem:[%s8724_s5 + $0x148] sm:$0xff]   ;;  %v6592_v62 = vld [vmem:[%s8724_s5 + $0x1c0] sm:$0xff]   ;;  %v6601_v30 = vld [vmem:[%s8724_s5 + $0x218] sm:$0xff]  }
 0x407   : > { %v4927_v40 = vsel %vm3030_vm11, %v4926_v23, %v4925_v7  ;;  %v4930_v8 = vrot.slane %v4802_v49, 2  ;;  %v3536_v33 = vsel %vm3039_vm14, %v8080_v9, %v3534_v51  ;;  %v3652_v58 = vsel %vm3039_vm14, %v3651_v56, %v3650_v36  ;;  %v6584_v49 = vld [vmem:[%s8724_s5 + $0x168] sm:$0xff]   ;;  %v6600_v21 = vld [vmem:[%s8724_s5 + $0x1e0] sm:$0xff]   ;;  %v6608_v22 = vld [vmem:[%s8724_s5 + $0x238] sm:$0xff]  }
 0x408   : > { %6125 = vmatpush3.bf16.msra.mxu0 %v6572_v57  ;;  %6143 = vmatpush3.bf16.msra.mxu1 %v6573_v5  ;;  %v4816_v50 = vsel %vm3039_vm14, %v4803_v41, %v4815_v3  ;;  %v4929_v13 = vsel %vm3033_vm12, %v4928_v61, %v4927_v40  ;;  %v3537_v45 = vrot.slane %v3524_v25, 5  ;;  %v3653_v9 = vrot.slane %v3524_v25, 6  ;;  %v6579_v25 = vld [vmem:[%s8724_s5 + $0x188] sm:$0xff]   ;;  %v6586_v57 = vld [vmem:[%s8724_s5 + $0x170] sm:$0xff]   ;;  %v6593_v41 = vld [vmem:[%s8724_s5 + $0x1f8] sm:$0xff]  }
 0x409   : > { %6126 = vmatprep.subr.bf16.mxu0 %v6658_v52  ;;  %6144 = vmatprep.subr.bf16.mxu1 %v6658_v52  ;;  %v8365_v31 = vsel %vm3042_vm15, %v4817_v17, %v4816_v50  ;;  %v4931_v56 = vsel %vm3036_vm13, %v4930_v8, %v4929_v13  ;;  %v6587_v5 = vld [vmem:[%s8724_s5 + $0x1a8] sm:$0xff]   ;;  %v3795_v39 = vpack.c.b16 %v8128_v53, %v8128_v53  ;;  %v6595_v53 = vld [vmem:[%s8724_s5 + $0x200] sm:$0xff]   ;;  %v6606_v17 = vld [vmem:[%s8724_s5 + $0x230] sm:$0xff]  }
 0x40a   : > { %v4933_v44 = vsel %vm3039_vm14, %v4932_v1, %v4931_v56  ;;  %v3538_v19 = vsel %vm3042_vm15, %v3537_v45, %v3536_v33  ;;  %v3654_v46 = vsel %vm3042_vm15, %v3653_v9, %v3652_v58  ;;  %v3911_v32 = vpack.c.b16 %v8155_v18, %v8155_v18  ;;  %v6596_v18 = vld [vmem:[%s8724_s5 + $0x1d0] sm:$0xff]   ;;  %v6602_v61 = vld [vmem:[%s8724_s5 + $0x1e8] sm:$0xff]   ;;  %v6611_v7 = vld [vmem:[%s8724_s5 + $0x278] sm:$0xff]  }
 0x40b   : > { %v8374_v10 = vsel %vm3042_vm15, %v4804_v54, %v4933_v44  ;;  %v3539_v14 = vpack.c.b16 %v3538_v19, %v3538_v19  ;;  %v3655_v42 = vpack.c.b16 %v3654_v46, %v3654_v46  ;;  %v6589_v54 = vld [vmem:[%s8724_s5 + $0x1b0] sm:$0xff]   ;;  %v6605_v15 = vld [vmem:[%s8724_s5 + $0x228] sm:$0xff]   ;;  %v4051_v23 = vpack.c.b16 %v8185_v28, %v8185_v28  ;;  %v6613_v36 = vld [vmem:[%s8724_s5 + $0x280] sm:$0xff]  }
 0x40c   : > { %6127 = vmatpush3.bf16.msra.mxu0 %v6574_v12  ;;  %6145 = vmatpush3.bf16.msra.mxu1 %v6575_v37  ;;  %v6603_v12 = vld [vmem:[%s8724_s5 + $0x220] sm:$0xff]   ;;  %v6604_v37 = vld [vmem:[%s8724_s5 + $0x1f0] sm:$0xff]   ;;  %v6607_v29 = vld [vmem:[%s8724_s5 + $0x268] sm:$0xff]   ;;  %v4167_v51 = vpack.c.b16 %v8206_v59, %v8206_v59  ;;  %v4423_v45 = vpack.c.b16 %v8270_v60, %v8270_v60 }
 0x40d   : > { %6128 = vmatprep.subr.bf16.mxu0 %v6658_v52  ;;  %6146 = vmatprep.subr.bf16.mxu1 %v6658_v52  ;;  %v6609_v28 = vld [vmem:[%s8724_s5 + $0x270] sm:$0xff]   ;;  %v6610_v59 = vld [vmem:[%s8724_s5 + $0x240] sm:$0xff]   ;;  %v6612_v1 = vld [vmem:[%s8724_s5 + $0x248] sm:$0xff]  }
 0x40e   : > { %v6614_v3 = vld [vmem:[%s8724_s5 + $0x250] sm:$0xff]   ;;  %v6615_v40 = vld [vmem:[%s8724_s5 + $0x288] sm:$0xff]   ;;  %v6616_v8 = vld [vmem:[%s8724_s5 + $0x258] sm:$0xff]  }
 0x40f   : > { %v6617_v33 = vld [vmem:[%s8724_s5 + $0x290] sm:$0xff]   ;;  %v6618_v58 = vld [vmem:[%s8724_s5 + $0x260] sm:$0xff]   ;;  %v6619_v50 = vld [vmem:[%s8724_s5 + $0x298] sm:$0xff]  }
 0x410   : > { %6129 = vmatpush3.bf16.msra.mxu0 %v6576_v20  ;;  %6147 = vmatpush3.bf16.msra.mxu1 %v6577_v26  ;;  %v6620_v13 = vld [vmem:[%s8724_s5 + $0x2a0] sm:$0xff]   ;;  %v6621_v20 = vld [vmem:[%s8724_s5 + $0x2d8] sm:$0xff]   ;;  %v4307_v26 = vpack.c.b16 %v8251_v16, %v8251_v16  ;;  %v6622_v9 = vld [vmem:[%s8724_s5 + $0x2a8] sm:$0xff]  }
 0x411   : > { %6152 = vmatprep.subr.bf16.mxu0 %v6658_v52  ;;  %6170 = vmatprep.subr.bf16.mxu1 %v6658_v52  ;;  %v6623_v16 = vld [vmem:[%s8724_s5 + $0x2e0] sm:$0xff]   ;;  %v6624_v60 = vld [vmem:[%s8724_s5 + $0x2b0] sm:$0xff]   ;;  %v6625_v56 = vld [vmem:[%s8724_s5 + $0x2e8] sm:$0xff]  }
 0x412   : > { %v6626_v44 = vld [vmem:[%s8724_s5 + $0x2b8] sm:$0xff]   ;;  %v6627_v19 = vld [vmem:[%s8724_s5 + $0x2f0] sm:$0xff]   ;;  %v6628_v46 = vld [vmem:[%s8724_s5 + $0x2c0] sm:$0xff]  }
 0x413   : > { %6131 = vmatmul.mubr.msk.bf16.vlgmr.msra.gmra.mrb[24].mxu0 %vm2961_vm8, %v3539_v14  ;;  %6149 = vmatmul.mubr.msk.bf16.vlgmr.msra.gmra.mrb[24].mxu1 %vm2961_vm8, %v3655_v42  ;;  %v6631_v14 = vld [vmem:[%s8724_s5 + $0x300] sm:$0xff]   ;;  %v6632_v42 = vld [vmem:[%s8724_s5 + $0x2d0] sm:$0xff]  }
 0x414   : > { %6153 = vmatpush3.bf16.msra.mxu0 %v6578_v38  ;;  %6171 = vmatpush3.bf16.msra.mxu1 %v6579_v25  ;;  %v6629_v38 = vld [vmem:[%s8724_s5 + $0x2f8] sm:$0xff]   ;;  %v6630_v25 = vld [vmem:[%s8724_s5 + $0x2c8] sm:$0xff]  }
 0x415   : > { %6154 = vmatprep.subr.bf16.mxu0 %v6658_v52  ;;  %6172 = vmatprep.subr.bf16.mxu1 %v6658_v52 }
 0x416   : > { %6166 = vmatprep.mubr.msk.bf16.mxu0 %vm6659_vm7, %v6658_v52  ;;  %6184 = vmatprep.mubr.msk.bf16.mxu1 %vm6659_vm7, %v6658_v52 }
 0x418   : > { %6155 = vmatpush3.bf16.msra.mxu0 %v6580_v47  ;;  %6173 = vmatpush3.bf16.msra.mxu1 %v6581_v35  ;;  %v6633_v47 = vld [vmem:[%s8724_s5 + $0x308] sm:$0xff]   ;;  %v6634_v35 = vld [vmem:[%s8724_s5 + $0x310] sm:$0xff]  }
 0x419   : > { %6156 = vmatprep.subr.bf16.mxu0 %v6658_v52  ;;  %6174 = vmatprep.subr.bf16.mxu1 %v6658_v52 }
 0x41c   : > { %6157 = vmatpush3.bf16.msra.mxu0 %v6582_v6  ;;  %6175 = vmatpush3.bf16.msra.mxu1 %v6583_v2  ;;  %v6635_v6 = vld [vmem:[%s8724_s5 + $0x348] sm:$0xff]   ;;  %v4563_v2 = vpack.c.b16 %v8306_v48, %v8306_v48  ;;  %v6637_v48 = vld [vmem:[%s8724_s5 + $0x350] sm:$0xff]  }
 0x41d   : > { %6158 = vmatprep.subr.bf16.mxu0 %v6658_v52  ;;  %6176 = vmatprep.subr.bf16.mxu1 %v6658_v52 }
 0x420   : > { %6159 = vmatpush3.bf16.msra.mxu0 %v6584_v49  ;;  %6177 = vmatpush3.bf16.msra.mxu1 %v6585_v0  ;;  %v4679_v49 = vpack.c.b16 %v8325_v43, %v8325_v43  ;;  %v6636_v0 = vld [vmem:[%s8724_s5 + $0x318] sm:$0xff]   ;;  %v6638_v43 = vld [vmem:[%s8724_s5 + $0x320] sm:$0xff]  }
 0x421   : > { %6160 = vmatprep.subr.bf16.mxu0 %v6658_v52  ;;  %6178 = vmatprep.subr.bf16.mxu1 %v6658_v52 }
 0x424   : > { %6161 = vmatpush3.bf16.msra.mxu0 %v6586_v57  ;;  %6179 = vmatpush3.bf16.msra.mxu1 %v6587_v5  ;;  %v6639_v57 = vld [vmem:[%s8724_s5 + $0x358] sm:$0xff]   ;;  %v6640_v5 = vld [vmem:[%s8724_s5 + $0x328] sm:$0xff]  }
 0x425   : > { %6162 = vmatprep.subr.bf16.mxu0 %v6658_v52  ;;  %6180 = vmatprep.subr.bf16.mxu1 %v6658_v52 }
 0x428   : > { %6163 = vmatpush3.bf16.msra.mxu0 %v6588_v4  ;;  %6181 = vmatpush3.bf16.msra.mxu1 %v6589_v54  ;;  %v6641_v4 = vld [vmem:[%s8724_s5 + $0x360] sm:$0xff]   ;;  %v6642_v54 = vld [vmem:[%s8724_s5 + $0x330] sm:$0xff]  }
 0x429   : > { %6164 = vmatprep.subr.bf16.mxu0 %v6658_v52  ;;  %6182 = vmatprep.subr.bf16.mxu1 %v6658_v52 }
 0x42c   : > { %6165 = vmatpush3.bf16.msra.mxu0 %v6590_v55  ;;  %6183 = vmatpush3.bf16.msra.mxu1 %v6591_v63  ;;  %v6643_v55 = vld [vmem:[%s8724_s5 + $0x368] sm:$0xff]   ;;  %v6644_v63 = vld [vmem:[%s8724_s5 + $0x338] sm:$0xff]  }
 0x42d   : > { %6188 = vmatprep.subr.bf16.mxu0 %v6658_v52  ;;  %6206 = vmatprep.subr.bf16.mxu1 %v6658_v52 }
 0x42f   : > { %6167 = vmatmul.mubr.msk.bf16.vlgmr.msra.gmra.mrb[28].mxu0 %vm2961_vm8, %v3795_v39  ;;  %6185 = vmatmul.mubr.msk.bf16.vlgmr.msra.gmra.mrb[28].mxu1 %vm2961_vm8, %v3911_v32  ;;  %v6647_v39 = vld [vmem:[%s8724_s5 + $0x378] sm:$0xff]   ;;  %v4819_v32 = vpack.c.b16 %v8365_v31, %v8365_v31 }
 0x430   : > { %6189 = vmatpush3.bf16.msra.mxu0 %v6592_v62  ;;  %6207 = vmatpush3.bf16.msra.mxu1 %v6593_v41  ;;  %v6645_v62 = vld [vmem:[%s8724_s5 + $0x370] sm:$0xff]   ;;  %v6646_v41 = vld [vmem:[%s8724_s5 + $0x340] sm:$0xff]  }
 0x431   : > { %6190 = vmatprep.subr.bf16.mxu0 %v6658_v52  ;;  %6208 = vmatprep.subr.bf16.mxu1 %v6658_v52 }
 0x432   : > { %6202 = vmatprep.mubr.msk.bf16.mxu0 %vm6659_vm7, %v6658_v52  ;;  %6220 = vmatprep.mubr.msk.bf16.mxu1 %vm6659_vm7, %v6658_v52 }
 0x434   : > { %6191 = vmatpush3.bf16.msra.mxu0 %v6594_v34  ;;  %6209 = vmatpush3.bf16.msra.mxu1 %v6595_v53  ;;  %v4935_v34 = vpack.c.b16 %v8374_v10, %v8374_v10 }
 0x435   : > { %6192 = vmatprep.subr.bf16.mxu0 %v6658_v52  ;;  %6210 = vmatprep.subr.bf16.mxu1 %v6658_v52 }
 0x438   : > { %6193 = vmatpush3.bf16.msra.mxu0 %v6596_v18  ;;  %6211 = vmatpush3.bf16.msra.mxu1 %v6597_v27 }
 0x439   : > { %6194 = vmatprep.subr.bf16.mxu0 %v6658_v52  ;;  %6212 = vmatprep.subr.bf16.mxu1 %v6658_v52 }
 0x43c   : > { %6195 = vmatpush3.bf16.msra.mxu0 %v6598_v11  ;;  %6213 = vmatpush3.bf16.msra.mxu1 %v6599_v24 }
 0x43d   : > { %6196 = vmatprep.subr.bf16.mxu0 %v6658_v52  ;;  %6214 = vmatprep.subr.bf16.mxu1 %v6658_v52 }
 0x440   : > { %6197 = vmatpush3.bf16.msra.mxu0 %v6600_v21  ;;  %6215 = vmatpush3.bf16.msra.mxu1 %v6601_v30 }
 0x441   : > { %6198 = vmatprep.subr.bf16.mxu0 %v6658_v52  ;;  %6216 = vmatprep.subr.bf16.mxu1 %v6658_v52 }
 0x444   : > { %6199 = vmatpush3.bf16.msra.mxu0 %v6602_v61  ;;  %6217 = vmatpush3.bf16.msra.mxu1 %v6603_v12 }
 0x445   : > { %6200 = vmatprep.subr.bf16.mxu0 %v6658_v52  ;;  %6218 = vmatprep.subr.bf16.mxu1 %v6658_v52 }
 0x448   : > { %6201 = vmatpush3.bf16.msra.mxu0 %v6604_v37  ;;  %6219 = vmatpush3.bf16.msra.mxu1 %v6605_v15 }
 0x449   : > { %6224 = vmatprep.subr.bf16.mxu0 %v6658_v52  ;;  %6242 = vmatprep.subr.bf16.mxu1 %v6658_v52 }
 0x44b   : > { %6203 = vmatmul.mubr.msk.bf16.vlgmr.msra.gmra.mrb[32].mxu0 %vm2961_vm8, %v4051_v23  ;;  %6221 = vmatmul.mubr.msk.bf16.vlgmr.msra.gmra.mrb[32].mxu1 %vm2961_vm8, %v4167_v51 }
 0x44c   : > { %6225 = vmatpush3.bf16.msra.mxu0 %v6606_v17  ;;  %6243 = vmatpush3.bf16.msra.mxu1 %v6607_v29 }
 0x44d   : > { %6226 = vmatprep.subr.bf16.mxu0 %v6658_v52  ;;  %6244 = vmatprep.subr.bf16.mxu1 %v6658_v52 }
 0x44e   : > { %6238 = vmatprep.mubr.msk.bf16.mxu0 %vm6659_vm7, %v6658_v52  ;;  %6256 = vmatprep.mubr.msk.bf16.mxu1 %vm6659_vm7, %v6658_v52 }
 0x450   : > { %6227 = vmatpush3.bf16.msra.mxu0 %v6608_v22  ;;  %6245 = vmatpush3.bf16.msra.mxu1 %v6609_v28 }
 0x451   : > { %6228 = vmatprep.subr.bf16.mxu0 %v6658_v52  ;;  %6246 = vmatprep.subr.bf16.mxu1 %v6658_v52 }
 0x454   : > { %6229 = vmatpush3.bf16.msra.mxu0 %v6610_v59  ;;  %6247 = vmatpush3.bf16.msra.mxu1 %v6611_v7 }
 0x455   : > { %6230 = vmatprep.subr.bf16.mxu0 %v6658_v52  ;;  %6248 = vmatprep.subr.bf16.mxu1 %v6658_v52 }
 0x458   : > { %6231 = vmatpush3.bf16.msra.mxu0 %v6612_v1  ;;  %6249 = vmatpush3.bf16.msra.mxu1 %v6613_v36 }
 0x459   : > { %6232 = vmatprep.subr.bf16.mxu0 %v6658_v52  ;;  %6250 = vmatprep.subr.bf16.mxu1 %v6658_v52 }
 0x45c   : > { %6233 = vmatpush3.bf16.msra.mxu0 %v6614_v3  ;;  %6251 = vmatpush3.bf16.msra.mxu1 %v6615_v40 }
 0x45d   : > { %6234 = vmatprep.subr.bf16.mxu0 %v6658_v52  ;;  %6252 = vmatprep.subr.bf16.mxu1 %v6658_v52 }
 0x460   : > { %6235 = vmatpush3.bf16.msra.mxu0 %v6616_v8  ;;  %6253 = vmatpush3.bf16.msra.mxu1 %v6617_v33 }
 0x461   : > { %6236 = vmatprep.subr.bf16.mxu0 %v6658_v52  ;;  %6254 = vmatprep.subr.bf16.mxu1 %v6658_v52 }
 0x464   : > { %6237 = vmatpush3.bf16.msra.mxu0 %v6618_v58  ;;  %6255 = vmatpush3.bf16.msra.mxu1 %v6619_v50 }
 0x465   : > { %6260 = vmatprep.subr.bf16.mxu0 %v6658_v52  ;;  %6278 = vmatprep.subr.bf16.mxu1 %v6658_v52 }
 0x467   : > { %6239 = vmatmul.mubr.msk.bf16.vlgmr.msra.gmra.mrb[36].mxu0 %vm2961_vm8, %v4307_v26  ;;  %6257 = vmatmul.mubr.msk.bf16.vlgmr.msra.gmra.mrb[36].mxu1 %vm2961_vm8, %v4423_v45 }
 0x468   : > { %6261 = vmatpush3.bf16.msra.mxu0 %v6620_v13  ;;  %6279 = vmatpush3.bf16.msra.mxu1 %v6621_v20 }
 0x469   : > { %6262 = vmatprep.subr.bf16.mxu0 %v6658_v52  ;;  %6280 = vmatprep.subr.bf16.mxu1 %v6658_v52 }
 0x46a   : > { %6274 = vmatprep.mubr.msk.bf16.mxu0 %vm6659_vm7, %v6658_v52  ;;  %6292 = vmatprep.mubr.msk.bf16.mxu1 %vm6659_vm7, %v6658_v52 }
 0x46c   : > { %6263 = vmatpush3.bf16.msra.mxu0 %v6622_v9  ;;  %6281 = vmatpush3.bf16.msra.mxu1 %v6623_v16 }
 0x46d   : > { %6264 = vmatprep.subr.bf16.mxu0 %v6658_v52  ;;  %6282 = vmatprep.subr.bf16.mxu1 %v6658_v52 }
 0x470   : > { %6265 = vmatpush3.bf16.msra.mxu0 %v6624_v60  ;;  %6283 = vmatpush3.bf16.msra.mxu1 %v6625_v56 }
 0x471   : > { %6266 = vmatprep.subr.bf16.mxu0 %v6658_v52  ;;  %6284 = vmatprep.subr.bf16.mxu1 %v6658_v52 }
 0x474   : > { %6267 = vmatpush3.bf16.msra.mxu0 %v6626_v44  ;;  %6285 = vmatpush3.bf16.msra.mxu1 %v6627_v19 }
 0x475   : > { %6268 = vmatprep.subr.bf16.mxu0 %v6658_v52  ;;  %6286 = vmatprep.subr.bf16.mxu1 %v6658_v52 }
 0x478   : > { %6269 = vmatpush3.bf16.msra.mxu0 %v6628_v46  ;;  %6287 = vmatpush3.bf16.msra.mxu1 %v6629_v38 }
 0x479   : > { %6270 = vmatprep.subr.bf16.mxu0 %v6658_v52  ;;  %6288 = vmatprep.subr.bf16.mxu1 %v6658_v52 }
 0x47c   : > { %6271 = vmatpush3.bf16.msra.mxu0 %v6630_v25  ;;  %6289 = vmatpush3.bf16.msra.mxu1 %v6631_v14 }
 0x47d   : > { %6272 = vmatprep.subr.bf16.mxu0 %v6658_v52  ;;  %6290 = vmatprep.subr.bf16.mxu1 %v6658_v52 }
 0x480   : > { %6273 = vmatpush3.bf16.msra.mxu0 %v6632_v42  ;;  %6291 = vmatpush3.bf16.msra.mxu1 %v6633_v47 }
 0x481   : > { %6296 = vmatprep.subr.bf16.mxu0 %v6658_v52  ;;  %6314 = vmatprep.subr.bf16.mxu1 %v6658_v52 }
 0x483   : > { %6275 = vmatmul.mubr.msk.bf16.vlgmr.msra.gmra.mrb[40].mxu0 %vm2961_vm8, %v4563_v2  ;;  %6293 = vmatmul.mubr.msk.bf16.vlgmr.msra.gmra.mrb[40].mxu1 %vm2961_vm8, %v4679_v49 }
 0x484   : > { %6297 = vmatpush3.bf16.msra.mxu0 %v6634_v35  ;;  %6315 = vmatpush3.bf16.msra.mxu1 %v6635_v6 }
 0x485   : > { %6298 = vmatprep.subr.bf16.mxu0 %v6658_v52  ;;  %6316 = vmatprep.subr.bf16.mxu1 %v6658_v52 }
 0x486   : > { %6310 = vmatprep.mubr.msk.bf16.mxu0 %vm6659_vm7, %v6658_v52  ;;  %6328 = vmatprep.mubr.msk.bf16.mxu1 %vm6659_vm7, %v6658_v52 }
 0x488   : > { %6299 = vmatpush3.bf16.msra.mxu0 %v6636_v0  ;;  %6317 = vmatpush3.bf16.msra.mxu1 %v6637_v48 }
 0x489   : > { %6300 = vmatprep.subr.bf16.mxu0 %v6658_v52  ;;  %6318 = vmatprep.subr.bf16.mxu1 %v6658_v52 }
 0x48c   : > { %6301 = vmatpush3.bf16.msra.mxu0 %v6638_v43  ;;  %6319 = vmatpush3.bf16.msra.mxu1 %v6639_v57 }
 0x48d   : > { %6302 = vmatprep.subr.bf16.mxu0 %v6658_v52  ;;  %6320 = vmatprep.subr.bf16.mxu1 %v6658_v52 }
 0x490   : > { %6303 = vmatpush3.bf16.msra.mxu0 %v6640_v5  ;;  %6321 = vmatpush3.bf16.msra.mxu1 %v6641_v4 }
 0x491   : > { %6304 = vmatprep.subr.bf16.mxu0 %v6658_v52  ;;  %6322 = vmatprep.subr.bf16.mxu1 %v6658_v52 }
 0x494   : > { %6305 = vmatpush3.bf16.msra.mxu0 %v6642_v54  ;;  %6323 = vmatpush3.bf16.msra.mxu1 %v6643_v55 }
 0x495   : > { %6306 = vmatprep.subr.bf16.mxu0 %v6658_v52  ;;  %6324 = vmatprep.subr.bf16.mxu1 %v6658_v52 }
 0x498   : > { %6307 = vmatpush3.bf16.msra.mxu0 %v6644_v63  ;;  %6325 = vmatpush3.bf16.msra.mxu1 %v6645_v62 }
 0x499   : > { %6308 = vmatprep.subr.bf16.mxu0 %v6658_v52  ;;  %6326 = vmatprep.subr.bf16.mxu1 %v6658_v52 }
 0x49c   : > { %6309 = vmatpush3.bf16.msra.mxu0 %v6646_v41  ;;  %6327 = vmatpush3.bf16.msra.mxu1 %v6647_v39 }
 0x49f   : > { %6311 = vmatmul.mubr.msk.bf16.vlgmr.msra.gmra.mrb[44].mxu0 %vm2961_vm8, %v4819_v32  ;;  %6329 = vmatmul.mubr.msk.bf16.vlgmr.msra.gmra.mrb[44].mxu1 %vm2961_vm8, %v4935_v34 }
 0x4ae   : > { %v3124_v53 = vpop.f32.mrb[16].mxu0  ;;  %v3224_v18 = vpop.f32.mrb[16].mxu1 }
 0x4af   : > { %v3225_v27 = vadd.f32 %v3224_v18, %v3124_v53  ;;  %v6060_v11 = vpop.f32.mrb[17].mxu0  ;;  %v6078_v24 = vpop.f32.mrb[17].mxu1 }
 0x4b0   : > { %v3127_v21 = vpop.f32.mrb[18].mxu0  ;;  %v3227_v30 = vpop.f32.mrb[18].mxu1 }
 0x4b1   : > { %v6061_v52 = vpop.f32.mrb[19].mxu0  ;;  %v6079_v61 = vpop.f32.mrb[19].mxu1 }
 0x4ca   : > { %v3363_v12 = vpop.f32.mrb[20].mxu0  ;;  %v3479_v37 = vpop.f32.mrb[20].mxu1 }
 0x4cb   : > { %v3369_v15 = vadd.f32 %v3363_v12, %v3225_v27  ;;  %v6096_v31 = vpop.f32.mrb[21].mxu0  ;;  %v6114_v17 = vpop.f32.mrb[21].mxu1 }
 0x4cc   : > { %v3366_v29 = vpop.f32.mrb[22].mxu0  ;;  %v3482_v10 = vpop.f32.mrb[22].mxu1 }
 0x4cd   : > { %v3485_v23 = vadd.f32 %v3479_v37, %v3369_v15  ;;  %v6097_v51 = vpop.f32.mrb[23].mxu0  ;;  %v6115_v22 = vpop.f32.mrb[23].mxu1  ;;  %v5644_v37 = vld [vmem:[%s8725_s6] ss:$0 sm:$0xff] }
 0x4e6   : > { %v3619_v28 = vpop.f32.mrb[24].mxu0  ;;  %v3735_v59 = vpop.f32.mrb[24].mxu1 }
 0x4e7   : > { %v3625_v7 = vadd.f32 %v3619_v28, %v3485_v23  ;;  %v6132_v1 = vpop.f32.mrb[25].mxu0  ;;  %v6150_v36 = vpop.f32.mrb[25].mxu1 }
 0x4e8   : > { %v3622_v3 = vpop.f32.mrb[26].mxu0  ;;  %v3738_v40 = vpop.f32.mrb[26].mxu1 }
 0x4e9   : > { %v3741_v8 = vadd.f32 %v3735_v59, %v3625_v7  ;;  %v6133_v33 = vpop.f32.mrb[27].mxu0  ;;  %v6151_v58 = vpop.f32.mrb[27].mxu1 }
 0x502   : > { %v3875_v50 = vpop.f32.mrb[28].mxu0  ;;  %v3991_v13 = vpop.f32.mrb[28].mxu1 }
 0x503   : > { %v3881_v20 = vadd.f32 %v3875_v50, %v3741_v8  ;;  %v6168_v26 = vpop.f32.mrb[29].mxu0  ;;  %v6186_v45 = vpop.f32.mrb[29].mxu1 }
 0x504   : > { %v3878_v9 = vpop.f32.mrb[30].mxu0  ;;  %v3994_v16 = vpop.f32.mrb[30].mxu1 }
 0x505   : > { %v3997_v60 = vadd.f32 %v3991_v13, %v3881_v20  ;;  %v6169_v56 = vpop.f32.mrb[31].mxu0  ;;  %v6187_v44 = vpop.f32.mrb[31].mxu1 }
 0x51e   : > { %v4131_v19 = vpop.f32.mrb[32].mxu0  ;;  %v4247_v46 = vpop.f32.mrb[32].mxu1 }
 0x51f   : > { %v4137_v38 = vadd.f32 %v4131_v19, %v3997_v60  ;;  %v6204_v25 = vpop.f32.mrb[33].mxu0  ;;  %v6222_v14 = vpop.f32.mrb[33].mxu1 }
 0x520   : > { %v4134_v42 = vpop.f32.mrb[34].mxu0  ;;  %v4250_v47 = vpop.f32.mrb[34].mxu1 }
 0x521   : > { %v4253_v35 = vadd.f32 %v4247_v46, %v4137_v38  ;;  %v6205_v6 = vpop.f32.mrb[35].mxu0  ;;  %v6223_v2 = vpop.f32.mrb[35].mxu1 }
 0x53a   : > { %v4387_v49 = vpop.f32.mrb[36].mxu0  ;;  %v4503_v0 = vpop.f32.mrb[36].mxu1 }
 0x53b   : > { %v4393_v48 = vadd.f32 %v4387_v49, %v4253_v35  ;;  %v6240_v43 = vpop.f32.mrb[37].mxu0  ;;  %v6258_v57 = vpop.f32.mrb[37].mxu1 }
 0x53c   : > { %v4390_v5 = vpop.f32.mrb[38].mxu0  ;;  %v4506_v4 = vpop.f32.mrb[38].mxu1 }
 0x53d   : > { %v4509_v54 = vadd.f32 %v4503_v0, %v4393_v48  ;;  %v6241_v55 = vpop.f32.mrb[39].mxu0  ;;  %v6259_v63 = vpop.f32.mrb[39].mxu1 }
 0x556   : > { %v4643_v62 = vpop.f32.mrb[40].mxu0  ;;  %v4759_v41 = vpop.f32.mrb[40].mxu1 }
 0x557   : > { %v4649_v39 = vadd.f32 %v4643_v62, %v4509_v54  ;;  %v6276_v32 = vpop.f32.mrb[41].mxu0  ;;  %v6294_v34 = vpop.f32.mrb[41].mxu1 }
 0x558   : > { %v4646_v53 = vpop.f32.mrb[42].mxu0  ;;  %v4762_v18 = vpop.f32.mrb[42].mxu1 }
 0x559   : > { %v4765_v27 = vadd.f32 %v4759_v41, %v4649_v39  ;;  %v6277_v11 = vpop.f32.mrb[43].mxu0  ;;  %v6295_v24 = vpop.f32.mrb[43].mxu1 }
 0x572   : > { %v4899_v21 = vpop.f32.mrb[44].mxu0  ;;  %v5015_v30 = vpop.f32.mrb[44].mxu1 }
 0x573   : > { %v4905_v52 = vadd.f32 %v4899_v21, %v4765_v27  ;;  %v6312_v61 = vpop.f32.mrb[45].mxu0  ;;  %v6330_v12 = vpop.f32.mrb[45].mxu1 }
 0x574   : > { %v4902_v15 = vpop.f32.mrb[46].mxu0  ;;  %v5018_v31 = vpop.f32.mrb[46].mxu1 }
 0x575   : > { %v5021_v17 = vadd.f32 %v5015_v30, %v4905_v52  ;;  %v6313_v29 = vpop.f32.mrb[47].mxu0  ;;  %v6331_v10 = vpop.f32.mrb[47].mxu1 }
 0x577   : > { %v5029_v23 = vadd.f32 %v5644_v37, %v5021_v17 }
 0x579   : > { %5031 = vst.msk [vmem:[%s281_s21] sm:$0xff] %vm5030_vm0, %v5029_v23 }
 0x57a PF: > { %s17_s24 = sadd.s32 1, %s6654_s24  }
 0x57b   : > { %p14_p5 = scmp.ge.s32.totalorder %s17_s24, 4  }
 0x57d   :  { %16 = sbr.rel (!%p14_p5) target bundleno = 1 (0x1), region = 97 }

</bundles_post_ra>
